<compile_context>
chip_gen: v7x
topology: tpu7x:2x2x1
jax: 0.10.0
libtpu: 0.0.40
codegen_flags: <defaults>
</compile_context>

<pallas_src>
import functools

import jax
import jax.numpy as jnp
from jax.experimental import pallas as pl
from jax.experimental.pallas import tpu as pltpu

LANE = 128


def _round_up(n, m):
    return (n + m - 1) // m * m


# ---------------------------------------------------------------------------
# Fused BasicBlock kernel (one grid step == `nb` images)
# ---------------------------------------------------------------------------
def _basic_block_kernel(*refs, nb, ho, wo, has_proj):
    if has_proj:
        (x_ref,      # (nb, M, K1)        bf16  im2col patches of the input
         w1_ref,     # (K1, Cmid)         bf16  conv1, K-packed over 9 taps
         s1_ref,     # (1, Cmid)          f32   folded BN1 scale
         b1_ref,     # (1, Cmid)          f32   folded BN1 shift
         w2_ref,     # (9, Cmid, Cout_p)  bf16
         s2_ref,     # (1, Cout_p)        f32
         b2_ref,     # (1, Cout_p)        f32
         wsc_ref,    # (K1, Cout_p)       bf16  1x1 proj embedded in center tap
         ssc_ref,    # (1, Cout_p)        f32
         bsc_ref,    # (1, Cout_p)        f32
         o_ref,      # (nb, Ho, Wo, Cout_p) f32
         mid_ref,    # VMEM scratch (nb, Ho+2, Wo+2, Cmid) bf16
         ) = refs
        res_ref = None
    else:
        (x_ref, w1_ref, s1_ref, b1_ref, w2_ref, s2_ref, b2_ref,
         res_ref,    # (nb, M, Cout_p) f32  exact identity residual
         o_ref, mid_ref) = refs

    m = ho * wo
    k1 = x_ref.shape[-1]
    cmid = w1_ref.shape[-1]
    cout_p = o_ref.shape[-1]

    # -- conv1 (3x3 / stride) + bn1 + relu: ONE MXU matmul (K packed) ---------
    x = x_ref[...].reshape(nb * m, k1)                              # bf16
    acc1 = jnp.dot(x, w1_ref[...], preferred_element_type=jnp.float32)
    mid = jnp.maximum(acc1 * s1_ref[...] + b1_ref[...], 0.0)        # f32

    # -- shortcut -------------------------------------------------------------
    if has_proj:
        # 1x1 projection: reuse the same im2col LHS; non-center rows of
        # wsc_ref are zero so they contribute exactly 0.
        rsc = jnp.dot(x, wsc_ref[...], preferred_element_type=jnp.float32)
        rsc = rsc * ssc_ref[...] + bsc_ref[...]
    else:
        rsc = res_ref[...].reshape(nb * m, cout_p)                  # exact f32

    # -- conv1 activation stays in VMEM (bf16); zero only the halo border ----
    zrow = jnp.zeros((nb, 1, wo + 2, cmid), jnp.bfloat16)
    zcol = jnp.zeros((nb, ho, 1, cmid), jnp.bfloat16)
    mid_ref[:, 0:1, :, :] = zrow
    mid_ref[:, ho + 1:ho + 2, :, :] = zrow
    mid_ref[:, 1:ho + 1, 0:1, :] = zcol
    mid_ref[:, 1:ho + 1, wo + 1:wo + 2, :] = zcol
    mid_ref[:, 1:ho + 1, 1:wo + 1, :] = (
        mid.astype(jnp.bfloat16).reshape(nb, ho, wo, cmid))

    # -- conv2 (3x3 / 1) + bn2: 9 accumulated MXU matmuls, K = Cmid (unpadded)
    acc2 = jnp.zeros((nb * m, cout_p), jnp.float32)
    for t in range(9):
        i, j = divmod(t, 3)
        patch = mid_ref[:, i:i + ho, j:j + wo, :].reshape(nb * m, cmid)
        acc2 += jnp.dot(patch, w2_ref[t], preferred_element_type=jnp.float32)
    y2 = acc2 * s2_ref[...] + b2_ref[...]

    o_ref[...] = jnp.maximum(y2 + rsc, 0.0).reshape(nb, ho, wo, cout_p)


# ---------------------------------------------------------------------------
# Parameter construction + wrapper
# ---------------------------------------------------------------------------
def _fold_bn(gamma, beta, mean, var, eps=1e-5):
    scale = gamma / jnp.sqrt(var + eps)
    return scale, beta - scale * mean


class BasicBlockPallas:
    """Pallas port of the CONet BasicBlock (inference-mode folded BatchNorm)."""

    def __init__(self, key, in_planes, intermediate_planes, out_planes,
                 stride=1, images_per_step=1):
        self.in_planes = in_planes
        self.mid_planes = intermediate_planes
        self.out_planes = out_planes
        self.stride = stride
        self.images_per_step = images_per_step
        self.has_proj = (stride != 1) or (in_planes != out_planes)

        self.k1 = 9 * in_planes                      # packed K for conv1
        self.cout_p = _round_up(out_planes, LANE)    # lane-dense output

        ks = jax.random.split(key, 9)

        def conv_w(k, kh, kw, cin, cout):
            fan_in = kh * kw * cin
            return (jax.random.normal(k, (kh, kw, cin, cout), jnp.float32)
                    / jnp.sqrt(float(fan_in)))

        def bn(kg, kb, c):
            gamma = 1.0 + 0.1 * jax.random.normal(kg, (c,), jnp.float32)
            beta = 0.1 * jax.random.normal(kb, (c,), jnp.float32)
            return _fold_bn(gamma, beta,
                            jnp.zeros((c,), jnp.float32),
                            jnp.ones((c,), jnp.float32))

        self.w1 = conv_w(ks[0], 3, 3, in_planes, intermediate_planes)
        self.s1, self.b1 = bn(ks[1], ks[2], intermediate_planes)
        self.w2 = conv_w(ks[3], 3, 3, intermediate_planes, out_planes)
        self.s2, self.b2 = bn(ks[4], ks[5], out_planes)
        if self.has_proj:
            self.wsc = conv_w(ks[6], 1, 1, in_planes, out_planes)[0, 0]
            self.ssc, self.bsc = bn(ks[7], ks[8], out_planes)

        # ---- pre-packed kernel operands (built once) ------------------------
        def pad_vec(v, c_p):
            return jnp.zeros((1, c_p), jnp.float32).at[0, :v.shape[0]].set(v)

        cmid, cout, cout_p, k1 = intermediate_planes, out_planes, self.cout_p, self.k1

        # conv1: (3,3,Cin,Cmid) -> (9*Cin, Cmid); tap-major, channel-minor.
        self.w1_p = self.w1.reshape(k1, cmid).astype(jnp.bfloat16)
        self.s1_p = self.s1.reshape(1, cmid)
        self.b1_p = self.b1.reshape(1, cmid)

        # conv2: (3,3,Cmid,Cout) -> (9, Cmid, Cout_p), zero-padded in Cout only.
        w2p = jnp.zeros((9, cmid, cout_p), jnp.float32)
        w2p = w2p.at[:, :, :cout].set(self.w2.reshape(9, cmid, cout))
        self.w2_p = w2p.astype(jnp.bfloat16)
        self.s2_p = pad_vec(self.s2, cout_p)
        self.b2_p = pad_vec(self.b2, cout_p)

        if self.has_proj:
            # 1x1 projection embedded in the center-tap rows of the packed K.
            wscp = jnp.zeros((k1, cout_p), jnp.float32)
            wscp = wscp.at[4 * in_planes:5 * in_planes, :cout].set(self.wsc)
            self.wsc_p = wscp.astype(jnp.bfloat16)
            self.ssc_p = pad_vec(self.ssc, cout_p)
            self.bsc_p = pad_vec(self.bsc, cout_p)

    def __call__(self, y_nchw):
        x = jnp.transpose(y_nchw, (0, 2, 3, 1)).astype(jnp.float32)  # NHWC
        b, h, w, cin = x.shape
        assert cin == self.in_planes
        s = self.stride
        ho = (h - 1) // s + 1
        wo = (w - 1) // s + 1
        m = ho * wo
        nb = self.images_per_step
        assert b % nb == 0, "batch must be a multiple of images_per_step"

        k1, cmid, cout_p = self.k1, self.mid_planes, self.cout_p

        # Wrapper-side im2col of the 3x3/stride conv (tiny: 9*Cin bf16 per
        # pixel; no 128-channel padding in HBM).  Handles stride here so the
        # kernel is stride-agnostic.
        xpad = jnp.pad(x, ((0, 0), (1, 1), (1, 1), (0, 0)))
        taps = []
        for i in range(3):
            for j in range(3):
                taps.append(xpad[:, i:i + s * (ho - 1) + 1:s,
                                 j:j + s * (wo - 1) + 1:s, :])
        patches = (jnp.concatenate(taps, axis=-1)
                   .reshape(b, m, k1).astype(jnp.bfloat16))

        kernel = functools.partial(_basic_block_kernel, nb=nb, ho=ho, wo=wo,
                                   has_proj=self.has_proj)

        const2 = lambda i: (0, 0)
        const3 = lambda i: (0, 0, 0)

        in_specs = [
            pl.BlockSpec((nb, m, k1), lambda i: (i, 0, 0)),
            pl.BlockSpec((k1, cmid), const2),
            pl.BlockSpec((1, cmid), const2),
            pl.BlockSpec((1, cmid), const2),
            pl.BlockSpec((9, cmid, cout_p), const3),
            pl.BlockSpec((1, cout_p), const2),
            pl.BlockSpec((1, cout_p), const2),
        ]
        args = [patches, self.w1_p, self.s1_p, self.b1_p,
                self.w2_p, self.s2_p, self.b2_p]
        if self.has_proj:
            in_specs += [pl.BlockSpec((k1, cout_p), const2),
                         pl.BlockSpec((1, cout_p), const2),
                         pl.BlockSpec((1, cout_p), const2)]
            args += [self.wsc_p, self.ssc_p, self.bsc_p]
        else:
            # Exact f32 identity residual (no bf16 rounding of the skip path).
            res = jnp.zeros((b, m, cout_p), jnp.float32)
            res = res.at[..., :self.out_planes].set(
                x.reshape(b, m, self.out_planes))
            in_specs += [pl.BlockSpec((nb, m, cout_p), lambda i: (i, 0, 0))]
            args += [res]

        out_p = pl.pallas_call(
            kernel,
            out_shape=jax.ShapeDtypeStruct((b, ho, wo, cout_p), jnp.float32),
            grid_spec=pltpu.PrefetchScalarGridSpec(
                num_scalar_prefetch=0,
                grid=(b // nb,),
                in_specs=in_specs,
                out_specs=pl.BlockSpec((nb, ho, wo, cout_p),
                                       lambda i: (i, 0, 0, 0)),
                scratch_shapes=[
                    pltpu.VMEM((nb, ho + 2, wo + 2, cmid), jnp.bfloat16)],
            ),
            compiler_params=pltpu.CompilerParams(
                dimension_semantics=("parallel",),       # batch across cores
                vmem_limit_bytes=32 * 1024 * 1024,       # > v5e's 16MB default
            ),
        )(*args)

        out = out_p[..., :self.out_planes]               # drop channel padding
        return jnp.transpose(out, (0, 3, 1, 2))          # back to NCHW


# ---------------------------------------------------------------------------
# Reference that mirrors the kernel's bf16-operand / f32-accumulate arithmetic
# ---------------------------------------------------------------------------
def _reference_block(blk, y_nchw):
    x = jnp.transpose(y_nchw, (0, 2, 3, 1)).astype(jnp.float32)
    xb = x.astype(jnp.bfloat16)

    def conv(v, wgt, stride, pad):
        return jax.lax.conv_general_dilated(
            v, wgt, window_strides=(stride, stride),
            padding=[(pad, pad), (pad, pad)],
            dimension_numbers=("NHWC", "HWIO", "NHWC"),
            preferred_element_type=jnp.float32)

    h1 = jnp.maximum(
        conv(xb, blk.w1.astype(jnp.bfloat16), blk.stride, 1) * blk.s1 + blk.b1,
        0.0)
    h2 = (conv(h1.astype(jnp.bfloat16), blk.w2.astype(jnp.bfloat16), 1, 1)
          * blk.s2 + blk.b2)
    if blk.has_proj:
        wsc = blk.wsc.astype(jnp.bfloat16).reshape(
            1, 1, blk.in_planes, blk.out_planes)
        sc = conv(xb, wsc, blk.stride, 0) * blk.ssc + blk.bsc
    else:
        sc = x                                            # exact f32 identity
    out = jnp.maximum(h2 + sc, 0.0)
    return jnp.transpose(out, (0, 3, 1, 2))


def _run_case(key, b, cin, cmid, cout, hw, stride, nb):
    k_params, k_input = jax.random.split(key)
    block = BasicBlockPallas(k_params, cin, cmid, cout, stride=stride,
                             images_per_step=nb)
    y = jax.random.normal(k_input, (b, cin, hw, hw), jnp.float32)

    out = jax.jit(block.__call__)(y)
    jax.block_until_ready(out)

    ho = (hw - 1) // stride + 1
    assert out.shape == (b, cout, ho, ho), out.shape

    ref = _reference_block(block, y)
    max_err = float(jnp.max(jnp.abs(out - ref)))
    assert jnp.allclose(out, ref, atol=2e-3, rtol=2e-3), max_err


if __name__ == "__main__":
    key = jax.random.PRNGKey(0)
    k1, k2, k3 = jax.random.split(key, 3)

    # 1) Spec shapes: BasicBlock(4 -> 32 -> 32), stride 1, projection shortcut.
    _run_case(k1, b=2, cin=4, cmid=32, cout=32, hw=16, stride=1, nb=1)

    # 2) Identity shortcut (exact f32 residual) + 2 images per grid step.
    _run_case(k2, b=4, cin=32, cmid=32, cout=32, hw=8, stride=1, nb=2)

    # 3) Strided block with projection shortcut (stride handled in im2col).
    _run_case(k3, b=2, cin=4, cmid=32, cout=64, hw=16, stride=2, nb=1)

    print("KERNEL_OK")
</pallas_src>

<mosaic_0001>
module attributes {stable_mosaic.version = 11 : i64} {
  func.func @_basic_block_kernel(%arg0: i32, %arg1: memref<1x256x36xbf16, #tpu.memory_space<vmem>>, %arg2: memref<36x32xbf16, #tpu.memory_space<vmem>>, %arg3: memref<1x32xf32, #tpu.memory_space<vmem>>, %arg4: memref<1x32xf32, #tpu.memory_space<vmem>>, %arg5: memref<9x32x128xbf16, #tpu.memory_space<vmem>>, %arg6: memref<1x128xf32, #tpu.memory_space<vmem>>, %arg7: memref<1x128xf32, #tpu.memory_space<vmem>>, %arg8: memref<36x128xbf16, #tpu.memory_space<vmem>>, %arg9: memref<1x128xf32, #tpu.memory_space<vmem>>, %arg10: memref<1x128xf32, #tpu.memory_space<vmem>>, %arg11: memref<1x16x16x128xf32, #tpu.memory_space<vmem>>, %arg12: memref<1x18x18x32xbf16, #tpu.memory_space<vmem>>) attributes {dimension_semantics = [#tpu.dimension_semantics<parallel>], iteration_bounds = array<i64: 2>, scalar_prefetch = 0 : i64, scratch_operands = 1 : i64, tpu.core_type = #tpu.core_type<tc>, window_params = [{transform_indices = @transform_0, window_bounds = array<i64: 1, 256, 36>}, {pipeline_mode = #tpu.pipeline_mode<synchronous>, transform_indices = @transform_1, window_bounds = array<i64: 36, 32>}, {pipeline_mode = #tpu.pipeline_mode<synchronous>, transform_indices = @transform_2, window_bounds = array<i64: 1, 32>}, {pipeline_mode = #tpu.pipeline_mode<synchronous>, transform_indices = @transform_3, window_bounds = array<i64: 1, 32>}, {pipeline_mode = #tpu.pipeline_mode<synchronous>, transform_indices = @transform_4, window_bounds = array<i64: 9, 32, 128>}, {pipeline_mode = #tpu.pipeline_mode<synchronous>, transform_indices = @transform_5, window_bounds = array<i64: 1, 128>}, {pipeline_mode = #tpu.pipeline_mode<synchronous>, transform_indices = @transform_6, window_bounds = array<i64: 1, 128>}, {pipeline_mode = #tpu.pipeline_mode<synchronous>, transform_indices = @transform_7, window_bounds = array<i64: 36, 128>}, {pipeline_mode = #tpu.pipeline_mode<synchronous>, transform_indices = @transform_8, window_bounds = array<i64: 1, 128>}, {pipeline_mode = #tpu.pipeline_mode<synchronous>, transform_indices = @transform_9, window_bounds = array<i64: 1, 128>}, {transform_indices = @transform_10, window_bounds = array<i64: 1, 16, 16, 128>}]} {
    %c0 = arith.constant 0 : index
    %c0_0 = arith.constant 0 : index
    %c0_1 = arith.constant 0 : index
    %0 = vector.load %arg1[%c0, %c0_0, %c0_1] : memref<1x256x36xbf16, #tpu.memory_space<vmem>>, vector<1x256x36xbf16>
    %1 = vector.shape_cast %0 : vector<1x256x36xbf16> to vector<256x36xbf16>
    %c0_2 = arith.constant 0 : index
    %c0_3 = arith.constant 0 : index
    %2 = vector.load %arg2[%c0_2, %c0_3] : memref<36x32xbf16, #tpu.memory_space<vmem>>, vector<36x32xbf16>
    %cst = arith.constant dense<0.000000e+00> : vector<256x32xf32>
    %3 = tpu.matmul %1, %2, %cst {dimension_numbers = #tpu.dot_dimension_numbers<[1], [0], [0], [1], [0, 0, 1, 1], [], []>} : vector<256x36xbf16>, vector<36x32xbf16>, vector<256x32xf32> -> vector<256x32xf32>
    %c0_4 = arith.constant 0 : index
    %c0_5 = arith.constant 0 : index
    %4 = vector.load %arg3[%c0_4, %c0_5] : memref<1x32xf32, #tpu.memory_space<vmem>>, vector<1x32xf32>
    %5 = vector.broadcast %4 : vector<1x32xf32> to vector<256x32xf32>
    %6 = arith.mulf %3, %5 : vector<256x32xf32>
    %c0_6 = arith.constant 0 : index
    %c0_7 = arith.constant 0 : index
    %7 = vector.load %arg4[%c0_6, %c0_7] : memref<1x32xf32, #tpu.memory_space<vmem>>, vector<1x32xf32>
    %8 = vector.broadcast %7 : vector<1x32xf32> to vector<256x32xf32>
    %9 = arith.addf %6, %8 : vector<256x32xf32>
    %cst_8 = arith.constant 0.000000e+00 : f32
    %10 = vector.broadcast %cst_8 : f32 to vector<256x32xf32>
    %11 = arith.maximumf %9, %10 : vector<256x32xf32>
    %c0_9 = arith.constant 0 : index
    %c0_10 = arith.constant 0 : index
    %12 = vector.load %arg8[%c0_9, %c0_10] : memref<36x128xbf16, #tpu.memory_space<vmem>>, vector<36x128xbf16>
    %cst_11 = arith.constant dense<0.000000e+00> : vector<256x128xf32>
    %13 = tpu.matmul %1, %12, %cst_11 {dimension_numbers = #tpu.dot_dimension_numbers<[1], [0], [0], [1], [0, 0, 1, 1], [], []>} : vector<256x36xbf16>, vector<36x128xbf16>, vector<256x128xf32> -> vector<256x128xf32>
    %c0_12 = arith.constant 0 : index
    %c0_13 = arith.constant 0 : index
    %14 = vector.load %arg9[%c0_12, %c0_13] : memref<1x128xf32, #tpu.memory_space<vmem>>, vector<1x128xf32>
    %15 = vector.broadcast %14 : vector<1x128xf32> to vector<256x128xf32>
    %16 = arith.mulf %13, %15 : vector<256x128xf32>
    %c0_14 = arith.constant 0 : index
    %c0_15 = arith.constant 0 : index
    %17 = vector.load %arg10[%c0_14, %c0_15] : memref<1x128xf32, #tpu.memory_space<vmem>>, vector<1x128xf32>
    %18 = vector.broadcast %17 : vector<1x128xf32> to vector<256x128xf32>
    %19 = arith.addf %16, %18 : vector<256x128xf32>
    %cst_16 = arith.constant 0.000000e+00 : bf16
    %20 = vector.broadcast %cst_16 : bf16 to vector<1x1x18x32xbf16>
    %cst_17 = arith.constant 0.000000e+00 : bf16
    %21 = vector.broadcast %cst_17 : bf16 to vector<1x16x1x32xbf16>
    %c0_18 = arith.constant 0 : index
    %c0_19 = arith.constant 0 : index
    %c0_20 = arith.constant 0 : index
    %c0_21 = arith.constant 0 : index
    %22 = vector.load %arg12[%c0_18, %c0_19, %c0_20, %c0_21] : memref<1x18x18x32xbf16, #tpu.memory_space<vmem>>, vector<1x1x18x32xbf16>
    tpu.vector_store %arg12[%c0_18, %c0_19, %c0_20, %c0_21], %20 {strides = array<i32>} : memref<1x18x18x32xbf16, #tpu.memory_space<vmem>>, vector<1x1x18x32xbf16>,
    %c0_22 = arith.constant 0 : index
    %c17 = arith.constant 17 : index
    %c0_23 = arith.constant 0 : index
    %c0_24 = arith.constant 0 : index
    %23 = vector.load %arg12[%c0_22, %c17, %c0_23, %c0_24] : memref<1x18x18x32xbf16, #tpu.memory_space<vmem>>, vector<1x1x18x32xbf16>
    tpu.vector_store %arg12[%c0_22, %c17, %c0_23, %c0_24], %20 {strides = array<i32>} : memref<1x18x18x32xbf16, #tpu.memory_space<vmem>>, vector<1x1x18x32xbf16>,
    %c0_25 = arith.constant 0 : index
    %c1 = arith.constant 1 : index
    %c0_26 = arith.constant 0 : index
    %c0_27 = arith.constant 0 : index
    %24 = vector.load %arg12[%c0_25, %c1, %c0_26, %c0_27] : memref<1x18x18x32xbf16, #tpu.memory_space<vmem>>, vector<1x16x1x32xbf16>
    tpu.vector_store %arg12[%c0_25, %c1, %c0_26, %c0_27], %21 {strides = array<i32>} : memref<1x18x18x32xbf16, #tpu.memory_space<vmem>>, vector<1x16x1x32xbf16>,
    %c0_28 = arith.constant 0 : index
    %c1_29 = arith.constant 1 : index
    %c17_30 = arith.constant 17 : index
    %c0_31 = arith.constant 0 : index
    %25 = vector.load %arg12[%c0_28, %c1_29, %c17_30, %c0_31] : memref<1x18x18x32xbf16, #tpu.memory_space<vmem>>, vector<1x16x1x32xbf16>
    tpu.vector_store %arg12[%c0_28, %c1_29, %c17_30, %c0_31], %21 {strides = array<i32>} : memref<1x18x18x32xbf16, #tpu.memory_space<vmem>>, vector<1x16x1x32xbf16>,
    %26 = arith.truncf %11 : vector<256x32xf32> to vector<256x32xbf16>
    %27 = vector.shape_cast %26 : vector<256x32xbf16> to vector<1x16x16x32xbf16>
    %c0_32 = arith.constant 0 : index
    %c1_33 = arith.constant 1 : index
    %c1_34 = arith.constant 1 : index
    %c0_35 = arith.constant 0 : index
    %28 = vector.load %arg12[%c0_32, %c1_33, %c1_34, %c0_35] : memref<1x18x18x32xbf16, #tpu.memory_space<vmem>>, vector<1x16x16x32xbf16>
    tpu.vector_store %arg12[%c0_32, %c1_33, %c1_34, %c0_35], %27 {strides = array<i32>} : memref<1x18x18x32xbf16, #tpu.memory_space<vmem>>, vector<1x16x16x32xbf16>,
    %cst_36 = arith.constant 0.000000e+00 : f32
    %29 = vector.broadcast %cst_36 : f32 to vector<256x128xf32>
    %c0_37 = arith.constant 0 : index
    %c0_38 = arith.constant 0 : index
    %c0_39 = arith.constant 0 : index
    %c0_40 = arith.constant 0 : index
    %30 = vector.load %arg12[%c0_37, %c0_38, %c0_39, %c0_40] : memref<1x18x18x32xbf16, #tpu.memory_space<vmem>>, vector<1x16x16x32xbf16>
    %31 = vector.shape_cast %30 : vector<1x16x16x32xbf16> to vector<256x32xbf16>
    %c0_41 = arith.constant 0 : index
    %c0_42 = arith.constant 0 : index
    %c0_43 = arith.constant 0 : index
    %32 = vector.load %arg5[%c0_41, %c0_42, %c0_43] : memref<9x32x128xbf16, #tpu.memory_space<vmem>>, vector<1x32x128xbf16>
    %33 = vector.shape_cast %32 : vector<1x32x128xbf16> to vector<32x128xbf16>
    %cst_44 = arith.constant dense<0.000000e+00> : vector<256x128xf32>
    %34 = tpu.matmul %31, %33, %cst_44 {dimension_numbers = #tpu.dot_dimension_numbers<[1], [0], [0], [1], [0, 0, 1, 1], [], []>} : vector<256x32xbf16>, vector<32x128xbf16>, vector<256x128xf32> -> vector<256x128xf32>
    %35 = arith.addf %29, %34 : vector<256x128xf32>
    %c0_45 = arith.constant 0 : index
    %c0_46 = arith.constant 0 : index
    %c1_47 = arith.constant 1 : index
    %c0_48 = arith.constant 0 : index
    %36 = vector.load %arg12[%c0_45, %c0_46, %c1_47, %c0_48] : memref<1x18x18x32xbf16, #tpu.memory_space<vmem>>, vector<1x16x16x32xbf16>
    %37 = vector.shape_cast %36 : vector<1x16x16x32xbf16> to vector<256x32xbf16>
    %c1_49 = arith.constant 1 : index
    %c0_50 = arith.constant 0 : index
    %c0_51 = arith.constant 0 : index
    %38 = vector.load %arg5[%c1_49, %c0_50, %c0_51] : memref<9x32x128xbf16, #tpu.memory_space<vmem>>, vector<1x32x128xbf16>
    %39 = vector.shape_cast %38 : vector<1x32x128xbf16> to vector<32x128xbf16>
    %cst_52 = arith.constant dense<0.000000e+00> : vector<256x128xf32>
    %40 = tpu.matmul %37, %39, %cst_52 {dimension_numbers = #tpu.dot_dimension_numbers<[1], [0], [0], [1], [0, 0, 1, 1], [], []>} : vector<256x32xbf16>, vector<32x128xbf16>, vector<256x128xf32> -> vector<256x128xf32>
    %41 = arith.addf %35, %40 : vector<256x128xf32>
    %c0_53 = arith.constant 0 : index
    %c0_54 = arith.constant 0 : index
    %c2 = arith.constant 2 : index
    %c0_55 = arith.constant 0 : index
    %42 = vector.load %arg12[%c0_53, %c0_54, %c2, %c0_55] : memref<1x18x18x32xbf16, #tpu.memory_space<vmem>>, vector<1x16x16x32xbf16>
    %43 = vector.shape_cast %42 : vector<1x16x16x32xbf16> to vector<256x32xbf16>
    %c2_56 = arith.constant 2 : index
    %c0_57 = arith.constant 0 : index
    %c0_58 = arith.constant 0 : index
    %44 = vector.load %arg5[%c2_56, %c0_57, %c0_58] : memref<9x32x128xbf16, #tpu.memory_space<vmem>>, vector<1x32x128xbf16>
    %45 = vector.shape_cast %44 : vector<1x32x128xbf16> to vector<32x128xbf16>
    %cst_59 = arith.constant dense<0.000000e+00> : vector<256x128xf32>
    %46 = tpu.matmul %43, %45, %cst_59 {dimension_numbers = #tpu.dot_dimension_numbers<[1], [0], [0], [1], [0, 0, 1, 1], [], []>} : vector<256x32xbf16>, vector<32x128xbf16>, vector<256x128xf32> -> vector<256x128xf32>
    %47 = arith.addf %41, %46 : vector<256x128xf32>
    %c0_60 = arith.constant 0 : index
    %c1_61 = arith.constant 1 : index
    %c0_62 = arith.constant 0 : index
    %c0_63 = arith.constant 0 : index
    %48 = vector.load %arg12[%c0_60, %c1_61, %c0_62, %c0_63] : memref<1x18x18x32xbf16, #tpu.memory_space<vmem>>, vector<1x16x16x32xbf16>
    %49 = vector.shape_cast %48 : vector<1x16x16x32xbf16> to vector<256x32xbf16>
    %c3 = arith.constant 3 : index
    %c0_64 = arith.constant 0 : index
    %c0_65 = arith.constant 0 : index
    %50 = vector.load %arg5[%c3, %c0_64, %c0_65] : memref<9x32x128xbf16, #tpu.memory_space<vmem>>, vector<1x32x128xbf16>
    %51 = vector.shape_cast %50 : vector<1x32x128xbf16> to vector<32x128xbf16>
    %cst_66 = arith.constant dense<0.000000e+00> : vector<256x128xf32>
    %52 = tpu.matmul %49, %51, %cst_66 {dimension_numbers = #tpu.dot_dimension_numbers<[1], [0], [0], [1], [0, 0, 1, 1], [], []>} : vector<256x32xbf16>, vector<32x128xbf16>, vector<256x128xf32> -> vector<256x128xf32>
    %53 = arith.addf %47, %52 : vector<256x128xf32>
    %c0_67 = arith.constant 0 : index
    %c1_68 = arith.constant 1 : index
    %c1_69 = arith.constant 1 : index
    %c0_70 = arith.constant 0 : index
    %54 = vector.load %arg12[%c0_67, %c1_68, %c1_69, %c0_70] : memref<1x18x18x32xbf16, #tpu.memory_space<vmem>>, vector<1x16x16x32xbf16>
    %55 = vector.shape_cast %54 : vector<1x16x16x32xbf16> to vector<256x32xbf16>
    %c4 = arith.constant 4 : index
    %c0_71 = arith.constant 0 : index
    %c0_72 = arith.constant 0 : index
    %56 = vector.load %arg5[%c4, %c0_71, %c0_72] : memref<9x32x128xbf16, #tpu.memory_space<vmem>>, vector<1x32x128xbf16>
    %57 = vector.shape_cast %56 : vector<1x32x128xbf16> to vector<32x128xbf16>
    %cst_73 = arith.constant dense<0.000000e+00> : vector<256x128xf32>
    %58 = tpu.matmul %55, %57, %cst_73 {dimension_numbers = #tpu.dot_dimension_numbers<[1], [0], [0], [1], [0, 0, 1, 1], [], []>} : vector<256x32xbf16>, vector<32x128xbf16>, vector<256x128xf32> -> vector<256x128xf32>
    %59 = arith.addf %53, %58 : vector<256x128xf32>
    %c0_74 = arith.constant 0 : index
    %c1_75 = arith.constant 1 : index
    %c2_76 = arith.constant 2 : index
    %c0_77 = arith.constant 0 : index
    %60 = vector.load %arg12[%c0_74, %c1_75, %c2_76, %c0_77] : memref<1x18x18x32xbf16, #tpu.memory_space<vmem>>, vector<1x16x16x32xbf16>
    %61 = vector.shape_cast %60 : vector<1x16x16x32xbf16> to vector<256x32xbf16>
    %c5 = arith.constant 5 : index
    %c0_78 = arith.constant 0 : index
    %c0_79 = arith.constant 0 : index
    %62 = vector.load %arg5[%c5, %c0_78, %c0_79] : memref<9x32x128xbf16, #tpu.memory_space<vmem>>, vector<1x32x128xbf16>
    %63 = vector.shape_cast %62 : vector<1x32x128xbf16> to vector<32x128xbf16>
    %cst_80 = arith.constant dense<0.000000e+00> : vector<256x128xf32>
    %64 = tpu.matmul %61, %63, %cst_80 {dimension_numbers = #tpu.dot_dimension_numbers<[1], [0], [0], [1], [0, 0, 1, 1], [], []>} : vector<256x32xbf16>, vector<32x128xbf16>, vector<256x128xf32> -> vector<256x128xf32>
    %65 = arith.addf %59, %64 : vector<256x128xf32>
    %c0_81 = arith.constant 0 : index
    %c2_82 = arith.constant 2 : index
    %c0_83 = arith.constant 0 : index
    %c0_84 = arith.constant 0 : index
    %66 = vector.load %arg12[%c0_81, %c2_82, %c0_83, %c0_84] : memref<1x18x18x32xbf16, #tpu.memory_space<vmem>>, vector<1x16x16x32xbf16>
    %67 = vector.shape_cast %66 : vector<1x16x16x32xbf16> to vector<256x32xbf16>
    %c6 = arith.constant 6 : index
    %c0_85 = arith.constant 0 : index
    %c0_86 = arith.constant 0 : index
    %68 = vector.load %arg5[%c6, %c0_85, %c0_86] : memref<9x32x128xbf16, #tpu.memory_space<vmem>>, vector<1x32x128xbf16>
    %69 = vector.shape_cast %68 : vector<1x32x128xbf16> to vector<32x128xbf16>
    %cst_87 = arith.constant dense<0.000000e+00> : vector<256x128xf32>
    %70 = tpu.matmul %67, %69, %cst_87 {dimension_numbers = #tpu.dot_dimension_numbers<[1], [0], [0], [1], [0, 0, 1, 1], [], []>} : vector<256x32xbf16>, vector<32x128xbf16>, vector<256x128xf32> -> vector<256x128xf32>
    %71 = arith.addf %65, %70 : vector<256x128xf32>
    %c0_88 = arith.constant 0 : index
    %c2_89 = arith.constant 2 : index
    %c1_90 = arith.constant 1 : index
    %c0_91 = arith.constant 0 : index
    %72 = vector.load %arg12[%c0_88, %c2_89, %c1_90, %c0_91] : memref<1x18x18x32xbf16, #tpu.memory_space<vmem>>, vector<1x16x16x32xbf16>
    %73 = vector.shape_cast %72 : vector<1x16x16x32xbf16> to vector<256x32xbf16>
    %c7 = arith.constant 7 : index
    %c0_92 = arith.constant 0 : index
    %c0_93 = arith.constant 0 : index
    %74 = vector.load %arg5[%c7, %c0_92, %c0_93] : memref<9x32x128xbf16, #tpu.memory_space<vmem>>, vector<1x32x128xbf16>
    %75 = vector.shape_cast %74 : vector<1x32x128xbf16> to vector<32x128xbf16>
    %cst_94 = arith.constant dense<0.000000e+00> : vector<256x128xf32>
    %76 = tpu.matmul %73, %75, %cst_94 {dimension_numbers = #tpu.dot_dimension_numbers<[1], [0], [0], [1], [0, 0, 1, 1], [], []>} : vector<256x32xbf16>, vector<32x128xbf16>, vector<256x128xf32> -> vector<256x128xf32>
    %77 = arith.addf %71, %76 : vector<256x128xf32>
    %c0_95 = arith.constant 0 : index
    %c2_96 = arith.constant 2 : index
    %c2_97 = arith.constant 2 : index
    %c0_98 = arith.constant 0 : index
    %78 = vector.load %arg12[%c0_95, %c2_96, %c2_97, %c0_98] : memref<1x18x18x32xbf16, #tpu.memory_space<vmem>>, vector<1x16x16x32xbf16>
    %79 = vector.shape_cast %78 : vector<1x16x16x32xbf16> to vector<256x32xbf16>
    %c8 = arith.constant 8 : index
    %c0_99 = arith.constant 0 : index
    %c0_100 = arith.constant 0 : index
    %80 = vector.load %arg5[%c8, %c0_99, %c0_100] : memref<9x32x128xbf16, #tpu.memory_space<vmem>>, vector<1x32x128xbf16>
    %81 = vector.shape_cast %80 : vector<1x32x128xbf16> to vector<32x128xbf16>
    %cst_101 = arith.constant dense<0.000000e+00> : vector<256x128xf32>
    %82 = tpu.matmul %79, %81, %cst_101 {dimension_numbers = #tpu.dot_dimension_numbers<[1], [0], [0], [1], [0, 0, 1, 1], [], []>} : vector<256x32xbf16>, vector<32x128xbf16>, vector<256x128xf32> -> vector<256x128xf32>
    %83 = arith.addf %77, %82 : vector<256x128xf32>
    %c0_102 = arith.constant 0 : index
    %c0_103 = arith.constant 0 : index
    %84 = vector.load %arg6[%c0_102, %c0_103] : memref<1x128xf32, #tpu.memory_space<vmem>>, vector<1x128xf32>
    %85 = vector.broadcast %84 : vector<1x128xf32> to vector<256x128xf32>
    %86 = arith.mulf %83, %85 : vector<256x128xf32>
    %c0_104 = arith.constant 0 : index
    %c0_105 = arith.constant 0 : index
    %87 = vector.load %arg7[%c0_104, %c0_105] : memref<1x128xf32, #tpu.memory_space<vmem>>, vector<1x128xf32>
    %88 = vector.broadcast %87 : vector<1x128xf32> to vector<256x128xf32>
    %89 = arith.addf %86, %88 : vector<256x128xf32>
    %90 = arith.addf %89, %19 : vector<256x128xf32>
    %cst_106 = arith.constant 0.000000e+00 : f32
    %91 = vector.broadcast %cst_106 : f32 to vector<256x128xf32>
    %92 = arith.maximumf %90, %91 : vector<256x128xf32>
    %93 = vector.shape_cast %92 : vector<256x128xf32> to vector<1x16x16x128xf32>
    %c0_107 = arith.constant 0 : index
    %c0_108 = arith.constant 0 : index
    %c0_109 = arith.constant 0 : index
    %c0_110 = arith.constant 0 : index
    %94 = vector.load %arg11[%c0_107, %c0_108, %c0_109, %c0_110] : memref<1x16x16x128xf32, #tpu.memory_space<vmem>>, vector<1x16x16x128xf32>
    tpu.vector_store %arg11[%c0_107, %c0_108, %c0_109, %c0_110], %93 {strides = array<i32>} : memref<1x16x16x128xf32, #tpu.memory_space<vmem>>, vector<1x16x16x128xf32>,
    return
  }
  func.func @transform_0(%arg0: i32) -> (i32, i32, i32) {
    %c0_i32 = arith.constant 0 : i32
    %c0_i32_0 = arith.constant 0 : i32
    %c0_i32_1 = arith.constant 0 : i32
    return %arg0, %c0_i32, %c0_i32_0 : i32, i32, i32
  }
  func.func @transform_1(%arg0: i32) -> (i32, i32) {
    %c0_i32 = arith.constant 0 : i32
    %c0_i32_0 = arith.constant 0 : i32
    %c0_i32_1 = arith.constant 0 : i32
    return %c0_i32, %c0_i32_0 : i32, i32
  }
  func.func @transform_2(%arg0: i32) -> (i32, i32) {
    %c0_i32 = arith.constant 0 : i32
    %c0_i32_0 = arith.constant 0 : i32
    %c0_i32_1 = arith.constant 0 : i32
    return %c0_i32, %c0_i32_0 : i32, i32
  }
  func.func @transform_3(%arg0: i32) -> (i32, i32) {
    %c0_i32 = arith.constant 0 : i32
    %c0_i32_0 = arith.constant 0 : i32
    %c0_i32_1 = arith.constant 0 : i32
    return %c0_i32, %c0_i32_0 : i32, i32
  }
  func.func @transform_4(%arg0: i32) -> (i32, i32, i32) {
    %c0_i32 = arith.constant 0 : i32
    %c0_i32_0 = arith.constant 0 : i32
    %c0_i32_1 = arith.constant 0 : i32
    %c0_i32_2 = arith.constant 0 : i32
    return %c0_i32, %c0_i32_0, %c0_i32_1 : i32, i32, i32
  }
  func.func @transform_5(%arg0: i32) -> (i32, i32) {
    %c0_i32 = arith.constant 0 : i32
    %c0_i32_0 = arith.constant 0 : i32
    %c0_i32_1 = arith.constant 0 : i32
    return %c0_i32, %c0_i32_0 : i32, i32
  }
  func.func @transform_6(%arg0: i32) -> (i32, i32) {
    %c0_i32 = arith.constant 0 : i32
    %c0_i32_0 = arith.constant 0 : i32
    %c0_i32_1 = arith.constant 0 : i32
    return %c0_i32, %c0_i32_0 : i32, i32
  }
  func.func @transform_7(%arg0: i32) -> (i32, i32) {
    %c0_i32 = arith.constant 0 : i32
    %c0_i32_0 = arith.constant 0 : i32
    %c0_i32_1 = arith.constant 0 : i32
    return %c0_i32, %c0_i32_0 : i32, i32
  }
  func.func @transform_8(%arg0: i32) -> (i32, i32) {
    %c0_i32 = arith.constant 0 : i32
    %c0_i32_0 = arith.constant 0 : i32
    %c0_i32_1 = arith.constant 0 : i32
    return %c0_i32, %c0_i32_0 : i32, i32
  }
  func.func @transform_9(%arg0: i32) -> (i32, i32) {
    %c0_i32 = arith.constant 0 : i32
    %c0_i32_0 = arith.constant 0 : i32
    %c0_i32_1 = arith.constant 0 : i32
    return %c0_i32, %c0_i32_0 : i32, i32
  }
  func.func @transform_10(%arg0: i32) -> (i32, i32, i32, i32) {
    %c0_i32 = arith.constant 0 : i32
    %c0_i32_0 = arith.constant 0 : i32
    %c0_i32_1 = arith.constant 0 : i32
    %c0_i32_2 = arith.constant 0 : i32
    return %arg0, %c0_i32, %c0_i32_0, %c0_i32_1 : i32, i32, i32, i32
  }
}

</mosaic_0001>

<bundles_post_ra>
// kernel: a_call__.1
= control target key start
LH: loop header
LB: loop body
LE: loop exit
PB: predicated region body
PF: predicated region fallthrough
CT: control target
= control target key end

     0   :  { %s8204_s13 = smov 0   ;;  %s10337_s0 = inlined_call_operand.vmem [shape: bf16[2,256,36], index: 0, kind: input, shape index: {}]   ;;  %s10338_s1 = inlined_call_operand.vmem [shape: bf16[36,32], index: 1, kind: input, shape index: {}]   ;;  %s10339_s2 = inlined_call_operand.vmem [shape: f32[1,32], index: 2, kind: input, shape index: {}]   ;;  %s10340_s3 = inlined_call_operand.vmem [shape: f32[1,32], index: 3, kind: input, shape index: {}]   ;;  %s10341_s4 = inlined_call_operand.vmem [shape: bf16[9,32,128], index: 4, kind: input, shape index: {}]   ;;  %s10342_s5 = inlined_call_operand.vmem [shape: f32[1,128], index: 5, kind: input, shape index: {}]   ;;  %s10343_s6 = inlined_call_operand.vmem [shape: f32[1,128], index: 6, kind: input, shape index: {}]   ;;  %s10344_s7 = inlined_call_operand.vmem [shape: bf16[36,128], index: 7, kind: input, shape index: {}]   ;;  %s10345_s8 = inlined_call_operand.vmem [shape: f32[1,128], index: 8, kind: input, shape index: {}]   ;;  %s10346_s9 = inlined_call_operand.vmem [shape: f32[1,128], index: 9, kind: input, shape index: {}]   ;;  %s10347_s10 = inlined_call_operand.vmem [shape: f32[2,16,16,128], index: 10, kind: output, shape index: {}]  }
   0x1 LB: > { %s6616_s14 = sadd.s32 4294967295, %s8146_s13   ;;  %p6620_p0 = scmp.ge.s32.totalorder %s8146_s13, 1  ;;  %s8146_s13 = sphi %s8204_s13, %s20_s13  }
   0x2   : > { %p312_p1 = scmp.lt.s32.totalorder %s8146_s13, 3 }
   0x4   : > { %p313_p2 = pnand %p6620_p0, %p312_p1 }
   0x6   : > { %316 = sbr.rel (%p313_p2) target bundleno = 951 (0x3b7), region = 60 }
   0xd   : > { %v8010_v0 = vld [vmem:[%s10338_s1] sm:$0xff]   ;;  %v8011_v1 = vld [vmem:[%s10338_s1 + $0x8] sm:$0xff]   ;;  %p350_p3 = scmp.lt.s32.totalorder %s6616_s14, 1  ;;  %v8012_v2 = vld [vmem:[%s10338_s1 + $0x10] ss:$0 sps:$4 sm:$0x33]  }
   0xe   : > { %7339 = vmatprep.subr.bf16.mxu1 %v8010_v0  ;;  %vm542_vm0 = vcmask 1041408   ;;  %vm493_vm1 = vcmask 293888   ;;  %v8029_v5 = vld [vmem:[%s10344_s7] sm:$0xff]   ;;  %v8030_v8 = vld [vmem:[%s10344_s7 + $0x8] sm:$0xff]   ;;  %vm1082_vm2 = vcmask 253952   ;;  %v8032_v42 = vld [vmem:[%s10341_s4 + $0x30] sm:$0xff]  }
   0xf   : > { %7340 = vmatpush3.bf16.msra.mxu1 %v8010_v0  ;;  %s10500_s14 = smov (!%p350_p3, %s6616_s14), 1  ;;  %v544_v4 = vsel %vm542_vm0, %v8012_v2, 0  ;;  %v8031_v9 = vld [vmem:[%s10344_s7 + $0x10] ss:$0 sps:$4 sm:$0x33]   ;;  %7523 = vmatprep.subr.bf16.mxu0 %v8032_v42  ;;  %vm1079_vm7 = vcmask 257024  }
  0x10   : > { %7341 = vmatprep.subr.bf16.mxu1 %v8011_v1  ;;  %s7105_s21 = sshll.u32 %s10500_s14, 7  ;;  %v838_v12 = vsel %vm542_vm0, %v8031_v9, 0  ;;  %vm1090_vm3 = vsmask.f32 256  ;;  %v1095_v25 = vld [vmem:[#allocation2 + $0x18] sm:$0x1]  ;;  %7524 = vmatpush3.bf16.msra.mxu0 %v8032_v42 }
  0x11   : > { %s8227_s24 = scalar_lea.vmem %s10337_s0, %s7105_s21  ;;  %vm8287_vm4 = vmand %vm1082_vm2, %vm1090_vm3  ;;  %vm1140_vm5 = vsmask.f32 7938  ;;  %v1092_v28 = vld [vmem:[#allocation2 + $0xc] sm:$0x1]  ;;  %v1145_v30 = vld [vmem:[#allocation2 + $0x20] sm:$0x1] }
  0x12   : > { %v8013_v3 = vld [vmem:[%s8227_s24] sm:$0xff]   ;;  %v8014_v6 = vld [vmem:[%s8227_s24 + $0x8] sm:$0xff]   ;;  %v8015_v7 = vld [vmem:[%s8227_s24 + $0x10] sm:$0xff]   ;;  %v1096_v26 = vsel %vm8287_vm4, 0, %v1095_v25  ;;  %v1093_v29 = vsel %vm8287_vm4, 0, %v1092_v28  ;;  %v8148_v49 = vmov 0  }
  0x13   : > { %7342 = vmatpush3.bf16.msra.mxu1 %v8011_v1  ;;  %7345 = vmatprep.mubr.msk.bf16.mxu1 %vm493_vm1, %v8013_v3  ;;  %v8016_v10 = vld [vmem:[%s8227_s24 + $0x18] sm:$0xff]   ;;  %v8017_v11 = vld [vmem:[%s8227_s24 + $0x20] sm:$0xff]   ;;  %v8018_v13 = vld [vmem:[%s8227_s24 + $0x28] sm:$0xff]   ;;  %1097 = vst [vmem:[#allocation2 + $0x18] sm:$0x1] %v1096_v26  ;;  %vm2226_vm11 = vcmask 261120  }
  0x14   : > { %7999 = vmatprep.subr.msk.bf16.mxu1 %vm542_vm0, %v8012_v2  ;;  %v8019_v14 = vld [vmem:[%s8227_s24 + $0x30] sm:$0xff]   ;;  %v8020_v15 = vld [vmem:[%s8227_s24 + $0x38] sm:$0xff]   ;;  %v8021_v16 = vld [vmem:[%s8227_s24 + $0x40] sm:$0xff]   ;;  %1094 = vst [vmem:[#allocation2 + $0xc] sm:$0x1] %v1093_v29  ;;  %vm2785_vm15 = vcmask 1042432  }
  0x15   : > { %v8022_v17 = vld [vmem:[%s8227_s24 + $0x48] sm:$0xff]   ;;  %v8023_v18 = vld [vmem:[%s8227_s24 + $0x50] sm:$0xff]   ;;  %v8024_v19 = vld [vmem:[%s8227_s24 + $0x58] sm:$0xff]   ;;  %1080 = vst.msk [vmem:[#allocation2] sm:$0xf] %vm1079_vm7, %v8148_v49  ;;  %s7106_s17 = sshll.u32 %s10500_s14, 8 }
  0x16   : > { %v8025_v20 = vld [vmem:[%s8227_s24 + $0x60] sm:$0xff]   ;;  %v8026_v21 = vld [vmem:[%s8227_s24 + $0x68] sm:$0xff]   ;;  %v8027_v22 = vld [vmem:[%s8227_s24 + $0x70] sm:$0xff]   ;;  %1081 = vst.msk [vmem:[#allocation2 + $0x4] sm:$0xf] %vm1079_vm7, %v8148_v49  ;;  %s10130_s14 = scalar_lea.vmem %s10347_s10, %s7106_s17 }
  0x17   : > { %7344 = vmatpush3.bf16.msra.mxu1 %v544_v4  ;;  %v8273_v23 = vld [vmem:[%s8227_s24 + $0x78] sm:$0xff]   ;;  %vm8295_vm6 = vmand %vm1082_vm2, %vm1140_vm5  ;;  %v1142_v32 = vld [vmem:[#allocation2 + $0x14] sm:$0x1]  ;;  %1083 = vst.msk [vmem:[#allocation2 + $0x8] sm:$0x1] %vm1082_vm2, %v8148_v49 }
  0x18   : > { %7377 = vmatprep.subr.bf16.mxu1 %v8029_v5  ;;  %v1146_v31 = vsel %vm8295_vm6, 0, %v1145_v30  ;;  %v1143_v33 = vsel %vm8295_vm6, 0, %v1142_v32  ;;  %v1101_v34 = vld [vmem:[#allocation2 + $0x30] sm:$0x1]  ;;  %v1098_v36 = vld [vmem:[#allocation2 + $0x24] sm:$0x1]  ;;  %vm8426_vm13 = vmand %vm1079_vm7, %vm1140_vm5 }
  0x19   : > { %1147 = vst [vmem:[#allocation2 + $0x20] sm:$0x1] %v1146_v31  ;;  %1144 = vst [vmem:[#allocation2 + $0x14] sm:$0x1] %v1143_v33  ;;  %v1102_v35 = vsel %vm8287_vm4, 0, %v1101_v34  ;;  %v1099_v37 = vsel %vm8287_vm4, 0, %v1098_v36 }
  0x1a   : > { %7346 = vmatmul.mubr.msk.bf16.vlgmr.msra.gmra.mrb[0].mxu1 %vm493_vm1, %v8014_v6  ;;  %1103 = vst [vmem:[#allocation2 + $0x30] sm:$0x1] %v1102_v35  ;;  %1100 = vst [vmem:[#allocation2 + $0x24] sm:$0x1] %v1099_v37  ;;  %v1151_v38 = vld [vmem:[#allocation2 + $0x38] sm:$0x1] }
  0x1b   : > { %7349 = vmatprep.mubr.msk.bf16.mxu1 %vm493_vm1, %v8015_v7  ;;  %7378 = vmatpush3.bf16.msra.mxu1 %v8029_v5  ;;  %v1152_v39 = vsel %vm8295_vm6, 0, %v1151_v38  ;;  %v1148_v40 = vld [vmem:[#allocation2 + $0x2c] sm:$0x1]  ;;  %v1107_v43 = vld [vmem:[#allocation2 + $0x48] sm:$0x1]  ;;  %v8033_v48 = vld [vmem:[%s10341_s4 + $0x38] sm:$0xff]  }
  0x1c   : > { %7379 = vmatprep.subr.bf16.mxu1 %v8030_v8  ;;  %1153 = vst [vmem:[#allocation2 + $0x38] sm:$0x1] %v1152_v39  ;;  %v1149_v41 = vsel %vm8295_vm6, 0, %v1148_v40  ;;  %v1108_v44 = vsel %vm8287_vm4, 0, %v1107_v43  ;;  %v1104_v45 = vld [vmem:[#allocation2 + $0x3c] sm:$0x1]  ;;  %7525 = vmatprep.subr.bf16.mxu0 %v8033_v48 }
  0x1d   : > { %1150 = vst [vmem:[#allocation2 + $0x2c] sm:$0x1] %v1149_v41  ;;  %1109 = vst [vmem:[#allocation2 + $0x48] sm:$0x1] %v1108_v44  ;;  %v1105_v46 = vsel %vm8287_vm4, 0, %v1104_v45  ;;  %7526 = vmatpush3.bf16.msra.mxu0 %v8033_v48  ;;  %v8036_v56 = vld [vmem:[%s10341_s4 + $0x10] sm:$0xff]  }
  0x1e   : > { %v1157_v47 = vld [vmem:[#allocation2 + $0x50] sm:$0x1]  ;;  %1085 = vst.msk [vmem:[#allocation2 + $0xcc] sm:$0xf] %vm1079_vm7, %v8148_v49  ;;  %1086 = vst.msk [vmem:[#allocation2 + $0xd0] sm:$0xf] %vm1079_vm7, %v8148_v49 }
  0x1f   : > { %7380 = vmatpush3.bf16.msra.mxu1 %v8030_v8  ;;  %1087 = vst.msk [vmem:[#allocation2 + $0xd4] sm:$0x1] %vm1082_vm2, %v8148_v49  ;;  %1106 = vst [vmem:[#allocation2 + $0x3c] sm:$0x1] %v1105_v46  ;;  %v1158_v50 = vsel %vm8295_vm6, 0, %v1157_v47  ;;  %v8373_v28 = vld [vmem:[%s10341_s4 + $0x40] sm:$0xff]  }
  0x20   : > { %8000 = vmatprep.subr.msk.bf16.mxu1 %vm542_vm0, %v8031_v9  ;;  %v1154_v51 = vld [vmem:[#allocation2 + $0x44] sm:$0x1]  ;;  %1159 = vst [vmem:[#allocation2 + $0x50] sm:$0x1] %v1158_v50  ;;  %v1113_v53 = vld [vmem:[#allocation2 + $0x60] sm:$0x1]  ;;  %7559 = vmatprep.subr.bf16.mxu0 %v8373_v28 }
  0x21   : > { %v1155_v52 = vsel %vm8295_vm6, 0, %v1154_v51  ;;  %v1114_v54 = vsel %vm8287_vm4, 0, %v1113_v53  ;;  %v1110_v55 = vld [vmem:[#allocation2 + $0x54] sm:$0x1]  ;;  %v1722_v58 = vld [vmem:[#allocation2] sm:$0xf] }
  0x22   : > { %7350 = vmatmul.mubr.msk.bf16.gmra.mrb[4].mxu1 %vm493_vm1, %v8016_v10  ;;  %1156 = vst [vmem:[#allocation2 + $0x44] sm:$0x1] %v1155_v52  ;;  %1115 = vst [vmem:[#allocation2 + $0x60] sm:$0x1] %v1114_v54  ;;  %v1111_v57 = vsel %vm8287_vm4, 0, %v1110_v55  ;;  %v1778_v60 = vshrl.u32 %v1722_v58, 16 }
  0x23   : > { %7353 = vmatprep.mubr.msk.bf16.mxu1 %vm493_vm1, %v8017_v11  ;;  %7382 = vmatpush3.bf16.msra.mxu1 %v838_v12  ;;  %1112 = vst [vmem:[#allocation2 + $0x54] sm:$0x1] %v1111_v57  ;;  %v1723_v59 = vld [vmem:[#allocation2 + $0x4] sm:$0xf]  ;;  %v1781_v61 = vshll.u32 %v1722_v58, 16  ;;  %vm2786_vm0 = vcmask 1046532  }
  0x24   : > { %7415 = vmatprep.subr.bf16.mxu1 %v8036_v56  ;;  %v1163_v62 = vld [vmem:[#allocation2 + $0x68] sm:$0x1]  ;;  %v1787_v63 = vshll.u32 %v1723_v59, 16  ;;  %v1791_v0 = vshrl.u32 %v1723_v59, 16  ;;  %v1160_v2 = vld [vmem:[#allocation2 + $0x5c] sm:$0x1] }
  0x25   : > { %v1164_v1 = vsel %vm8295_vm6, 0, %v1163_v62  ;;  %v1780_v4 = vrot.slane %v1778_v60, 4  ;;  %v1161_v5 = vsel %vm8295_vm6, 0, %v1160_v2  ;;  %vm1774_vm8 = vsmask.f32 3328 }
  0x26   : > { %1165 = vst [vmem:[#allocation2 + $0x68] sm:$0x1] %v1164_v1  ;;  %1162 = vst [vmem:[#allocation2 + $0x5c] sm:$0x1] %v1161_v5  ;;  %v1789_v8 = vrot.slane %v1787_v63, 5  ;;  %v1793_v9 = vrot.slane %v1791_v0, 4 }
  0x27   : > { %vm1775_vm9 = vsmask.f32 7440  ;;  %v1166_v29 = vld [vmem:[#allocation2 + $0x74] sm:$0x1]  ;;  %v1125_v31 = vld [vmem:[#allocation2 + $0x90] sm:$0x1] }
  0x28   : > { %v1794_v12 = vor.u32 %v1793_v9, %v1789_v8  ;;  %vm8358_vm10 = vmor %vm1774_vm8, %vm1775_vm9  ;;  %v1167_v30 = vsel %vm8295_vm6, 0, %v1166_v29  ;;  %v1126_v32 = vsel %vm8287_vm4, 0, %v1125_v31  ;;  %v1122_v33 = vld [vmem:[#allocation2 + $0x84] sm:$0x1]  ;;  %v1175_v34 = vld [vmem:[#allocation2 + $0x98] sm:$0x1] }
  0x29   : > { %1168 = vst [vmem:[#allocation2 + $0x74] sm:$0x1] %v1167_v30  ;;  %1127 = vst [vmem:[#allocation2 + $0x90] sm:$0x1] %v1126_v32  ;;  %v1123_v35 = vsel %vm8287_vm4, 0, %v1122_v33  ;;  %v1176_v36 = vsel %vm8295_vm6, 0, %v1175_v34 }
  0x2a   : > { %7354 = vmatmul.mubr.msk.bf16.gmra.mrb[8].mxu1 %vm493_vm1, %v8018_v13  ;;  %v1172_v37 = vld [vmem:[#allocation2 + $0x8c] sm:$0x1]  ;;  %1124 = vst [vmem:[#allocation2 + $0x84] sm:$0x1] %v1123_v35  ;;  %1177 = vst [vmem:[#allocation2 + $0x98] sm:$0x1] %v1176_v36 }
  0x2b   : > { %7357 = vmatprep.mubr.msk.bf16.mxu1 %vm493_vm1, %v8019_v14  ;;  %v1173_v38 = vsel %vm8295_vm6, 0, %v1172_v37  ;;  %v1131_v39 = vld [vmem:[#allocation2 + $0xa8] sm:$0x1]  ;;  %v1128_v41 = vld [vmem:[#allocation2 + $0x9c] sm:$0x1] }
  0x2c   : > { %1174 = vst [vmem:[#allocation2 + $0x8c] sm:$0x1] %v1173_v38  ;;  %v1132_v40 = vsel %vm8287_vm4, 0, %v1131_v39  ;;  %v1129_v42 = vsel %vm8287_vm4, 0, %v1128_v41  ;;  %v1181_v43 = vld [vmem:[#allocation2 + $0xb0] sm:$0x1] }
  0x2d   : > { %1133 = vst [vmem:[#allocation2 + $0xa8] sm:$0x1] %v1132_v40  ;;  %v1178_v44 = vld [vmem:[#allocation2 + $0xa4] sm:$0x1]  ;;  %1130 = vst [vmem:[#allocation2 + $0x9c] sm:$0x1] %v1129_v42 }
  0x2e   : > { %v1182_v45 = vsel %vm8295_vm6, 0, %v1181_v43  ;;  %v1179_v46 = vsel %vm8295_vm6, 0, %v1178_v44  ;;  %v1137_v47 = vld [vmem:[#allocation2 + $0xc0] sm:$0x1]  ;;  %v1134_v49 = vld [vmem:[#allocation2 + $0xb4] sm:$0x1] }
  0x2f   : > { %1183 = vst [vmem:[#allocation2 + $0xb0] sm:$0x1] %v1182_v45  ;;  %1180 = vst [vmem:[#allocation2 + $0xa4] sm:$0x1] %v1179_v46  ;;  %v1138_v48 = vsel %vm8287_vm4, 0, %v1137_v47  ;;  %v1135_v51 = vsel %vm8287_vm4, 0, %v1134_v49 }
  0x30   : > { %1139 = vst [vmem:[#allocation2 + $0xc0] sm:$0x1] %v1138_v48  ;;  %v1187_v50 = vld [vmem:[#allocation2 + $0xc8] sm:$0x1]  ;;  %v1184_v53 = vld [vmem:[#allocation2 + $0xbc] sm:$0x1] }
  0x31   : > { %v1188_v52 = vsel %vm8295_vm6, 0, %v1187_v50  ;;  %1136 = vst [vmem:[#allocation2 + $0xb4] sm:$0x1] %v1135_v51  ;;  %v1185_v54 = vsel %vm8295_vm6, 0, %v1184_v53  ;;  %v8406_v55 = vld [vmem:[%s10339_s2] ss:$0 sm:$0xff] }
  0x32   : > { %7358 = vmatmul.mubr.msk.bf16.gmra.mrb[12].mxu1 %vm493_vm1, %v8020_v15  ;;  %1189 = vst [vmem:[#allocation2 + $0xc8] sm:$0x1] %v1188_v52  ;;  %1186 = vst [vmem:[#allocation2 + $0xbc] sm:$0x1] %v1185_v54  ;;  %v8411_v57 = vld [vmem:[%s10340_s3] ss:$0 sm:$0xff] }
  0x33   : > { %7361 = vmatprep.mubr.msk.bf16.mxu1 %vm493_vm1, %v8021_v16  ;;  %vm1286_vm12 = vsmask.f32 4368  ;;  %v1617_v31 = vld [vmem:[#allocation2 + $0x18] sm:$0xf]  ;;  %v1610_v38 = vld [vmem:[#allocation2 + $0xc] sm:$0xf] }
  0x34   : > { %vm8433_vm14 = vmor %vm1090_vm3, %vm1286_vm12  ;;  %v1621_v44 = vld [vmem:[#allocation2 + $0x20] sm:$0x1]  ;;  %v1614_v50 = vld [vmem:[#allocation2 + $0x14] sm:$0x1] }
  0x3a   : > { %7362 = vmatmul.mubr.msk.bf16.gmra.mrb[16].mxu1 %vm493_vm1, %v8022_v17 }
  0x3b   : > { %7365 = vmatprep.mubr.msk.bf16.mxu1 %vm493_vm1, %v8023_v18 }
  0x42   : > { %7366 = vmatmul.mubr.msk.bf16.gmra.mrb[20].mxu1 %vm493_vm1, %v8024_v19 }
  0x43   : > { %7369 = vmatprep.mubr.msk.bf16.mxu1 %vm493_vm1, %v8025_v20 }
  0x4a   : > { %7370 = vmatmul.mubr.msk.bf16.gmra.mrb[24].mxu1 %vm493_vm1, %v8026_v21 }
  0x4b   : > { %7373 = vmatprep.mubr.msk.bf16.mxu1 %vm493_vm1, %v8027_v22 }
  0x52   : > { %7374 = vmatmul.mubr.msk.bf16.gmra.mrb[28].mxu1 %vm493_vm1, %v8273_v23 }
  0x53   : > { %7383 = vmatprep.mubr.msk.bf16.mxu1 %vm493_vm1, %v8013_v3  ;;  %v1758_v3 = vld [vmem:[#allocation2 + $0x8] sm:$0x1] }
  0x5a   : > { %7384 = vmatmul.mubr.msk.bf16.vlgmr.msra.gmra.mrb[32].mxu1 %vm493_vm1, %v8014_v6  ;;  %v1783_v6 = vrot.slane %v1781_v61, 5 }
  0x5b   : > { %7387 = vmatprep.mubr.msk.bf16.mxu1 %vm493_vm1, %v8015_v7  ;;  %7416 = vmatpush3.bf16.msra.mxu1 %v8036_v56  ;;  %v8038_v7 = vld [vmem:[%s10341_s4 + $0x18] sm:$0xff]  }
  0x5c   : > { %7417 = vmatprep.subr.bf16.mxu1 %v8038_v7 }
  0x5f   : > { %7418 = vmatpush3.bf16.msra.mxu1 %v8038_v7 }
  0x62   : > { %7388 = vmatmul.mubr.msk.bf16.gmra.mrb[36].mxu1 %vm493_vm1, %v8016_v10  ;;  %v1797_v10 = vshll.u32 %v1758_v3, 16 }
  0x63   : > { %7391 = vmatprep.mubr.msk.bf16.mxu1 %vm493_vm1, %v8017_v11  ;;  %v1784_v11 = vor.u32 %v1783_v6, %v1780_v4 }
  0x6a   : > { %7392 = vmatmul.mubr.msk.bf16.gmra.mrb[40].mxu1 %vm493_vm1, %v8018_v13  ;;  %v1799_v13 = vrot.slane %v1797_v10, 5 }
  0x6b   : > { %7395 = vmatprep.mubr.msk.bf16.mxu1 %vm493_vm1, %v8019_v14  ;;  %v1119_v14 = vld [vmem:[#allocation2 + $0x78] sm:$0x1] }
  0x72   : > { %7396 = vmatmul.mubr.msk.bf16.gmra.mrb[44].mxu1 %vm493_vm1, %v8020_v15  ;;  %v1785_v15 = vrot.slane %v1784_v11, 4 }
  0x73   : > { %7399 = vmatprep.mubr.msk.bf16.mxu1 %vm493_vm1, %v8021_v16  ;;  %v1120_v16 = vsel %vm8287_vm4, 0, %v1119_v14 }
  0x74   : > { %1121 = vst [vmem:[#allocation2 + $0x78] sm:$0x1] %v1120_v16 }
  0x7a   : > { %7400 = vmatmul.mubr.msk.bf16.gmra.mrb[48].mxu1 %vm493_vm1, %v8022_v17  ;;  %v1116_v17 = vld [vmem:[#allocation2 + $0x6c] sm:$0x1] }
  0x7b   : > { %7403 = vmatprep.mubr.msk.bf16.mxu1 %vm493_vm1, %v8023_v18 }
  0x82   : > { %7404 = vmatmul.mubr.msk.bf16.gmra.mrb[52].mxu1 %vm493_vm1, %v8024_v19  ;;  %v1795_v19 = vrot.slane %v1794_v12, 4 }
  0x83   : > { %7407 = vmatprep.mubr.msk.bf16.mxu1 %vm493_vm1, %v8025_v20  ;;  %v1117_v20 = vsel %vm8287_vm4, 0, %v1116_v17 }
  0x84   : > { %1118 = vst [vmem:[#allocation2 + $0x6c] sm:$0x1] %v1117_v20 }
  0x8a   : > { %7408 = vmatmul.mubr.msk.bf16.gmra.mrb[56].mxu1 %vm493_vm1, %v8026_v21  ;;  %v1790_v21 = vsel %vm8358_vm10, %v1785_v15, %v1789_v8 }
  0x8b   : > { %7411 = vmatprep.mubr.msk.bf16.mxu1 %vm493_vm1, %v8027_v22  ;;  %v1169_v22 = vld [vmem:[#allocation2 + $0x80] sm:$0x1] }
  0x8c   : > { %v1170_v25 = vsel %vm8295_vm6, 0, %v1169_v22 }
  0x8d   : > { %1171 = vst [vmem:[#allocation2 + $0x80] sm:$0x1] %v1170_v25 }
  0x92   : > { %7412 = vmatmul.mubr.msk.bf16.gmra.mrb[60].mxu1 %vm493_vm1, %v8273_v23  ;;  %v1800_v23 = vsel %vm8358_vm10, %v1795_v19, %v1799_v13  ;;  %vm9078_vm1 = vmor %vm2785_vm15, %vm2786_vm0 }
  0x93   : > { %v6719_v26 = vcombine.low %v1790_v21, %v1800_v23 }
  0x95   : > { %7419 = vmatprep.mubr.msk.bf16.mxu1 %vm2226_vm11, %v6719_v26 }
  0xed   : > { %v7347_v56 = vpop.f32.mrb[0].mxu1 }
  0xee   : > { %v716_v58 = vmul.f32 %v7347_v56, %v8406_v55  ;;  %v580_v59 = vpop.f32.mrb[1].mxu1 }
  0xef   : > { %v714_v60 = vmul.f32 %v8406_v55, %v580_v59  ;;  %v7348_v61 = vpop.f32.mrb[2].mxu1 }
  0xf0   : > { %v755_v27 = vadd.f32 %v8411_v57, %v716_v58  ;;  %v717_v62 = vmul.f32 %v7348_v61, %v8406_v55  ;;  %v583_v63 = vpop.f32.mrb[3].mxu1 }
  0xf1   : > { %v753_v0 = vadd.f32 %v8411_v57, %v714_v60  ;;  %v715_v1 = vmul.f32 %v8406_v55, %v583_v63 }
  0xf2   : > { %v787_v2 = vmax.f32 %v755_v27, 0.0  ;;  %v756_v3 = vadd.f32 %v8411_v57, %v717_v62 }
  0xf3   : > { %v785_v4 = vmax.f32 %v753_v0, 0.0  ;;  %v754_v5 = vadd.f32 %v8411_v57, %v715_v1 }
  0xf4   : > { %v7109_v6 = vpack.c.bf16 %v787_v2, %v787_v2  ;;  %v788_v7 = vmax.f32 %v756_v3, 0.0 }
  0xf5   : > { %v7107_v8 = vpack.c.bf16 %v785_v4, %v785_v4  ;;  %v786_v9 = vmax.f32 %v754_v5, 0.0  ;;  %v7351_v10 = vpop.f32.mrb[4].mxu1 }
  0xf6   : > { %v1306_v11 = vshrl.u32 %v7109_v6, 16  ;;  %v1309_v12 = vshll.u32 %v7109_v6, 16  ;;  %v7110_v13 = vpack.c.bf16 %v788_v7, %v788_v7  ;;  %v720_v14 = vmul.f32 %v7351_v10, %v8406_v55  ;;  %v596_v15 = vpop.f32.mrb[5].mxu1 }
  0xf7   : > { %v1289_v16 = vshrl.u32 %v7107_v8, 16  ;;  %v1292_v17 = vshll.u32 %v7107_v8, 16  ;;  %v7108_v19 = vpack.c.bf16 %v786_v9, %v786_v9  ;;  %v718_v20 = vmul.f32 %v8406_v55, %v596_v15  ;;  %v7352_v21 = vpop.f32.mrb[6].mxu1  ;;  %v1631_v9 = vld [vmem:[#allocation2 + $0x30] sm:$0xf] }
  0xf8   : > { %v1308_v22 = vrot.slane %v1306_v11, 7  ;;  %v1314_v23 = vshrl.u32 %v7110_v13, 16  ;;  %v1317_v25 = vshll.u32 %v7110_v13, 16  ;;  %v759_v26 = vadd.f32 %v8411_v57, %v720_v14  ;;  %v599_v29 = vpop.f32.mrb[7].mxu1 }
  0xf9   : > { %v1291_v32 = vrot.slane %v1289_v16, 7  ;;  %v1297_v33 = vshrl.u32 %v7108_v19, 16  ;;  %v1300_v34 = vshll.u32 %v7108_v19, 16  ;;  %v757_v35 = vadd.f32 %v8411_v57, %v718_v20  ;;  %v1624_v16 = vld [vmem:[#allocation2 + $0x24] sm:$0xf] }
  0xfa   : > { %v1311_v36 = vor.u32 %v1309_v12, %v1308_v22  ;;  %v1312_v37 = vrot.slane %v1308_v22, 4  ;;  %v1316_v39 = vrot.slane %v1314_v23, 7  ;;  %v791_v40 = vmax.f32 %v759_v26, 0.0 }
  0xfb   : > { %v1294_v41 = vor.u32 %v1292_v17, %v1291_v32  ;;  %v1295_v42 = vrot.slane %v1291_v32, 4  ;;  %v1299_v45 = vrot.slane %v1297_v33, 7  ;;  %v789_v46 = vmax.f32 %v757_v35, 0.0 }
  0xfc   : > { %v1618_v47 = vsel %vm8426_vm13, %v1311_v36, %v1617_v31  ;;  %v1319_v48 = vor.u32 %v1317_v25, %v1316_v39  ;;  %v1321_v49 = vrot.slane %v1316_v39, 4  ;;  %v7113_v51 = vpack.c.bf16 %v791_v40, %v791_v40 }
  0xfd   : > { %1619 = vst [vmem:[#allocation2 + $0x18] sm:$0xf] %v1618_v47  ;;  %v1611_v52 = vsel %vm8426_vm13, %v1294_v41, %v1610_v38  ;;  %v1302_v53 = vor.u32 %v1300_v34, %v1299_v45  ;;  %v1304_v54 = vrot.slane %v1299_v45, 4  ;;  %v7111_v56 = vpack.c.bf16 %v789_v46, %v789_v46  ;;  %v7355_v58 = vpop.f32.mrb[8].mxu1 }
  0xfe   : > { %1612 = vst [vmem:[#allocation2 + $0xc] sm:$0xf] %v1611_v52  ;;  %v1320_v59 = vsel %vm8433_vm14, %v1312_v37, %v1319_v48  ;;  %v1622_v60 = vsel %vm8287_vm4, %v1321_v49, %v1621_v44  ;;  %v1340_v61 = vshrl.u32 %v7113_v51, 16  ;;  %v1343_v27 = vshll.u32 %v7113_v51, 16  ;;  %v612_v62 = vpop.f32.mrb[9].mxu1  ;;  %v8043_v49 = vld [vmem:[%s10341_s4 + $0x48] sm:$0xff]  }
  0xff   : > { %1620 = vst.msk [vmem:[#allocation2 + $0x1c] sm:$0xf] %vm1079_vm7, %v1320_v59  ;;  %1623 = vst [vmem:[#allocation2 + $0x20] sm:$0x1] %v1622_v60  ;;  %v1303_v63 = vsel %vm8433_vm14, %v1295_v42, %v1302_v53  ;;  %v1615_v0 = vsel %vm8287_vm4, %v1304_v54, %v1614_v50  ;;  %v1323_v1 = vshrl.u32 %v7111_v56, 16  ;;  %v1326_v2 = vshll.u32 %v7111_v56, 16 }
 0x100   : > { %v7356_v3 = vpop.f32.mrb[10].mxu1  ;;  %1613 = vst.msk [vmem:[#allocation2 + $0x10] sm:$0xf] %vm1079_vm7, %v1303_v63  ;;  %1616 = vst [vmem:[#allocation2 + $0x14] sm:$0x1] %v1615_v0  ;;  %v8451_v4 = vrot.slane %v1340_v61, 7  ;;  %v721_v5 = vmul.f32 %v7352_v21, %v8406_v55  ;;  %v719_v6 = vmul.f32 %v8406_v55, %v599_v29  ;;  %v724_v7 = vmul.f32 %v7355_v58, %v8406_v55 }
 0x101   : > { %v615_v8 = vpop.f32.mrb[11].mxu1  ;;  %v8456_v10 = vrot.slane %v1323_v1, 7  ;;  %v722_v11 = vmul.f32 %v8406_v55, %v612_v62  ;;  %v725_v12 = vmul.f32 %v7356_v3, %v8406_v55  ;;  %v1635_v62 = vld [vmem:[#allocation2 + $0x38] sm:$0x1]  ;;  %v1628_v0 = vld [vmem:[#allocation2 + $0x2c] sm:$0x1] }
 0x102   : > { %v723_v13 = vmul.f32 %v8406_v55, %v615_v8  ;;  %v1345_v14 = vor.u32 %v1343_v27, %v8451_v4  ;;  %v1346_v15 = vrot.slane %v8451_v4, 4  ;;  %v760_v17 = vadd.f32 %v8411_v57, %v721_v5  ;;  %v1645_v5 = vld [vmem:[#allocation2 + $0x48] sm:$0xf] }
 0x103   : > { %v758_v19 = vadd.f32 %v8411_v57, %v719_v6  ;;  %v1328_v20 = vor.u32 %v1326_v2, %v8456_v10  ;;  %v1329_v21 = vrot.slane %v8456_v10, 4  ;;  %v763_v22 = vadd.f32 %v8411_v57, %v724_v7  ;;  %v1638_v7 = vld [vmem:[#allocation2 + $0x3c] sm:$0xf] }
 0x104   : > { %v761_v23 = vadd.f32 %v8411_v57, %v722_v11  ;;  %v1632_v25 = vsel %vm8426_vm13, %v1345_v14, %v1631_v9  ;;  %v792_v26 = vmax.f32 %v760_v17, 0.0  ;;  %v764_v31 = vadd.f32 %v8411_v57, %v725_v12 }
 0x105   : > { %v790_v29 = vmax.f32 %v758_v19, 0.0  ;;  %1633 = vst [vmem:[#allocation2 + $0x30] sm:$0xf] %v1632_v25  ;;  %v1625_v32 = vsel %vm8426_vm13, %v1328_v20, %v1624_v16  ;;  %v795_v33 = vmax.f32 %v763_v22, 0.0  ;;  %v762_v35 = vadd.f32 %v8411_v57, %v723_v13  ;;  %v7359_v36 = vpop.f32.mrb[12].mxu1  ;;  %v8048_v16 = vld [vmem:[%s10341_s4 + $0x50] sm:$0xff]  }
 0x106   : > { %v793_v34 = vmax.f32 %v761_v23, 0.0  ;;  %1626 = vst [vmem:[#allocation2 + $0x24] sm:$0xf] %v1625_v32  ;;  %v7114_v37 = vpack.c.bf16 %v792_v26, %v792_v26  ;;  %v796_v39 = vmax.f32 %v764_v31, 0.0  ;;  %v728_v40 = vmul.f32 %v7359_v36, %v8406_v55  ;;  %v628_v41 = vpop.f32.mrb[13].mxu1  ;;  %v8037_v56 = vld [vmem:[#allocation2 + $0x18] sm:$0xff]  }
 0x107   : > { %v7112_v38 = vpack.c.bf16 %v790_v29, %v790_v29  ;;  %v7117_v42 = vpack.c.bf16 %v795_v33, %v795_v33  ;;  %v794_v45 = vmax.f32 %v762_v35, 0.0  ;;  %v726_v46 = vmul.f32 %v8406_v55, %v628_v41  ;;  %v8477_v47 = vpop.f32.mrb[14].mxu1  ;;  %v8034_v48 = vld [vmem:[#allocation2 + $0xc] sm:$0xff]  }
 0x108   : > { %v7115_v44 = vpack.c.bf16 %v793_v34, %v793_v34  ;;  %v1348_v50 = vshrl.u32 %v7114_v37, 16  ;;  %v1351_v51 = vshll.u32 %v7114_v37, 16  ;;  %v631_v54 = vpop.f32.mrb[15].mxu1  ;;  %7527 = vmatprep.mubr.msk.bf16.mxu0 %vm2226_vm11, %v8034_v48  ;;  %v7118_v1 = vpack.c.bf16 %v796_v39, %v796_v39 }
 0x109   : > { %v1331_v52 = vshrl.u32 %v7112_v38, 16  ;;  %v1334_v53 = vshll.u32 %v7112_v38, 16  ;;  %v1374_v58 = vshrl.u32 %v7117_v42, 16  ;;  %v1377_v59 = vshll.u32 %v7117_v42, 16  ;;  %7528 = vmatmul.mubr.msk.bf16.vlgmr.msra.gmra.mrb[0].mxu0 %vm2226_vm11, %v8037_v56  ;;  %v1649_v42 = vld [vmem:[#allocation2 + $0x50] sm:$0x1] }
 0x10a   : > { %v1357_v60 = vshrl.u32 %v7115_v44, 16  ;;  %v1360_v61 = vshll.u32 %v7115_v44, 16  ;;  %v1350_v27 = vrot.slane %v1348_v50, 7  ;;  %v7116_v2 = vpack.c.bf16 %v794_v45, %v794_v45  ;;  %7560 = vmatpush3.bf16.msra.mxu0 %v8373_v28 }
 0x10b   : > { %v1333_v63 = vrot.slane %v1331_v52, 7  ;;  %v1376_v3 = vrot.slane %v1374_v58, 7  ;;  %v767_v8 = vadd.f32 %v8411_v57, %v728_v40  ;;  %v765_v9 = vadd.f32 %v8411_v57, %v726_v46  ;;  %7561 = vmatprep.subr.bf16.mxu0 %v8043_v49 }
 0x10c   : > { %v8484_v6 = vrot.slane %v1357_v60, 7  ;;  %v1353_v11 = vor.u32 %v1351_v51, %v1350_v27  ;;  %v1355_v12 = vrot.slane %v1350_v27, 4  ;;  %v1382_v10 = vshrl.u32 %v7118_v1, 16  ;;  %v1642_v51 = vld [vmem:[#allocation2 + $0x44] sm:$0x1] }
 0x10d   : > { %v1336_v13 = vor.u32 %v1334_v53, %v1333_v63  ;;  %v1338_v14 = vrot.slane %v1333_v63, 4  ;;  %v1379_v17 = vor.u32 %v1377_v59, %v1376_v3  ;;  %v1380_v19 = vrot.slane %v1376_v3, 4  ;;  %v7363_v23 = vpop.f32.mrb[16].mxu1  ;;  %v5906_v18 = vld [vmem:[#allocation2 + $0x24] sm:$0xe] }
 0x10e   : > { %v1362_v20 = vor.u32 %v1360_v61, %v8484_v6  ;;  %v1363_v22 = vrot.slane %v8484_v6, 4  ;;  %v1354_v28 = vsel %vm8433_vm14, %v1346_v15, %v1353_v11  ;;  %v1636_v25 = vsel %vm8287_vm4, %v1355_v12, %v1635_v62  ;;  %v644_v31 = vpop.f32.mrb[17].mxu1  ;;  %7562 = vmatpush3.bf16.msra.mxu0 %v8043_v49  ;;  %v1659_v61 = vld [vmem:[#allocation2 + $0x60] sm:$0xf] }
 0x10f   : > { %v1337_v26 = vsel %vm8433_vm14, %v1329_v21, %v1336_v13  ;;  %v1629_v29 = vsel %vm8287_vm4, %v1338_v14, %v1628_v0  ;;  %1634 = vst.msk [vmem:[#allocation2 + $0x34] sm:$0xf] %vm1079_vm7, %v1354_v28  ;;  %1637 = vst [vmem:[#allocation2 + $0x38] sm:$0x1] %v1636_v25  ;;  %v1646_v4 = vsel %vm8426_vm13, %v1379_v17, %v1645_v5  ;;  %v1385_v32 = vshll.u32 %v7118_v1, 16  ;;  %v7364_v33 = vpop.f32.mrb[18].mxu1 }
 0x110   : > { %1627 = vst.msk [vmem:[#allocation2 + $0x28] sm:$0xf] %vm1079_vm7, %v1337_v26  ;;  %1630 = vst [vmem:[#allocation2 + $0x2c] sm:$0x1] %v1629_v29  ;;  %v1639_v15 = vsel %vm8426_vm13, %v1362_v20, %v1638_v7  ;;  %v1365_v21 = vshrl.u32 %v7116_v2, 16  ;;  %v1368_v34 = vshll.u32 %v7116_v2, 16  ;;  %7595 = vmatprep.subr.bf16.mxu0 %v8048_v16  ;;  %v729_v39 = vmul.f32 %v8477_v47, %v8406_v55 }
 0x111   : > { %1647 = vst [vmem:[#allocation2 + $0x48] sm:$0xf] %v1646_v4  ;;  %1640 = vst [vmem:[#allocation2 + $0x3c] sm:$0xf] %v1639_v15  ;;  %v799_v35 = vmax.f32 %v767_v8, 0.0  ;;  %v797_v36 = vmax.f32 %v765_v9, 0.0  ;;  %v727_v40 = vmul.f32 %v8406_v55, %v631_v54  ;;  %v732_v41 = vmul.f32 %v7363_v23, %v8406_v55 }
 0x112   : > { %v8512_v37 = vpop.f32.mrb[19].mxu1  ;;  %v1384_v38 = vrot.slane %v1382_v10, 7  ;;  %v1367_v44 = vrot.slane %v1365_v21, 7  ;;  %v730_v48 = vmul.f32 %v8406_v55, %v644_v31  ;;  %v768_v52 = vadd.f32 %v8411_v57, %v729_v39  ;;  %v1652_v16 = vld [vmem:[#allocation2 + $0x54] sm:$0xf] }
 0x113   : > { %v7121_v45 = vpack.c.bf16 %v799_v35, %v799_v35  ;;  %v7119_v46 = vpack.c.bf16 %v797_v36, %v797_v36  ;;  %v766_v53 = vadd.f32 %v8411_v57, %v727_v40  ;;  %v771_v8 = vadd.f32 %v8411_v57, %v732_v41  ;;  %v8545_v26 = vld [vmem:[#allocation2 + $0xc] sm:$0xf]  ;;  %v1663_v36 = vld [vmem:[#allocation2 + $0x68] sm:$0x1] }
 0x114   : > { %v1387_v49 = vor.u32 %v1385_v32, %v1384_v38  ;;  %v1389_v50 = vrot.slane %v1384_v38, 4  ;;  %v1370_v56 = vor.u32 %v1368_v34, %v1367_v44  ;;  %v1372_v58 = vrot.slane %v1367_v44, 4  ;;  %v1656_v38 = vld [vmem:[#allocation2 + $0x5c] sm:$0x1] }
 0x115   : > { %v1408_v47 = vshrl.u32 %v7121_v45, 16  ;;  %v1411_v59 = vshll.u32 %v7121_v45, 16  ;;  %v1391_v27 = vshrl.u32 %v7119_v46, 16  ;;  %v1394_v62 = vshll.u32 %v7119_v46, 16  ;;  %v8525_v63 = vpop.f32.mrb[20].mxu1 }
 0x116   : > { %v1388_v54 = vsel %vm8433_vm14, %v1380_v19, %v1387_v49  ;;  %v1650_v60 = vsel %vm8287_vm4, %v1389_v50, %v1649_v42  ;;  %v1371_v0 = vsel %vm8433_vm14, %v1363_v22, %v1370_v56  ;;  %v1643_v1 = vsel %vm8287_vm4, %v1372_v58, %v1642_v51  ;;  %v8040_v11 = vld [vmem:[#allocation2 + $0x30] sm:$0xff]   ;;  %v8537_v12 = vpop.f32.mrb[21].mxu1  ;;  %v1673_v50 = vld [vmem:[#allocation2 + $0x78] sm:$0xf] }
 0x117   : > { %1648 = vst.msk [vmem:[#allocation2 + $0x4c] sm:$0xf] %vm1079_vm7, %v1388_v54  ;;  %1651 = vst [vmem:[#allocation2 + $0x50] sm:$0x1] %v1650_v60  ;;  %v1410_v2 = vrot.slane %v1408_v47, 7  ;;  %v800_v3 = vmax.f32 %v768_v52, 0.0  ;;  %v769_v9 = vadd.f32 %v8411_v57, %v730_v48  ;;  %v733_v19 = vmul.f32 %v7364_v33, %v8406_v55 }
 0x118   : > { %v8039_v5 = vld [vmem:[#allocation2 + $0x24] sm:$0xff]   ;;  %1641 = vst.msk [vmem:[#allocation2 + $0x40] sm:$0xf] %vm1079_vm7, %v1371_v0  ;;  %1644 = vst [vmem:[#allocation2 + $0x44] sm:$0x1] %v1643_v1  ;;  %v8533_v6 = vrot.slane %v1391_v27, 7  ;;  %v731_v41 = vmul.f32 %v8406_v55, %v8512_v37 }
 0x119   : > { %v798_v7 = vmax.f32 %v766_v53, 0.0  ;;  %v1413_v13 = vor.u32 %v1411_v59, %v1410_v2  ;;  %v1414_v14 = vrot.slane %v1410_v2, 4  ;;  %v7122_v17 = vpack.c.bf16 %v800_v3, %v800_v3  ;;  %7531 = vmatprep.mubr.msk.bf16.mxu0 %vm2226_vm11, %v8039_v5  ;;  %v8541_v20 = vpop.f32.mrb[22].mxu1  ;;  %v1725_v1 = vld [vmem:[#allocation2 + $0x10] sm:$0xf] }
 0x11a   : > { %v1396_v22 = vor.u32 %v1394_v62, %v8533_v6  ;;  %v1397_v23 = vrot.slane %v8533_v6, 4  ;;  %v803_v25 = vmax.f32 %v771_v8, 0.0  ;;  %7532 = vmatmul.mubr.msk.bf16.gmra.mrb[4].mxu0 %vm2226_vm11, %v8040_v11  ;;  %v8548_v29 = vpop.f32.mrb[23].mxu1  ;;  %v801_v10 = vmax.f32 %v769_v9, 0.0  ;;  %v1666_v62 = vld [vmem:[#allocation2 + $0x6c] sm:$0xf] }
 0x11b   : > { %v7120_v28 = vpack.c.bf16 %v798_v7, %v798_v7  ;;  %v1660_v31 = vsel %vm8426_vm13, %v1413_v13, %v1659_v61  ;;  %v1416_v4 = vshrl.u32 %v7122_v17, 16  ;;  %v1419_v15 = vshll.u32 %v7122_v17, 16  ;;  %v1759_v8 = vld [vmem:[#allocation2 + $0x14] sm:$0x1]  ;;  %v1726_v9 = vld [vmem:[#allocation2 + $0x18] sm:$0xf] }
 0x11c   : > { %1661 = vst [vmem:[#allocation2 + $0x60] sm:$0xf] %v1660_v31  ;;  %v1653_v32 = vsel %vm8426_vm13, %v1396_v22, %v1652_v16  ;;  %v7125_v34 = vpack.c.bf16 %v803_v25, %v803_v25  ;;  %v7123_v39 = vpack.c.bf16 %v801_v10, %v801_v10  ;;  %v772_v40 = vadd.f32 %v8411_v57, %v733_v19 }
 0x11d   : > { %v1399_v33 = vshrl.u32 %v7120_v28, 16  ;;  %v1402_v21 = vshll.u32 %v7120_v28, 16  ;;  %1654 = vst [vmem:[#allocation2 + $0x54] sm:$0xf] %v1653_v32  ;;  %v1418_v35 = vrot.slane %v1416_v4, 7  ;;  %v1802_v46 = vshrl.u32 %v8545_v26, 16 }
 0x11e   : > { %v1442_v44 = vshrl.u32 %v7125_v34, 16  ;;  %v1445_v45 = vshll.u32 %v7125_v34, 16  ;;  %v1425_v51 = vshrl.u32 %v7123_v39, 16  ;;  %v1428_v52 = vshll.u32 %v7123_v39, 16  ;;  %v8042_v54 = vld [vmem:[#allocation2 + $0x48] sm:$0xff]   ;;  %v8560_v60 = vpop.f32.mrb[24].mxu1 }
 0x11f   : > { %v1401_v42 = vrot.slane %v1399_v33, 7  ;;  %v1421_v48 = vor.u32 %v1419_v15, %v1418_v35  ;;  %v1423_v49 = vrot.slane %v1418_v35, 4  ;;  %v8041_v53 = vld [vmem:[#allocation2 + $0x3c] sm:$0xff]   ;;  %v804_v59 = vmax.f32 %v772_v40, 0.0  ;;  %v8570_v2 = vpop.f32.mrb[25].mxu1 }
 0x120   : > { %v8558_v47 = vrot.slane %v1442_v44, 7  ;;  %v8566_v27 = vrot.slane %v1425_v51, 7  ;;  %v770_v0 = vadd.f32 %v8411_v57, %v731_v41  ;;  %7535 = vmatprep.mubr.msk.bf16.mxu0 %vm2226_vm11, %v8041_v53  ;;  %v8580_v11 = vpop.f32.mrb[26].mxu1  ;;  %v1805_v28 = vshll.u32 %v8545_v26, 16  ;;  %v1727_v32 = vld [vmem:[#allocation2 + $0x1c] sm:$0xf] }
 0x121   : > { %v1404_v56 = vor.u32 %v1402_v21, %v1401_v42  ;;  %v1406_v58 = vrot.slane %v1401_v42, 4  ;;  %v1422_v37 = vsel %vm8433_vm14, %v1414_v14, %v1421_v48  ;;  %v1664_v61 = vsel %vm8287_vm4, %v1423_v49, %v1663_v36  ;;  %v8585_v19 = vpop.f32.mrb[27].mxu1  ;;  %v1677_v33 = vld [vmem:[#allocation2 + $0x80] sm:$0x1]  ;;  %v1670_v44 = vld [vmem:[#allocation2 + $0x74] sm:$0x1] }
 0x122   : > { %1662 = vst.msk [vmem:[#allocation2 + $0x64] sm:$0xf] %vm1079_vm7, %v1422_v37  ;;  %1665 = vst [vmem:[#allocation2 + $0x68] sm:$0x1] %v1664_v61  ;;  %v1447_v6 = vor.u32 %v1445_v45, %v8558_v47  ;;  %v1448_v7 = vrot.slane %v8558_v47, 4  ;;  %7536 = vmatmul.mubr.msk.bf16.gmra.mrb[8].mxu0 %vm2226_vm11, %v8042_v54  ;;  %v1430_v13 = vor.u32 %v1428_v52, %v8566_v27  ;;  %v1431_v14 = vrot.slane %v8566_v27, 4 }
 0x123   : > { %v1405_v3 = vsel %vm8433_vm14, %v1397_v23, %v1404_v56  ;;  %v1657_v5 = vsel %vm8287_vm4, %v1406_v58, %v1656_v38  ;;  %v7126_v16 = vpack.c.bf16 %v804_v59, %v804_v59  ;;  %v802_v17 = vmax.f32 %v770_v0, 0.0  ;;  %v1760_v49 = vld [vmem:[#allocation2 + $0x20] sm:$0x1] }
 0x124   : > { %1655 = vst.msk [vmem:[#allocation2 + $0x58] sm:$0xf] %vm1079_vm7, %v1405_v3  ;;  %1658 = vst [vmem:[#allocation2 + $0x5c] sm:$0x1] %v1657_v5  ;;  %v1674_v22 = vsel %vm8426_vm13, %v1447_v6, %v1673_v50  ;;  %v1804_v23 = vrot.slane %v1802_v46, 4  ;;  %v1811_v25 = vshll.u32 %v1725_v1, 16  ;;  %v1667_v31 = vsel %vm8426_vm13, %v1430_v13, %v1666_v62 }
 0x125   : > { %1675 = vst [vmem:[#allocation2 + $0x78] sm:$0xf] %v1674_v22  ;;  %v1450_v4 = vshrl.u32 %v7126_v16, 16  ;;  %v1453_v15 = vshll.u32 %v7126_v16, 16  ;;  %v7124_v10 = vpack.c.bf16 %v802_v17, %v802_v17  ;;  %1668 = vst [vmem:[#allocation2 + $0x6c] sm:$0xf] %v1667_v31 }
 0x126   : > { %v1807_v21 = vrot.slane %v1805_v28, 5  ;;  %v1813_v34 = vrot.slane %v1811_v25, 5  ;;  %v1815_v35 = vshrl.u32 %v1725_v1, 16  ;;  %v1821_v36 = vshll.u32 %v1759_v8, 16  ;;  %v8592_v38 = vpop.f32.mrb[28].mxu1 }
 0x127   : > { %v1452_v39 = vrot.slane %v1450_v4, 7  ;;  %v1433_v40 = vshrl.u32 %v7124_v10, 16  ;;  %v1436_v26 = vshll.u32 %v7124_v10, 16  ;;  %v1826_v41 = vshrl.u32 %v1726_v9, 16  ;;  %v8594_v42 = vpop.f32.mrb[29].mxu1  ;;  %v8049_v4 = vld [vmem:[%s10341_s4] sm:$0xff]  }
 0x128   : > { %v1808_v45 = vor.u32 %v1807_v21, %v1804_v23  ;;  %v1817_v46 = vrot.slane %v1815_v35, 4  ;;  %v1823_v48 = vrot.slane %v1821_v36, 5  ;;  %v1829_v50 = vshll.u32 %v1726_v9, 16  ;;  %v8596_v51 = vpop.f32.mrb[30].mxu1  ;;  %v1728_v31 = vld [vmem:[#allocation2 + $0x24] sm:$0xf]  ;;  %7451 = vmatprep.subr.bf16.mxu1 %v8049_v4 }
 0x129   : > { %v1455_v52 = vor.u32 %v1453_v15, %v1452_v39  ;;  %v1457_v53 = vrot.slane %v1452_v39, 4  ;;  %v1435_v56 = vrot.slane %v1433_v40, 7  ;;  %v1828_v58 = vrot.slane %v1826_v41, 4  ;;  %v8045_v3 = vld [vmem:[#allocation2 + $0x60] sm:$0xff]   ;;  %v8602_v5 = vpop.f32.mrb[31].mxu1 }
 0x12a   : > { %v1809_v47 = vrot.slane %v1808_v45, 4  ;;  %v1818_v59 = vor.u32 %v1817_v46, %v1813_v34  ;;  %v1831_v54 = vrot.slane %v1829_v50, 5  ;;  %v1835_v37 = vshll.u32 %v1727_v32, 16  ;;  %v1729_v21 = vld [vmem:[#allocation2 + $0x28] sm:$0xf] }
 0x12b   : > { %v8044_v61 = vld [vmem:[#allocation2 + $0x54] sm:$0xff]   ;;  %v1456_v27 = vsel %vm8433_vm14, %v1448_v7, %v1455_v52  ;;  %v1678_v62 = vsel %vm8287_vm4, %v1457_v53, %v1677_v33  ;;  %v1438_v0 = vor.u32 %v1436_v26, %v1435_v56  ;;  %v1440_v1 = vrot.slane %v1435_v56, 4 }
 0x12c   : > { %1676 = vst.msk [vmem:[#allocation2 + $0x7c] sm:$0xf] %vm1079_vm7, %v1456_v27  ;;  %1679 = vst [vmem:[#allocation2 + $0x80] sm:$0x1] %v1678_v62  ;;  %v1814_v6 = vsel %vm8358_vm10, %v1809_v47, %v1813_v34  ;;  %v1819_v8 = vrot.slane %v1818_v59, 4  ;;  %v1832_v9 = vor.u32 %v1831_v54, %v1828_v58  ;;  %v1837_v13 = vrot.slane %v1835_v37, 5  ;;  %7539 = vmatprep.mubr.msk.bf16.mxu0 %vm2226_vm11, %v8044_v61 }
 0x12d   : > { %v1439_v7 = vsel %vm8433_vm14, %v1431_v14, %v1438_v0  ;;  %v1671_v16 = vsel %vm8287_vm4, %v1440_v1, %v1670_v44  ;;  %v1839_v17 = vshrl.u32 %v1727_v32, 16  ;;  %v1845_v22 = vshll.u32 %v1760_v49, 16  ;;  %7540 = vmatmul.mubr.msk.bf16.gmra.mrb[12].mxu0 %vm2226_vm11, %v8045_v3  ;;  %v8050_v58 = vld [vmem:[%s10341_s4 + $0x8] sm:$0xff]  }
 0x12e   : > { %1669 = vst.msk [vmem:[#allocation2 + $0x70] sm:$0xf] %vm1079_vm7, %v1439_v7  ;;  %1672 = vst [vmem:[#allocation2 + $0x74] sm:$0x1] %v1671_v16  ;;  %v1824_v23 = vsel %vm8358_vm10, %v1819_v8, %v1823_v48  ;;  %v1833_v28 = vrot.slane %v1832_v9, 4  ;;  %v736_v25 = vmul.f32 %v8525_v63, %v8406_v55  ;;  %v734_v14 = vmul.f32 %v8406_v55, %v8537_v12 }
 0x12f   : > { %v6720_v15 = vcombine.low %v1814_v6, %v1824_v23  ;;  %v1841_v10 = vrot.slane %v1839_v17, 4  ;;  %v1847_v32 = vrot.slane %v1845_v22, 5  ;;  %v737_v33 = vmul.f32 %v8541_v20, %v8406_v55  ;;  %v1761_v3 = vld [vmem:[#allocation2 + $0x2c] sm:$0x1]  ;;  %v1687_v17 = vld [vmem:[#allocation2 + $0x90] sm:$0xf] }
 0x130   : > { %v1838_v34 = vsel %vm8358_vm10, %v1833_v28, %v1837_v13  ;;  %v775_v63 = vadd.f32 %v8411_v57, %v736_v25  ;;  %v773_v35 = vadd.f32 %v8411_v57, %v734_v14  ;;  %v735_v12 = vmul.f32 %v8406_v55, %v8548_v29  ;;  %v1680_v25 = vld [vmem:[#allocation2 + $0x84] sm:$0xf] }
 0x131   : > { %7420 = vmatmul.mubr.msk.bf16.vlgmr.msra.gmra.mrb[64].mxu1 %vm2226_vm11, %v6720_v15  ;;  %v1842_v36 = vor.u32 %v1841_v10, %v1837_v13  ;;  %v776_v39 = vadd.f32 %v8411_v57, %v737_v33  ;;  %v1850_v40 = vshrl.u32 %v1728_v31, 16  ;;  %v1853_v26 = vshll.u32 %v1728_v31, 16 }
 0x132   : > { %v807_v20 = vmax.f32 %v775_v63, 0.0  ;;  %v805_v41 = vmax.f32 %v773_v35, 0.0  ;;  %v774_v44 = vadd.f32 %v8411_v57, %v735_v12  ;;  %v1859_v45 = vshll.u32 %v1729_v21, 16  ;;  %7452 = vmatpush3.bf16.msra.mxu1 %v8049_v4 }
 0x133   : > { %v1843_v46 = vrot.slane %v1842_v36, 4  ;;  %v808_v48 = vmax.f32 %v776_v39, 0.0  ;;  %v1852_v49 = vrot.slane %v1850_v40, 4  ;;  %v1855_v50 = vrot.slane %v1853_v26, 5  ;;  %v8047_v6 = vld [vmem:[#allocation2 + $0x78] sm:$0xff]   ;;  %7453 = vmatprep.subr.bf16.mxu1 %v8050_v58 }
 0x134   : > { %v7129_v52 = vpack.c.bf16 %v807_v20, %v807_v20  ;;  %v7127_v29 = vpack.c.bf16 %v805_v41, %v805_v41  ;;  %v806_v53 = vmax.f32 %v774_v44, 0.0  ;;  %v8634_v56 = vrot.slane %v1859_v45, 5  ;;  %v1730_v39 = vld [vmem:[#allocation2 + $0x30] sm:$0xf]  ;;  %v1731_v40 = vld [vmem:[#allocation2 + $0x34] sm:$0xf] }
 0x135   : > { %v1848_v47 = vsel %vm8358_vm10, %v1843_v46, %v1847_v32  ;;  %v7130_v59 = vpack.c.bf16 %v808_v48, %v808_v48  ;;  %v1856_v54 = vor.u32 %v1855_v50, %v1852_v49  ;;  %v1863_v37 = vshrl.u32 %v1729_v21, 16  ;;  %v8046_v61 = vld [vmem:[#allocation2 + $0x6c] sm:$0xff]   ;;  %v1762_v46 = vld [vmem:[#allocation2 + $0x38] sm:$0x1] }
 0x136   : > { %v6721_v27 = vcombine.low %v1838_v34, %v1848_v47  ;;  %v1476_v62 = vshrl.u32 %v7129_v52, 16  ;;  %v1479_v0 = vshll.u32 %v7129_v52, 16  ;;  %v1459_v1 = vshrl.u32 %v7127_v29, 16  ;;  %7543 = vmatprep.mubr.msk.bf16.mxu0 %vm2226_vm11, %v8046_v61  ;;  %7454 = vmatpush3.bf16.msra.mxu1 %v8050_v58  ;;  %v1691_v34 = vld [vmem:[#allocation2 + $0x98] sm:$0x1] }
 0x137   : > { %v1462_v8 = vshll.u32 %v7127_v29, 16  ;;  %v1484_v9 = vshrl.u32 %v7130_v59, 16  ;;  %v1487_v13 = vshll.u32 %v7130_v59, 16  ;;  %v7128_v7 = vpack.c.bf16 %v806_v53, %v806_v53  ;;  %7544 = vmatmul.mubr.msk.bf16.gmra.mrb[16].mxu0 %vm2226_vm11, %v8047_v6  ;;  %v1684_v41 = vld [vmem:[#allocation2 + $0x8c] sm:$0x1] }
 0x138   : > { %7423 = vmatprep.mubr.msk.bf16.mxu1 %vm2226_vm11, %v6721_v27  ;;  %v1478_v16 = vrot.slane %v1476_v62, 7  ;;  %v1461_v22 = vrot.slane %v1459_v1, 7  ;;  %v1857_v23 = vrot.slane %v1856_v54, 4  ;;  %v1865_v28 = vrot.slane %v1863_v37, 4  ;;  %v1732_v61 = vld [vmem:[#allocation2 + $0x3c] sm:$0xf] }
 0x139   : > { %v1486_v14 = vrot.slane %v1484_v9, 7  ;;  %v1467_v31 = vshrl.u32 %v7128_v7, 16  ;;  %v1470_v4 = vshll.u32 %v7128_v7, 16  ;;  %v1869_v15 = vshll.u32 %v1761_v3, 16 }
 0x13a   : > { %v1481_v10 = vor.u32 %v1479_v0, %v1478_v16  ;;  %v1482_v32 = vrot.slane %v1478_v16, 4  ;;  %v1464_v33 = vor.u32 %v1462_v8, %v1461_v22  ;;  %v1465_v21 = vrot.slane %v1461_v22, 4 }
 0x13b   : > { %v1489_v63 = vor.u32 %v1487_v13, %v1486_v14  ;;  %v1491_v35 = vrot.slane %v1486_v14, 4  ;;  %v1469_v12 = vrot.slane %v1467_v31, 7  ;;  %v1862_v36 = vsel %vm8358_vm10, %v1857_v23, %v8634_v56 }
 0x13c   : > { %v1688_v26 = vsel %vm8426_vm13, %v1481_v10, %v1687_v17  ;;  %v1681_v20 = vsel %vm8426_vm13, %v1464_v33, %v1680_v25  ;;  %v1866_v44 = vor.u32 %v1865_v28, %v8634_v56  ;;  %v1871_v45 = vrot.slane %v1869_v15, 5 }
 0x13d   : > { %1689 = vst [vmem:[#allocation2 + $0x90] sm:$0xf] %v1688_v26  ;;  %1682 = vst [vmem:[#allocation2 + $0x84] sm:$0xf] %v1681_v20  ;;  %v1490_v48 = vsel %vm8433_vm14, %v1482_v32, %v1489_v63  ;;  %v1692_v49 = vsel %vm8287_vm4, %v1491_v35, %v1691_v34  ;;  %v1472_v50 = vor.u32 %v1470_v4, %v1469_v12  ;;  %v1474_v52 = vrot.slane %v1469_v12, 4 }
 0x13e   : > { %1690 = vst.msk [vmem:[#allocation2 + $0x94] sm:$0xf] %vm1079_vm7, %v1490_v48  ;;  %1693 = vst [vmem:[#allocation2 + $0x98] sm:$0x1] %v1692_v49  ;;  %v1867_v29 = vrot.slane %v1866_v44, 4  ;;  %v1874_v53 = vshrl.u32 %v1730_v39, 16  ;;  %v740_v9 = vmul.f32 %v8560_v60, %v8406_v55  ;;  %v738_v7 = vmul.f32 %v8406_v55, %v8570_v2 }
 0x13f   : > { %v1877_v58 = vshll.u32 %v1730_v39, 16  ;;  %v1883_v47 = vshll.u32 %v1731_v40, 16  ;;  %v1473_v56 = vsel %vm8433_vm14, %v1465_v21, %v1472_v50  ;;  %v1685_v59 = vsel %vm8287_vm4, %v1474_v52, %v1684_v41  ;;  %v1733_v4 = vld [vmem:[#allocation2 + $0x40] sm:$0xf]  ;;  %v1763_v41 = vld [vmem:[#allocation2 + $0x44] sm:$0x1] }
 0x140   : > { %v1887_v54 = vshrl.u32 %v1731_v40, 16  ;;  %v1893_v37 = vshll.u32 %v1762_v46, 16  ;;  %1683 = vst.msk [vmem:[#allocation2 + $0x88] sm:$0xf] %vm1079_vm7, %v1473_v56  ;;  %1686 = vst [vmem:[#allocation2 + $0x8c] sm:$0x1] %v1685_v59  ;;  %v1872_v27 = vsel %vm8358_vm10, %v1867_v29, %v1871_v45  ;;  %v741_v16 = vmul.f32 %v8580_v11, %v8406_v55 }
 0x141   : > { %v1876_v62 = vrot.slane %v1874_v53, 4  ;;  %v1879_v0 = vrot.slane %v1877_v58, 5  ;;  %v1885_v1 = vrot.slane %v1883_v47, 5  ;;  %v6722_v3 = vcombine.low %v1862_v36, %v1872_v27  ;;  %v1701_v46 = vld [vmem:[#allocation2 + $0xa8] sm:$0xf] }
 0x142   : > { %v1889_v6 = vrot.slane %v1887_v54, 4  ;;  %v1895_v8 = vrot.slane %v1893_v37, 5  ;;  %v739_v17 = vmul.f32 %v8406_v55, %v8585_v19  ;;  %v779_v23 = vadd.f32 %v8411_v57, %v740_v9  ;;  %v1734_v29 = vld [vmem:[#allocation2 + $0x48] sm:$0xf]  ;;  %v1694_v58 = vld [vmem:[#allocation2 + $0x9c] sm:$0xf] }
 0x143   : > { %v1880_v13 = vor.u32 %v1879_v0, %v1876_v62  ;;  %7424 = vmatmul.mubr.msk.bf16.gmra.mrb[68].mxu1 %vm2226_vm11, %v6722_v3  ;;  %v1898_v28 = vshrl.u32 %v1732_v61, 16  ;;  %v1901_v25 = vshll.u32 %v1732_v61, 16  ;;  %v777_v60 = vadd.f32 %v8411_v57, %v738_v7  ;;  %v1705_v47 = vld [vmem:[#allocation2 + $0xb0] sm:$0x1]  ;;  %v1698_v27 = vld [vmem:[#allocation2 + $0xa4] sm:$0x1] }
 0x144   : > { %v1890_v22 = vor.u32 %v1889_v6, %v1885_v1  ;;  %v780_v31 = vadd.f32 %v8411_v57, %v741_v16  ;;  %v778_v2 = vadd.f32 %v8411_v57, %v739_v17  ;;  %v811_v11 = vmax.f32 %v779_v23, 0.0 }
 0x145   : > { %v1881_v14 = vrot.slane %v1880_v13, 4  ;;  %v1900_v10 = vrot.slane %v1898_v28, 4  ;;  %v1903_v32 = vrot.slane %v1901_v25, 5  ;;  %v809_v19 = vmax.f32 %v777_v60, 0.0 }
 0x146   : > { %v1891_v15 = vrot.slane %v1890_v22, 4  ;;  %v812_v33 = vmax.f32 %v780_v31, 0.0  ;;  %v810_v21 = vmax.f32 %v778_v2, 0.0  ;;  %v7133_v63 = vpack.c.bf16 %v811_v11, %v811_v11  ;;  %v1764_v22 = vld [vmem:[#allocation2 + $0x50] sm:$0x1] }
 0x147   : > { %v1886_v55 = vsel %vm8358_vm10, %v1881_v14, %v1885_v1  ;;  %v1904_v35 = vor.u32 %v1903_v32, %v1900_v10  ;;  %v1907_v12 = vshll.u32 %v1733_v4, 16  ;;  %v7131_v39 = vpack.c.bf16 %v809_v19, %v809_v19 }
 0x148   : > { %v1896_v34 = vsel %vm8358_vm10, %v1891_v15, %v1895_v8  ;;  %v7134_v57 = vpack.c.bf16 %v812_v33, %v812_v33  ;;  %v7132_v40 = vpack.c.bf16 %v810_v21, %v810_v21  ;;  %v1510_v26 = vshrl.u32 %v7133_v63, 16  ;;  %v1735_v8 = vld [vmem:[#allocation2 + $0x4c] sm:$0xf] }
 0x149   : > { %v6723_v36 = vcombine.low %v1886_v55, %v1896_v34  ;;  %v1513_v20 = vshll.u32 %v7133_v63, 16  ;;  %v8681_v44 = vrot.slane %v1904_v35, 4  ;;  %v8683_v45 = vrot.slane %v1907_v12, 5  ;;  %v1736_v34 = vld [vmem:[#allocation2 + $0x54] sm:$0xf] }
 0x14a   : > { %v1493_v48 = vshrl.u32 %v7131_v39, 16  ;;  %v1496_v49 = vshll.u32 %v7131_v39, 16  ;;  %v1518_v50 = vshrl.u32 %v7134_v57, 16  ;;  %v1521_v52 = vshll.u32 %v7134_v57, 16  ;;  %v8091_v35 = vld [vmem:[%s10339_s2] ss:$0 sm:$0xff] }
 0x14b   : > { %7427 = vmatprep.mubr.msk.bf16.mxu1 %vm2226_vm11, %v6723_v36  ;;  %v1512_v53 = vrot.slane %v1510_v26, 7  ;;  %v1501_v56 = vshrl.u32 %v7132_v40, 16  ;;  %v1504_v59 = vshll.u32 %v7132_v40, 16  ;;  %v1910_v54 = vsel %vm8358_vm10, %v8681_v44, %v8683_v45  ;;  %v8092_v44 = vld [vmem:[%s10340_s3] ss:$0 sm:$0xff] }
 0x14c   : > { %v1495_v37 = vrot.slane %v1493_v48, 7  ;;  %v1520_v61 = vrot.slane %v1518_v50, 7  ;;  %v1911_v62 = vshrl.u32 %v1733_v4, 16  ;;  %v1917_v0 = vshll.u32 %v1763_v41, 16 }
 0x14d   : > { %v1515_v1 = vor.u32 %v1513_v20, %v1512_v53  ;;  %v1516_v3 = vrot.slane %v1512_v53, 4  ;;  %v1503_v6 = vrot.slane %v1501_v56, 7  ;;  %v1922_v9 = vshrl.u32 %v1734_v29, 16 }
 0x14e   : > { %v1498_v13 = vor.u32 %v1496_v49, %v1495_v37  ;;  %v1499_v7 = vrot.slane %v1495_v37, 4  ;;  %v1523_v16 = vor.u32 %v1521_v52, %v1520_v61  ;;  %v1525_v17 = vrot.slane %v1520_v61, 4 }
 0x14f   : > { %v1702_v23 = vsel %vm8426_vm13, %v1515_v1, %v1701_v46  ;;  %v1506_v28 = vor.u32 %v1504_v59, %v1503_v6  ;;  %v1508_v25 = vrot.slane %v1503_v6, 4  ;;  %v1913_v14 = vrot.slane %v1911_v62, 4  ;;  %v1737_v1 = vld [vmem:[#allocation2 + $0x58] sm:$0xf] }
 0x150   : > { %1703 = vst [vmem:[#allocation2 + $0xa8] sm:$0xf] %v1702_v23  ;;  %v1695_v60 = vsel %vm8426_vm13, %v1498_v13, %v1694_v58  ;;  %v1524_v31 = vsel %vm8433_vm14, %v1516_v3, %v1523_v16  ;;  %v1706_v2 = vsel %vm8287_vm4, %v1525_v17, %v1705_v47  ;;  %v1919_v4 = vrot.slane %v1917_v0, 5 }
 0x151   : > { %1696 = vst [vmem:[#allocation2 + $0x9c] sm:$0xf] %v1695_v60  ;;  %1704 = vst.msk [vmem:[#allocation2 + $0xac] sm:$0xf] %vm1079_vm7, %v1524_v31  ;;  %v1507_v15 = vsel %vm8433_vm14, %v1499_v7, %v1506_v28  ;;  %v1699_v11 = vsel %vm8287_vm4, %v1508_v25, %v1698_v27  ;;  %v1914_v10 = vor.u32 %v1913_v14, %v8683_v45  ;;  %v1924_v32 = vrot.slane %v1922_v9, 4 }
 0x152   : > { %1707 = vst [vmem:[#allocation2 + $0xb0] sm:$0x1] %v1706_v2  ;;  %1697 = vst.msk [vmem:[#allocation2 + $0xa0] sm:$0xf] %vm1079_vm7, %v1507_v15  ;;  %v1925_v55 = vshll.u32 %v1734_v29, 16  ;;  %v1931_v19 = vshll.u32 %v1735_v8, 16  ;;  %v744_v12 = vmul.f32 %v8091_v35, %v8592_v38  ;;  %v742_v36 = vmul.f32 %v8091_v35, %v8594_v42 }
 0x153   : > { %1700 = vst [vmem:[#allocation2 + $0xa4] sm:$0x1] %v1699_v11  ;;  %v1935_v33 = vshrl.u32 %v1735_v8, 16  ;;  %v1941_v21 = vshll.u32 %v1764_v22, 16  ;;  %v1915_v63 = vrot.slane %v1914_v10, 4  ;;  %v745_v39 = vmul.f32 %v8091_v35, %v8596_v51 }
 0x154   : > { %v1927_v57 = vrot.slane %v1925_v55, 5  ;;  %v1933_v40 = vrot.slane %v1931_v19, 5  ;;  %v783_v45 = vadd.f32 %v8092_v44, %v744_v12  ;;  %v781_v46 = vadd.f32 %v8092_v44, %v742_v36  ;;  %v1715_v7 = vld [vmem:[#allocation2 + $0xc0] sm:$0xf]  ;;  %v1708_v14 = vld [vmem:[#allocation2 + $0xb4] sm:$0xf] }
 0x155   : > { %v1937_v26 = vrot.slane %v1935_v33, 4  ;;  %v1943_v20 = vrot.slane %v1941_v21, 5  ;;  %v1920_v41 = vsel %vm8358_vm10, %v1915_v63, %v1919_v4  ;;  %v784_v48 = vadd.f32 %v8092_v44, %v745_v39  ;;  %v1719_v4 = vld [vmem:[#allocation2 + $0xc8] sm:$0x1]  ;;  %v1712_v21 = vld [vmem:[#allocation2 + $0xbc] sm:$0x1] }
 0x156   : > { %v6724_v49 = vcombine.low %v1910_v54, %v1920_v41  ;;  %v1928_v38 = vor.u32 %v1927_v57, %v1924_v32  ;;  %v743_v42 = vmul.f32 %v8091_v35, %v8602_v5  ;;  %v815_v51 = vmax.f32 %v783_v45, 0.0  ;;  %v1765_v36 = vld [vmem:[#allocation2 + $0x5c] sm:$0x1]  ;;  %v1739_v41 = vld [vmem:[#allocation2 + $0x64] sm:$0xf] }
 0x157   : > { %v1938_v50 = vor.u32 %v1937_v26, %v1933_v40  ;;  %v813_v52 = vmax.f32 %v781_v46, 0.0  ;;  %v816_v29 = vmax.f32 %v784_v48, 0.0  ;;  %v1946_v53 = vshrl.u32 %v1736_v34, 16  ;;  %v3576_v45 = vld [vmem:[#allocation2 + $0xc] sm:$0xf] }
 0x158   : > { %7428 = vmatmul.mubr.msk.bf16.gmra.mrb[72].mxu1 %vm2226_vm11, %v6724_v49  ;;  %v1929_v58 = vrot.slane %v1928_v38, 4  ;;  %v782_v56 = vadd.f32 %v8092_v44, %v743_v42  ;;  %v1949_v59 = vshll.u32 %v1736_v34, 16  ;;  %v7137_v37 = vpack.c.bf16 %v815_v51, %v815_v51  ;;  %v1738_v34 = vld [vmem:[#allocation2 + $0x60] sm:$0xf]  ;;  %v1766_v44 = vld [vmem:[#allocation2 + $0x68] sm:$0x1] }
 0x159   : > { %v1939_v47 = vrot.slane %v1938_v50, 4  ;;  %v7135_v61 = vpack.c.bf16 %v813_v52, %v813_v52  ;;  %v7138_v27 = vpack.c.bf16 %v816_v29, %v816_v29  ;;  %v1948_v62 = vrot.slane %v1946_v53, 4 }
 0x15a   : > { %v1934_v54 = vsel %vm8358_vm10, %v1929_v58, %v1933_v40  ;;  %v814_v0 = vmax.f32 %v782_v56, 0.0  ;;  %v1951_v3 = vrot.slane %v1949_v59, 5  ;;  %v1544_v8 = vshrl.u32 %v7137_v37, 16 }
 0x15b   : > { %v1944_v5 = vsel %vm8358_vm10, %v1939_v47, %v1943_v20  ;;  %v1547_v9 = vshll.u32 %v7137_v37, 16  ;;  %v1527_v13 = vshrl.u32 %v7135_v61, 16  ;;  %v1530_v16 = vshll.u32 %v7135_v61, 16  ;;  %v3577_v47 = vld [vmem:[#allocation2 + $0x10] sm:$0xf] }
 0x15c   : > { %v6725_v6 = vcombine.low %v1934_v54, %v1944_v5  ;;  %v1552_v17 = vshrl.u32 %v7138_v27, 16  ;;  %v1555_v22 = vshll.u32 %v7138_v27, 16  ;;  %v7136_v23 = vpack.c.bf16 %v814_v0, %v814_v0  ;;  %v3578_v27 = vld [vmem:[#allocation2 + $0x14] sm:$0x1] }
 0x15d   : > { %v1546_v28 = vrot.slane %v1544_v8, 7  ;;  %v1529_v25 = vrot.slane %v1527_v13, 7  ;;  %v1952_v60 = vor.u32 %v1951_v3, %v1948_v62  ;;  %v1955_v31 = vshll.u32 %v1737_v1, 16  ;;  %v1740_v62 = vld [vmem:[#allocation2 + $0x6c] sm:$0xf] }
 0x15e   : > { %7431 = vmatprep.mubr.msk.bf16.mxu1 %vm2226_vm11, %v6725_v6  ;;  %v1554_v2 = vrot.slane %v1552_v17, 7  ;;  %v1535_v15 = vshrl.u32 %v7136_v23, 16  ;;  %v1538_v11 = vshll.u32 %v7136_v23, 16  ;;  %v1959_v10 = vshrl.u32 %v1737_v1, 16  ;;  %v1741_v1 = vld [vmem:[#allocation2 + $0x70] sm:$0xf] }
 0x15f   : > { %v1549_v32 = vor.u32 %v1547_v9, %v1546_v28  ;;  %v1550_v55 = vrot.slane %v1546_v28, 4  ;;  %v1532_v19 = vor.u32 %v1530_v16, %v1529_v25  ;;  %v1533_v33 = vrot.slane %v1529_v25, 4 }
 0x160   : > { %v1557_v63 = vor.u32 %v1555_v22, %v1554_v2  ;;  %v1559_v35 = vrot.slane %v1554_v2, 4  ;;  %v1537_v12 = vrot.slane %v1535_v15, 7  ;;  %v1953_v39 = vrot.slane %v1952_v60, 4 }
 0x161   : > { %v1716_v57 = vsel %vm8426_vm13, %v1549_v32, %v1715_v7  ;;  %v1709_v40 = vsel %vm8426_vm13, %v1532_v19, %v1708_v14  ;;  %v1957_v26 = vrot.slane %v1955_v31, 5  ;;  %v1961_v20 = vrot.slane %v1959_v10, 4 }
 0x162   : > { %1717 = vst [vmem:[#allocation2 + $0xc0] sm:$0xf] %v1716_v57  ;;  %1710 = vst [vmem:[#allocation2 + $0xb4] sm:$0xf] %v1709_v40  ;;  %v1558_v46 = vsel %vm8433_vm14, %v1550_v55, %v1557_v63  ;;  %v1720_v48 = vsel %vm8287_vm4, %v1559_v35, %v1719_v4  ;;  %v1540_v49 = vor.u32 %v1538_v11, %v1537_v12  ;;  %v1542_v38 = vrot.slane %v1537_v12, 4 }
 0x163   : > { %1718 = vst.msk [vmem:[#allocation2 + $0xc4] sm:$0xf] %vm1079_vm7, %v1558_v46  ;;  %1721 = vst [vmem:[#allocation2 + $0xc8] sm:$0x1] %v1720_v48  ;;  %v1958_v30 = vsel %vm8358_vm10, %v1953_v39, %v1957_v26  ;;  %v1962_v50 = vor.u32 %v1961_v20, %v1957_v26  ;;  %v1965_v42 = vshll.u32 %v1765_v36, 16  ;;  %v1970_v51 = vshrl.u32 %v1738_v34, 16 }
 0x164   : > { %v1541_v52 = vsel %vm8433_vm14, %v1533_v33, %v1540_v49  ;;  %v1713_v29 = vsel %vm8287_vm4, %v1542_v38, %v1712_v21  ;;  %v1973_v53 = vshll.u32 %v1738_v34, 16  ;;  %v1979_v58 = vshll.u32 %v1739_v41, 16  ;;  %v1767_v11 = vld [vmem:[#allocation2 + $0x74] sm:$0x1]  ;;  %v3579_v21 = vld [vmem:[#allocation2 + $0x18] sm:$0xf] }
 0x165   : > { %1711 = vst.msk [vmem:[#allocation2 + $0xb8] sm:$0xf] %vm1079_vm7, %v1541_v52  ;;  %1714 = vst [vmem:[#allocation2 + $0xbc] sm:$0x1] %v1713_v29  ;;  %v1963_v56 = vrot.slane %v1962_v50, 4  ;;  %v1967_v59 = vrot.slane %v1965_v42, 5 }
 0x166   : > { %v1972_v37 = vrot.slane %v1970_v51, 4  ;;  %v1983_v61 = vshrl.u32 %v1739_v41, 16  ;;  %v1975_v54 = vrot.slane %v1973_v53, 5  ;;  %v1981_v5 = vrot.slane %v1979_v58, 5  ;;  %v8746_v36 = vld [vmem:[#allocation2 + $0x1c] sm:$0xf] }
 0x167   : > { %v1989_v0 = vshll.u32 %v1766_v44, 16  ;;  %v3625_v43 = vshrl.u32 %v3576_v45, 16  ;;  %v1968_v24 = vsel %vm8358_vm10, %v1963_v56, %v1967_v59  ;;  %v3628_v6 = vshll.u32 %v3576_v45, 16  ;;  %v8750_v44 = vld [vmem:[#allocation2 + $0x20] sm:$0x1] }
 0x168   : > { %v1985_v3 = vrot.slane %v1983_v61, 4  ;;  %v3634_v8 = vshll.u32 %v3577_v47, 16  ;;  %v6726_v9 = vcombine.low %v1958_v30, %v1968_v24  ;;  %v1976_v13 = vor.u32 %v1975_v54, %v1972_v37  ;;  %v8755_v48 = vld [vmem:[%s10341_s4 + $0x20] sm:$0xff]   ;;  %v8759_v42 = vld [vmem:[#allocation2 + $0x78] sm:$0xf] }
 0x169   : > { %v1991_v7 = vrot.slane %v1989_v0, 5  ;;  %v3627_v16 = vrot.slane %v3625_v43, 4  ;;  %v3630_v22 = vrot.slane %v3628_v6, 5  ;;  %v3638_v28 = vshrl.u32 %v3577_v47, 16  ;;  %v8764_v58 = vld [vmem:[#allocation2 + $0x7c] sm:$0xf]  ;;  %7487 = vmatprep.subr.bf16.mxu1 %v8755_v48 }
 0x16a   : > { %v1986_v17 = vor.u32 %v1985_v3, %v1981_v5  ;;  %v3636_v23 = vrot.slane %v3634_v8, 5  ;;  %7432 = vmatmul.mubr.msk.bf16.gmra.mrb[76].mxu1 %vm2226_vm11, %v6726_v9  ;;  %v1977_v25 = vrot.slane %v1976_v13, 4  ;;  %v3644_v14 = vshll.u32 %v3578_v27, 16  ;;  %v1768_v43 = vld [vmem:[#allocation2 + $0x80] sm:$0x1] }
 0x16b   : > { %v1994_v60 = vshrl.u32 %v1740_v62, 16  ;;  %v1997_v31 = vshll.u32 %v1740_v62, 16  ;;  %v3631_v4 = vor.u32 %v3630_v22, %v3627_v16  ;;  %v3640_v15 = vrot.slane %v3638_v28, 4  ;;  %v8779_v28 = vld [vmem:[#allocation2 + $0x2c] sm:$0x1] }
 0x16c   : > { %v1987_v2 = vrot.slane %v1986_v17, 4  ;;  %v2003_v10 = vshll.u32 %v1741_v1, 16  ;;  %v1982_v32 = vsel %vm8358_vm10, %v1977_v25, %v1981_v5  ;;  %v3646_v55 = vrot.slane %v3644_v14, 5  ;;  %v3582_v5 = vld [vmem:[#allocation2 + $0x24] sm:$0xf] }
 0x16d   : > { %v1996_v19 = vrot.slane %v1994_v60, 4  ;;  %v1999_v33 = vrot.slane %v1997_v31, 5  ;;  %v3632_v63 = vrot.slane %v3631_v4, 4  ;;  %v3641_v35 = vor.u32 %v3640_v15, %v3636_v23 }
 0x16e   : > { %v1992_v34 = vsel %vm8358_vm10, %v1987_v2, %v1991_v7  ;;  %v2005_v12 = vrot.slane %v2003_v10, 5  ;;  %v2007_v40 = vshrl.u32 %v1741_v1, 16  ;;  %v2013_v26 = vshll.u32 %v1767_v11, 16  ;;  %v8775_v7 = vld [vmem:[#allocation2 + $0x28] sm:$0xf] }
 0x16f   : > { %v6727_v39 = vcombine.low %v1982_v32, %v1992_v34  ;;  %v2000_v57 = vor.u32 %v1999_v33, %v1996_v19  ;;  %v3637_v20 = vsel %vm8358_vm10, %v3632_v63, %v3636_v23  ;;  %v3642_v41 = vrot.slane %v3641_v35, 4  ;;  %v8783_v2 = vld [vmem:[#allocation2 + $0x84] sm:$0xf] }
 0x170   : > { %v3649_v45 = vshrl.u32 %v3579_v21, 16  ;;  %v3652_v46 = vshll.u32 %v3579_v21, 16  ;;  %v2009_v38 = vrot.slane %v2007_v40, 4  ;;  %v2015_v30 = vrot.slane %v2013_v26, 5 }
 0x171   : > { %7435 = vmatprep.mubr.msk.bf16.mxu1 %vm2226_vm11, %v6727_v39  ;;  %v2001_v49 = vrot.slane %v2000_v57, 4  ;;  %v3658_v50 = vshll.u32 %v8746_v36, 16  ;;  %v3647_v51 = vsel %vm8358_vm10, %v3642_v41, %v3646_v55  ;;  %v3662_v53 = vshrl.u32 %v8746_v36, 16 }
 0x172   : > { %v3651_v52 = vrot.slane %v3649_v45, 4  ;;  %v3654_v29 = vrot.slane %v3652_v46, 5  ;;  %v6883_v47 = vcombine.low %v3637_v20, %v3647_v51  ;;  %v2010_v59 = vor.u32 %v2009_v38, %v2005_v12  ;;  %v8794_v20 = vld [vmem:[#allocation2 + $0x88] sm:$0xf]  ;;  %v1769_v46 = vld [vmem:[#allocation2 + $0x8c] sm:$0x1] }
 0x173   : > { %v2006_v56 = vsel %vm8358_vm10, %v2001_v49, %v2005_v12  ;;  %v3660_v37 = vrot.slane %v3658_v50, 5  ;;  %v3664_v27 = vrot.slane %v3662_v53, 4  ;;  %v3668_v62 = vshll.u32 %v8750_v44, 16  ;;  %v8051_v12 = vld [vmem:[%s10341_s4 + $0x58] sm:$0xff]   ;;  %v8093_v50 = vld [vmem:[%s10341_s4 + $0x50] sm:$0xff]  }
 0x174   : > { %v3655_v61 = vor.u32 %v3654_v29, %v3651_v52  ;;  %v2018_v54 = vshrl.u32 %v8759_v42, 16  ;;  %7563 = vmatprep.mubr.msk.bf16.mxu0 %vm2226_vm11, %v6883_v47  ;;  %v2011_v0 = vrot.slane %v2010_v59, 4  ;;  %v2021_v1 = vshll.u32 %v8759_v42, 16  ;;  %v8809_v47 = vld [vmem:[%s10341_s4 + $0x60] sm:$0xff]  }
 0x175   : > { %v2027_v24 = vshll.u32 %v8764_v58, 16  ;;  %v2031_v3 = vshrl.u32 %v8764_v58, 16  ;;  %v3665_v8 = vor.u32 %v3664_v27, %v3660_v37  ;;  %v3670_v9 = vrot.slane %v3668_v62, 5  ;;  %v8813_v27 = vld [vmem:[#allocation2 + $0x34] sm:$0xf] }
 0x176   : > { %v3656_v6 = vrot.slane %v3655_v61, 4  ;;  %v2020_v13 = vrot.slane %v2018_v54, 4  ;;  %v2016_v16 = vsel %vm8358_vm10, %v2011_v0, %v2015_v30  ;;  %v2023_v17 = vrot.slane %v2021_v1, 5  ;;  %v3585_v30 = vld [vmem:[#allocation2 + $0x30] sm:$0xf] }
 0x177   : > { %v2029_v22 = vrot.slane %v2027_v24, 5  ;;  %v2033_v23 = vrot.slane %v2031_v3, 4  ;;  %v6728_v25 = vcombine.low %v2006_v56, %v2016_v16  ;;  %v3666_v60 = vrot.slane %v3665_v8, 4  ;;  %v8815_v62 = vld [vmem:[#allocation2 + $0x38] sm:$0x1] }
 0x178   : > { %v3661_v14 = vsel %vm8358_vm10, %v3656_v6, %v3660_v37  ;;  %v2037_v31 = vshll.u32 %v1768_v43, 16  ;;  %v2024_v4 = vor.u32 %v2023_v17, %v2020_v13  ;;  %v3673_v11 = vshrl.u32 %v3582_v5, 16  ;;  %v3588_v54 = vld [vmem:[#allocation2 + $0x3c] sm:$0xf] }
 0x179   : > { %v2034_v15 = vor.u32 %v2033_v23, %v2029_v22  ;;  %v3676_v10 = vshll.u32 %v3582_v5, 16  ;;  %7436 = vmatmul.mubr.msk.bf16.gmra.mrb[80].mxu1 %vm2226_vm11, %v6728_v25  ;;  %v3671_v32 = vsel %vm8358_vm10, %v3666_v60, %v3670_v9  ;;  %v3682_v19 = vshll.u32 %v8775_v7, 16 }
 0x17a   : > { %v2039_v55 = vrot.slane %v2037_v31, 5  ;;  %v3686_v33 = vshrl.u32 %v8775_v7, 16  ;;  %v6884_v21 = vcombine.low %v3661_v14, %v3671_v32  ;;  %v2025_v34 = vrot.slane %v2024_v4, 4 }
 0x17b   : > { %v2035_v63 = vrot.slane %v2034_v15, 4  ;;  %v3675_v35 = vrot.slane %v3673_v11, 4  ;;  %v3678_v39 = vrot.slane %v3676_v10, 5  ;;  %v3684_v57 = vrot.slane %v3682_v19, 5  ;;  %v8826_v15 = vld [vmem:[#allocation2 + $0x40] sm:$0xf] }
 0x17c   : > { %v3688_v40 = vrot.slane %v3686_v33, 4  ;;  %v3692_v26 = vshll.u32 %v8779_v28, 16  ;;  %7564 = vmatmul.mubr.msk.bf16.vlgmr.msra.gmra.mrb[0].mxu0 %vm2226_vm11, %v6884_v21  ;;  %v2030_v41 = vsel %vm8358_vm10, %v2025_v34, %v2029_v22  ;;  %v2042_v49 = vshrl.u32 %v8783_v2, 16  ;;  %v8831_v19 = vld [vmem:[#allocation2 + $0x44] sm:$0x1] }
 0x17d   : > { %v2040_v45 = vsel %vm8358_vm10, %v2035_v63, %v2039_v55  ;;  %v2045_v38 = vshll.u32 %v8783_v2, 16  ;;  %7596 = vmatpush3.bf16.msra.mxu0 %v8093_v50  ;;  %v3679_v52 = vor.u32 %v3678_v39, %v3675_v35  ;;  %v2051_v37 = vshll.u32 %v8794_v20, 16 }
 0x17e   : > { %v6729_v51 = vcombine.low %v2030_v41, %v2040_v45  ;;  %v3689_v29 = vor.u32 %v3688_v40, %v3684_v57  ;;  %v3694_v53 = vrot.slane %v3692_v26, 5  ;;  %v2044_v56 = vrot.slane %v2042_v49, 4  ;;  %7597 = vmatprep.subr.bf16.mxu0 %v8051_v12 }
 0x17f   : > { %v2047_v59 = vrot.slane %v2045_v38, 5  ;;  %v2055_v61 = vshrl.u32 %v8794_v20, 16  ;;  %v3680_v5 = vrot.slane %v3679_v52, 4  ;;  %v2061_v43 = vshll.u32 %v1769_v46, 16  ;;  %v8840_v38 = vld [vmem:[#allocation2 + $0x94] sm:$0xf] }
 0x180   : > { %7439 = vmatprep.mubr.msk.bf16.mxu1 %vm2226_vm11, %v6729_v51  ;;  %v3690_v0 = vrot.slane %v3689_v29, 4  ;;  %v3697_v1 = vshrl.u32 %v3585_v30, 16  ;;  %v2053_v3 = vrot.slane %v2051_v37, 5  ;;  %v3700_v8 = vshll.u32 %v3585_v30, 16  ;;  %v1770_v52 = vld [vmem:[#allocation2 + $0x98] sm:$0x1] }
 0x181   : > { %v2048_v24 = vor.u32 %v2047_v59, %v2044_v56  ;;  %v2057_v6 = vrot.slane %v2055_v61, 4  ;;  %v3685_v9 = vsel %vm8358_vm10, %v3680_v5, %v3684_v57  ;;  %v2063_v16 = vrot.slane %v2061_v43, 5  ;;  %7598 = vmatpush3.bf16.msra.mxu0 %v8051_v12  ;;  %v8833_v12 = vld [vmem:[#allocation2 + $0x90] sm:$0xf]  ;;  %v8849_v43 = vld [vmem:[#allocation2 + $0x9c] sm:$0xf] }
 0x182   : > { %v3695_v13 = vsel %vm8358_vm10, %v3690_v0, %v3694_v53  ;;  %v3699_v17 = vrot.slane %v3697_v1, 4  ;;  %v3702_v14 = vrot.slane %v3700_v8, 5  ;;  %7631 = vmatprep.subr.bf16.mxu0 %v8809_v47  ;;  %v3706_v60 = vshll.u32 %v8813_v27, 16  ;;  %v8853_v8 = vld [vmem:[#allocation2 + $0xa0] sm:$0xf] }
 0x183   : > { %v6885_v22 = vcombine.low %v3685_v9, %v3695_v13  ;;  %v2049_v23 = vrot.slane %v2048_v24, 4  ;;  %v2058_v25 = vor.u32 %v2057_v6, %v2053_v3  ;;  %v3710_v31 = vshrl.u32 %v8813_v27, 16 }
 0x184   : > { %v3716_v4 = vshll.u32 %v8815_v62, 16  ;;  %v3721_v11 = vshrl.u32 %v3588_v54, 16  ;;  %v3703_v55 = vor.u32 %v3702_v14, %v3699_v17  ;;  %v3724_v33 = vshll.u32 %v3588_v54, 16 }
 0x185   : > { %7567 = vmatprep.mubr.msk.bf16.mxu0 %vm2226_vm11, %v6885_v22  ;;  %v2054_v10 = vsel %vm8358_vm10, %v2049_v23, %v2053_v3  ;;  %v2059_v32 = vrot.slane %v2058_v25, 4  ;;  %v3708_v21 = vrot.slane %v3706_v60, 5  ;;  %v3712_v34 = vrot.slane %v3710_v31, 4  ;;  %v1771_v22 = vld [vmem:[#allocation2 + $0xa4] sm:$0x1] }
 0x186   : > { %v3718_v63 = vrot.slane %v3716_v4, 5  ;;  %v3723_v35 = vrot.slane %v3721_v11, 4  ;;  %v3704_v57 = vrot.slane %v3703_v55, 4  ;;  %v3726_v40 = vrot.slane %v3724_v33, 5 }
 0x187   : > { %v2064_v39 = vsel %vm8358_vm10, %v2059_v32, %v2063_v16  ;;  %v3730_v26 = vshll.u32 %v8826_v15, 16  ;;  %v3713_v45 = vor.u32 %v3712_v34, %v3708_v21  ;;  %v3734_v46 = vshrl.u32 %v8826_v15, 16  ;;  %v3591_v32 = vld [vmem:[#allocation2 + $0x48] sm:$0xf] }
 0x188   : > { %v6730_v41 = vcombine.low %v2054_v10, %v2064_v39  ;;  %v3740_v49 = vshll.u32 %v8831_v19, 16  ;;  %v3709_v30 = vsel %vm8358_vm10, %v3704_v57, %v3708_v21  ;;  %v3727_v50 = vor.u32 %v3726_v40, %v3723_v35 }
 0x189   : > { %v3732_v51 = vrot.slane %v3730_v26, 5  ;;  %v2066_v29 = vshrl.u32 %v8833_v12, 16  ;;  %v3714_v53 = vrot.slane %v3713_v45, 4  ;;  %v3736_v56 = vrot.slane %v3734_v46, 4  ;;  %v8868_v46 = vld [vmem:[#allocation2 + $0x50] sm:$0x1] }
 0x18a   : > { %7440 = vmatmul.mubr.msk.bf16.gmra.mrb[84].mxu1 %vm2226_vm11, %v6730_v41  ;;  %v3742_v59 = vrot.slane %v3740_v49, 5  ;;  %v2069_v37 = vshll.u32 %v8833_v12, 16  ;;  %v3728_v61 = vrot.slane %v3727_v50, 4  ;;  %v2075_v5 = vshll.u32 %v8840_v38, 16 }
 0x18b   : > { %v2068_v54 = vrot.slane %v2066_v29, 4  ;;  %v2079_v0 = vshrl.u32 %v8840_v38, 16  ;;  %v3719_v1 = vsel %vm8358_vm10, %v3714_v53, %v3718_v63  ;;  %v3737_v24 = vor.u32 %v3736_v56, %v3732_v51  ;;  %v8864_v63 = vld [vmem:[#allocation2 + $0x4c] sm:$0xf]  ;;  %v3594_v29 = vld [vmem:[#allocation2 + $0x54] sm:$0xf] }
 0x18c   : > { %v2071_v3 = vrot.slane %v2069_v37, 5  ;;  %v2085_v6 = vshll.u32 %v1770_v52, 16  ;;  %v6886_v9 = vcombine.low %v3709_v30, %v3719_v1  ;;  %v3733_v13 = vsel %vm8358_vm10, %v3728_v61, %v3732_v51  ;;  %v8875_v61 = vld [vmem:[#allocation2 + $0x58] sm:$0xf] }
 0x18d   : > { %v2077_v16 = vrot.slane %v2075_v5, 5  ;;  %v2081_v17 = vrot.slane %v2079_v0, 4  ;;  %v3738_v23 = vrot.slane %v3737_v24, 4  ;;  %v2090_v60 = vshrl.u32 %v8849_v43, 16 }
 0x18e   : > { %v2072_v25 = vor.u32 %v2071_v3, %v2068_v54  ;;  %v2087_v14 = vrot.slane %v2085_v6, 5  ;;  %7568 = vmatmul.mubr.msk.bf16.gmra.mrb[4].mxu0 %vm2226_vm11, %v6886_v9  ;;  %v2093_v4 = vshll.u32 %v8849_v43, 16  ;;  %v2099_v11 = vshll.u32 %v8853_v8, 16 }
 0x18f   : > { %v2082_v31 = vor.u32 %v2081_v17, %v2077_v16  ;;  %v2103_v10 = vshrl.u32 %v8853_v8, 16  ;;  %v3743_v55 = vsel %vm8358_vm10, %v3738_v23, %v3742_v59  ;;  %v2092_v21 = vrot.slane %v2090_v60, 4 }
 0x190   : > { %v2073_v33 = vrot.slane %v2072_v25, 4  ;;  %v2109_v34 = vshll.u32 %v1771_v22, 16  ;;  %v6887_v35 = vcombine.low %v3733_v13, %v3743_v55  ;;  %v2095_v57 = vrot.slane %v2093_v4, 5  ;;  %v8881_v22 = vld [vmem:[#allocation2 + $0x5c] sm:$0x1] }
 0x191   : > { %v2083_v39 = vrot.slane %v2082_v31, 4  ;;  %v2101_v40 = vrot.slane %v2099_v11, 5  ;;  %v2105_v41 = vrot.slane %v2103_v10, 4  ;;  %v3745_v49 = vshrl.u32 %v3591_v32, 16  ;;  %v8884_v25 = vld [vmem:[#allocation2 + $0xa8] sm:$0xf] }
 0x192   : > { %v2078_v26 = vsel %vm8358_vm10, %v2073_v33, %v2077_v16  ;;  %v2111_v45 = vrot.slane %v2109_v34, 5  ;;  %7571 = vmatprep.mubr.msk.bf16.mxu0 %vm2226_vm11, %v6887_v35  ;;  %v2096_v50 = vor.u32 %v2095_v57, %v2092_v21  ;;  %v3748_v51 = vshll.u32 %v3591_v32, 16  ;;  %v8888_v11 = vld [vmem:[#allocation2 + $0xac] sm:$0xf] }
 0x193   : > { %v2088_v30 = vsel %vm8358_vm10, %v2083_v39, %v2087_v14  ;;  %v3754_v52 = vshll.u32 %v8864_v63, 16  ;;  %v2106_v56 = vor.u32 %v2105_v41, %v2101_v40  ;;  %v3747_v59 = vrot.slane %v3745_v49, 4  ;;  %v1772_v39 = vld [vmem:[#allocation2 + $0xb0] sm:$0x1]  ;;  %v8898_v49 = vld [vmem:[#allocation2 + $0xb4] sm:$0xf] }
 0x194   : > { %v6731_v53 = vcombine.low %v2078_v26, %v2088_v30  ;;  %v3758_v37 = vshrl.u32 %v8864_v63, 16  ;;  %v2097_v54 = vrot.slane %v2096_v50, 4  ;;  %v3750_v5 = vrot.slane %v3748_v51, 5  ;;  %10379 = vst [vmem:[#allocation3_spill] sm:$0xff] %v8898_v49 }
 0x195   : > { %v3756_v0 = vrot.slane %v3754_v52, 5  ;;  %v3764_v1 = vshll.u32 %v8868_v46, 16  ;;  %v2107_v24 = vrot.slane %v2106_v56, 4  ;;  %v3769_v6 = vshrl.u32 %v3594_v29, 16 }
 0x196   : > { %7443 = vmatprep.mubr.msk.bf16.mxu1 %vm2226_vm11, %v6731_v53  ;;  %v3760_v3 = vrot.slane %v3758_v37, 4  ;;  %v3772_v9 = vshll.u32 %v3594_v29, 16  ;;  %v2102_v13 = vsel %vm8358_vm10, %v2097_v54, %v2101_v40  ;;  %v3751_v16 = vor.u32 %v3750_v5, %v3747_v59  ;;  %v8902_v29 = vld [vmem:[#allocation2 + $0xb8] sm:$0xf] }
 0x197   : > { %v3766_v17 = vrot.slane %v3764_v1, 5  ;;  %v3778_v23 = vshll.u32 %v8875_v61, 16  ;;  %v2112_v14 = vsel %vm8358_vm10, %v2107_v24, %v2111_v45  ;;  %v3771_v31 = vrot.slane %v3769_v6, 4  ;;  %10380 = vst [vmem:[#allocation4_spill] sm:$0xff] %v8902_v29  ;;  %v1773_v6 = vld [vmem:[#allocation2 + $0xbc] sm:$0x1] }
 0x198   : > { %v3761_v60 = vor.u32 %v3760_v3, %v3756_v0  ;;  %v3774_v4 = vrot.slane %v3772_v9, 5  ;;  %v6732_v10 = vcombine.low %v2102_v13, %v2112_v14  ;;  %v3752_v32 = vrot.slane %v3751_v16, 4 }
 0x199   : > { %v3780_v55 = vrot.slane %v3778_v23, 5  ;;  %v3782_v33 = vshrl.u32 %v8875_v61, 16  ;;  %v3788_v35 = vshll.u32 %v8881_v22, 16  ;;  %v2114_v57 = vshrl.u32 %v8884_v25, 16 }
 0x19a   : > { %v3762_v21 = vrot.slane %v3761_v60, 4  ;;  %v3775_v34 = vor.u32 %v3774_v4, %v3771_v31  ;;  %7444 = vmatmul.mubr.msk.bf16.gmra.mrb[88].mxu1 %vm2226_vm11, %v6732_v10  ;;  %v3757_v40 = vsel %vm8358_vm10, %v3752_v32, %v3756_v0  ;;  %v2117_v41 = vshll.u32 %v8884_v25, 16  ;;  %v3597_v60 = vld [vmem:[#allocation2 + $0x60] sm:$0xf] }
 0x19b   : > { %v3784_v26 = vrot.slane %v3782_v33, 4  ;;  %v2123_v45 = vshll.u32 %v8888_v11, 16  ;;  %v3790_v51 = vrot.slane %v3788_v35, 5  ;;  %v2116_v52 = vrot.slane %v2114_v57, 4 }
 0x19c   : > { %v3767_v30 = vsel %vm8358_vm10, %v3762_v21, %v3766_v17  ;;  %v3776_v50 = vrot.slane %v3775_v34, 4  ;;  %v2119_v59 = vrot.slane %v2117_v41, 5  ;;  %v2127_v5 = vshrl.u32 %v8888_v11, 16 }
 0x19d   : > { %v6888_v53 = vcombine.low %v3757_v40, %v3767_v30  ;;  %v3785_v56 = vor.u32 %v3784_v26, %v3780_v55  ;;  %v2125_v37 = vrot.slane %v2123_v45, 5  ;;  %v2133_v0 = vshll.u32 %v1772_v39, 16  ;;  %v8918_v40 = vld [vmem:[#allocation2 + $0x68] sm:$0x1] }
 0x19e   : > { %v3781_v54 = vsel %vm8358_vm10, %v3776_v50, %v3780_v55  ;;  %v2138_v1 = vshrl.u32 %v8898_v49, 16  ;;  %v2120_v3 = vor.u32 %v2119_v59, %v2116_v52  ;;  %v2141_v9 = vshll.u32 %v8898_v49, 16  ;;  %v8914_v55 = vld [vmem:[#allocation2 + $0x64] sm:$0xf] }
 0x19f   : > { %7572 = vmatmul.mubr.msk.bf16.gmra.mrb[8].mxu0 %vm2226_vm11, %v6888_v53  ;;  %v3786_v24 = vrot.slane %v3785_v56, 4  ;;  %v2147_v13 = vshll.u32 %v8902_v29, 16  ;;  %v2129_v16 = vrot.slane %v2127_v5, 4  ;;  %v2135_v17 = vrot.slane %v2133_v0, 5 }
 0x1a0   : > { %v2140_v23 = vrot.slane %v2138_v1, 4  ;;  %v2151_v14 = vshrl.u32 %v8902_v29, 16  ;;  %v2121_v4 = vrot.slane %v2120_v3, 4  ;;  %v2143_v10 = vrot.slane %v2141_v9, 5 }
 0x1a1   : > { %v3791_v31 = vsel %vm8358_vm10, %v3786_v24, %v3790_v51  ;;  %v2149_v32 = vrot.slane %v2147_v13, 5  ;;  %v2130_v21 = vor.u32 %v2129_v16, %v2125_v37  ;;  %v2157_v35 = vshll.u32 %v1773_v6, 16  ;;  %v8926_v24 = vld [vmem:[#allocation2 + $0x70] sm:$0xf]  ;;  %v8930_v16 = vld [vmem:[#allocation2 + $0x74] sm:$0x1] }
 0x1a2   : > { %v6889_v33 = vcombine.low %v3781_v54, %v3791_v31  ;;  %v2153_v34 = vrot.slane %v2151_v14, 4  ;;  %v2126_v39 = vsel %vm8358_vm10, %v2121_v4, %v2125_v37  ;;  %v2144_v57 = vor.u32 %v2143_v10, %v2140_v23  ;;  %v3600_v54 = vld [vmem:[#allocation2 + $0x6c] sm:$0xf] }
 0x1a3   : > { %v3793_v26 = vshrl.u32 %v3597_v60, 16  ;;  %v3796_v41 = vshll.u32 %v3597_v60, 16  ;;  %v2131_v45 = vrot.slane %v2130_v21, 4  ;;  %v2159_v50 = vrot.slane %v2157_v35, 5  ;;  %v3603_v21 = vld [vmem:[#allocation2 + $0x78] sm:$0xf] }
 0x1a4   : > { %7575 = vmatprep.mubr.msk.bf16.mxu0 %vm2226_vm11, %v6889_v33  ;;  %v2154_v30 = vor.u32 %v2153_v34, %v2149_v32  ;;  %v3802_v51 = vshll.u32 %v8914_v55, 16  ;;  %v2145_v52 = vrot.slane %v2144_v57, 4  ;;  %v3806_v59 = vshrl.u32 %v8914_v55, 16  ;;  %v8938_v57 = vld [vmem:[#allocation2 + $0x7c] sm:$0xf] }
 0x1a5   : > { %v3795_v53 = vrot.slane %v3793_v26, 4  ;;  %v3798_v56 = vrot.slane %v3796_v41, 5  ;;  %v2136_v37 = vsel %vm8358_vm10, %v2131_v45, %v2135_v17  ;;  %v3812_v1 = vshll.u32 %v8918_v40, 16 }
 0x1a6   : > { %v2155_v5 = vrot.slane %v2154_v30, 4  ;;  %v3804_v0 = vrot.slane %v3802_v51, 5  ;;  %v6733_v3 = vcombine.low %v2126_v39, %v2136_v37  ;;  %v2150_v6 = vsel %vm8358_vm10, %v2145_v52, %v2149_v32  ;;  %v8094_v30 = vld [vmem:[#allocation2] sm:$0xf] }
 0x1a7   : > { %v3799_v9 = vor.u32 %v3798_v56, %v3795_v53  ;;  %v3808_v13 = vrot.slane %v3806_v59, 4  ;;  %v3814_v14 = vrot.slane %v3812_v1, 5  ;;  %v3817_v60 = vshrl.u32 %v3600_v54, 16  ;;  %v8096_v59 = vld [vmem:[#allocation2 + $0xc] sm:$0xf] }
 0x1a8   : > { %v2160_v23 = vsel %vm8358_vm10, %v2155_v5, %v2159_v50  ;;  %v3820_v17 = vshll.u32 %v3600_v54, 16  ;;  %7447 = vmatprep.mubr.msk.bf16.mxu1 %vm2226_vm11, %v6733_v3  ;;  %v3826_v33 = vshll.u32 %v8926_v24, 16  ;;  %v3830_v35 = vshrl.u32 %v8926_v24, 16  ;;  %v8943_v50 = vld [vmem:[#allocation2 + $0x4] sm:$0xf] }
 0x1a9   : > { %v6734_v31 = vcombine.low %v2150_v6, %v2160_v23  ;;  %v3800_v4 = vrot.slane %v3799_v9, 4  ;;  %v3809_v10 = vor.u32 %v3808_v13, %v3804_v0  ;;  %v3819_v34 = vrot.slane %v3817_v60, 4  ;;  %v8946_v54 = vld [vmem:[#allocation2 + $0x10] sm:$0xf]  ;;  %v8949_v5 = vld [vmem:[#allocation2 + $0x80] sm:$0x1] }
 0x1aa   : > { %v3822_v32 = vrot.slane %v3820_v17, 5  ;;  %v3836_v39 = vshll.u32 %v8930_v16, 16  ;;  %v3828_v45 = vrot.slane %v3826_v33, 5  ;;  %v6753_v51 = vcombine.low %v8094_v30, %v8943_v50  ;;  %v3606_v17 = vld [vmem:[#allocation2 + $0x84] sm:$0xf] }
 0x1ab   : > { %7448 = vmatmul.mubr.msk.bf16.gmra.mrb[92].mxu1 %vm2226_vm11, %v6734_v31  ;;  %v3805_v26 = vsel %vm8358_vm10, %v3800_v4, %v3804_v0  ;;  %v3810_v41 = vrot.slane %v3809_v10, 4  ;;  %v3832_v53 = vrot.slane %v3830_v35, 4  ;;  %v6754_v37 = vcombine.low %v8096_v59, %v8946_v54  ;;  %v8098_v35 = vld [vmem:[#allocation2 + $0x18] sm:$0xf]  ;;  %v8063_v59 = vld [vmem:[%s10341_s4 + $0x28] sm:$0xff]  }
 0x1ac   : > { %v3823_v52 = vor.u32 %v3822_v32, %v3819_v34  ;;  %v3838_v56 = vrot.slane %v3836_v39, 5  ;;  %7455 = vmatprep.mubr.msk.bf16.mxu1 %vm2226_vm11, %v6753_v51  ;;  %v3841_v1 = vshrl.u32 %v3603_v21, 16  ;;  %v3844_v3 = vshll.u32 %v3603_v21, 16  ;;  %v8957_v34 = vld [vmem:[#allocation2 + $0x88] sm:$0xf] }
 0x1ad   : > { %v3815_v0 = vsel %vm8358_vm10, %v3810_v41, %v3814_v14  ;;  %v3850_v6 = vshll.u32 %v8938_v57, 16  ;;  %v3833_v23 = vor.u32 %v3832_v53, %v3828_v45  ;;  %v3854_v60 = vshrl.u32 %v8938_v57, 16  ;;  %v8962_v39 = vld [vmem:[#allocation2 + $0x1c] sm:$0xf]  ;;  %v8965_v51 = vld [vmem:[#allocation2 + $0x8c] sm:$0x1] }
 0x1ae   : > { %v6890_v9 = vcombine.low %v3805_v26, %v3815_v0  ;;  %v3824_v13 = vrot.slane %v3823_v52, 4  ;;  %v3843_v31 = vrot.slane %v3841_v1, 4  ;;  %v3846_v4 = vrot.slane %v3844_v3, 5 }
 0x1af   : > { %v3852_v10 = vrot.slane %v3850_v6, 5  ;;  %v3860_v33 = vshll.u32 %v8949_v5, 16  ;;  %v3834_v21 = vrot.slane %v3833_v23, 4  ;;  %v3856_v32 = vrot.slane %v3854_v60, 4  ;;  %v3609_v6 = vld [vmem:[#allocation2 + $0x90] sm:$0xf] }
 0x1b0   : > { %7576 = vmatmul.mubr.msk.bf16.gmra.mrb[12].mxu0 %vm2226_vm11, %v6890_v9  ;;  %v3829_v14 = vsel %vm8358_vm10, %v3824_v13, %v3828_v45  ;;  %v6755_v26 = vcombine.low %v8098_v35, %v8962_v39  ;;  %v3847_v41 = vor.u32 %v3846_v4, %v3843_v31  ;;  %v3865_v52 = vshrl.u32 %v3606_v17, 16 }
 0x1b1   : > { %v3862_v30 = vrot.slane %v3860_v33, 5  ;;  %v3868_v53 = vshll.u32 %v3606_v17, 16  ;;  %v3839_v45 = vsel %vm8358_vm10, %v3834_v21, %v3838_v56  ;;  %v3857_v0 = vor.u32 %v3856_v32, %v3852_v10  ;;  %v8977_v56 = vld [vmem:[#allocation2 + $0x94] sm:$0xf]  ;;  %v8100_v21 = vld [vmem:[#allocation2 + $0x24] sm:$0xf] }
 0x1b2   : > { %v3874_v1 = vshll.u32 %v8957_v34, 16  ;;  %v3878_v3 = vshrl.u32 %v8957_v34, 16  ;;  %v6891_v9 = vcombine.low %v3829_v14, %v3839_v45  ;;  %v3848_v13 = vrot.slane %v3847_v41, 4  ;;  %10381 = vst [vmem:[#allocation5_spill] sm:$0xff] %v8977_v56  ;;  %v8983_v32 = vld [vmem:[#allocation2 + $0x28] sm:$0xf] }
 0x1b3   : > { %7456 = vmatmul.mubr.msk.bf16.vlgmr.msra.gmra.mrb[64].mxu1 %vm2226_vm11, %v6754_v37  ;;  %v3867_v23 = vrot.slane %v3865_v52, 4  ;;  %v3870_v60 = vrot.slane %v3868_v53, 5  ;;  %v3858_v17 = vrot.slane %v3857_v0, 4  ;;  %v3884_v33 = vshll.u32 %v8965_v51, 16  ;;  %10382 = vst [vmem:[#allocation6_spill] sm:$0xff] %v8983_v32 }
 0x1b4   : > { %7459 = vmatprep.mubr.msk.bf16.mxu1 %vm2226_vm11, %v6755_v26  ;;  %v3876_v31 = vrot.slane %v3874_v1, 5  ;;  %v3880_v4 = vrot.slane %v3878_v3, 4  ;;  %7488 = vmatpush3.bf16.msra.mxu1 %v8755_v48  ;;  %v3853_v14 = vsel %vm8358_vm10, %v3848_v13, %v3852_v10  ;;  %v6756_v35 = vcombine.low %v8100_v21, %v8983_v32  ;;  %v8986_v26 = vld [vmem:[#allocation2 + $0x98] sm:$0x1]  ;;  %v3612_v0 = vld [vmem:[#allocation2 + $0x9c] sm:$0xf] }
 0x1b5   : > { %7579 = vmatprep.mubr.msk.bf16.mxu0 %vm2226_vm11, %v6891_v9  ;;  %v3871_v37 = vor.u32 %v3870_v60, %v3867_v23  ;;  %10383 = vst [vmem:[#allocation7_spill] sm:$0xff] %v8986_v26  ;;  %v3889_v41 = vshrl.u32 %v3609_v6, 16  ;;  %7489 = vmatprep.subr.bf16.mxu1 %v8063_v59  ;;  %v3863_v52 = vsel %vm8358_vm10, %v3858_v17, %v3862_v30  ;;  %v3886_v48 = vrot.slane %v3884_v33, 5  ;;  %v8993_v32 = vld [vmem:[#allocation2 + $0xa0] sm:$0xf] }
 0x1b6   : > { %v3881_v53 = vor.u32 %v3880_v4, %v3876_v31  ;;  %v3892_v45 = vshll.u32 %v3609_v6, 16  ;;  %v6892_v1 = vcombine.low %v3853_v14, %v3863_v52  ;;  %v3898_v9 = vshll.u32 %v8977_v56, 16  ;;  %10384 = vst [vmem:[#allocation8_spill] sm:$0xff] %v8993_v32  ;;  %v8102_v17 = vld [vmem:[#allocation2 + $0x30] sm:$0xf] }
 0x1b7   : > { %v3872_v3 = vrot.slane %v3871_v37, 4  ;;  %v3891_v10 = vrot.slane %v3889_v41, 4  ;;  %v3902_v60 = vshrl.u32 %v8977_v56, 16  ;;  %v3908_v21 = vshll.u32 %v8986_v26, 16  ;;  %v8998_v4 = vld [vmem:[#allocation2 + $0x34] sm:$0xf] }
 0x1b8   : > { %v3882_v13 = vrot.slane %v3881_v53, 4  ;;  %v3894_v23 = vrot.slane %v3892_v45, 5  ;;  %7490 = vmatpush3.bf16.msra.mxu1 %v8063_v59  ;;  %7580 = vmatmul.mubr.msk.bf16.gmra.mrb[16].mxu0 %vm2226_vm11, %v6892_v1  ;;  %v3900_v6 = vrot.slane %v3898_v9, 5  ;;  %10385 = vst [vmem:[#allocation9_spill] sm:$0xff] %v8998_v4  ;;  %v6757_v33 = vcombine.low %v8102_v17, %v8998_v4  ;;  %v9001_v14 = vld [vmem:[#allocation2 + $0xa4] sm:$0x1] }
 0x1b9   : > { %v3877_v30 = vsel %vm8358_vm10, %v3872_v3, %v3876_v31  ;;  %10386 = vst [vmem:[#allocation10_spill] sm:$0xff] %v9001_v14  ;;  %v3913_v37 = vshrl.u32 %v3612_v0, 16  ;;  %v9006_v41 = vld [vmem:[%s10341_s4 + $0x30] sm:$0xff]   ;;  %v3904_v52 = vrot.slane %v3902_v60, 4  ;;  %v3910_v53 = vrot.slane %v3908_v21, 5 }
 0x1ba   : > { %10387 = vst [vmem:[#allocation11_spill] sm:$0xff] %v9006_v41  ;;  %7739 = vmatprep.subr.bf16.mxu1 %v9006_v41  ;;  %v3887_v59 = vsel %vm8358_vm10, %v3882_v13, %v3886_v48  ;;  %v3895_v31 = vor.u32 %v3894_v23, %v3891_v10  ;;  %v3615_v45 = vld [vmem:[#allocation2 + $0xa8] sm:$0xf]  ;;  %v3916_v9 = vshll.u32 %v3612_v0, 16  ;;  %v3922_v17 = vshll.u32 %v8993_v32, 16 }
 0x1bb   : > { %v6893_v1 = vcombine.low %v3877_v30, %v3887_v59  ;;  %7460 = vmatmul.mubr.msk.bf16.gmra.mrb[68].mxu1 %vm2226_vm11, %v6756_v35  ;;  %v3915_v3 = vrot.slane %v3913_v37, 4  ;;  %v3905_v26 = vor.u32 %v3904_v52, %v3900_v6  ;;  %v3926_v41 = vshrl.u32 %v8993_v32, 16  ;;  %v9016_v48 = vld [vmem:[#allocation2 + $0xac] sm:$0xf]  ;;  %v8105_v23 = vld [vmem:[#allocation2 + $0x3c] sm:$0xf] }
 0x1bc   : > { %v3896_v4 = vrot.slane %v3895_v31, 4  ;;  %7463 = vmatprep.mubr.msk.bf16.mxu1 %vm2226_vm11, %v6757_v33  ;;  %v3932_v56 = vshll.u32 %v9001_v14, 16  ;;  %v3918_v10 = vrot.slane %v3916_v9, 5  ;;  %v3924_v13 = vrot.slane %v3922_v17, 5  ;;  %v9019_v35 = vld [vmem:[#allocation2 + $0x40] sm:$0xf] }
 0x1bd   : > { %7583 = vmatprep.mubr.msk.bf16.mxu0 %vm2226_vm11, %v6893_v1  ;;  %10388 = vst [vmem:[#allocation12_spill] sm:$0xff] %v9019_v35  ;;  %v6758_v0 = vcombine.low %v8105_v23, %v9019_v35  ;;  %v9022_v60 = vld [vmem:[#allocation2 + $0xb0] sm:$0x1]  ;;  %v3937_v21 = vshrl.u32 %v3615_v45, 16  ;;  %v3906_v33 = vrot.slane %v3905_v26, 4  ;;  %v3928_v37 = vrot.slane %v3926_v41, 4 }
 0x1be   : > { %v3901_v30 = vsel %vm8358_vm10, %v3896_v4, %v3900_v6  ;;  %v3934_v59 = vrot.slane %v3932_v56, 5  ;;  %v3919_v31 = vor.u32 %v3918_v10, %v3915_v3  ;;  %v3940_v14 = vshll.u32 %v3615_v45, 16  ;;  %v3618_v32 = vld [vmem:[#allocation2 + $0xb4] sm:$0xf]  ;;  %v9031_v4 = vld [vmem:[#allocation2 + $0xb8] sm:$0xf] }
 0x1bf   : > { %v3939_v52 = vrot.slane %v3937_v21, 4  ;;  %v3946_v1 = vshll.u32 %v9016_v48, 16  ;;  %v3911_v9 = vsel %vm8358_vm10, %v3906_v33, %v3910_v53  ;;  %v3929_v17 = vor.u32 %v3928_v37, %v3924_v13  ;;  %v8107_v3 = vld [vmem:[#allocation2 + $0x48] sm:$0xf]  ;;  %v9033_v10 = vld [vmem:[#allocation2 + $0x4c] sm:$0xf] }
 0x1c0   : > { %v3950_v23 = vshrl.u32 %v9016_v48, 16  ;;  %v3956_v35 = vshll.u32 %v9022_v60, 16  ;;  %v6894_v49 = vcombine.low %v3901_v30, %v3911_v9  ;;  %v3920_v29 = vrot.slane %v3919_v31, 4  ;;  %10389 = vst [vmem:[#allocation13_spill] sm:$0xff] %v9033_v10  ;;  %v3621_v9 = vld [vmem:[#allocation2 + $0xc0] sm:$0xf] }
 0x1c1   : > { %v3942_v6 = vrot.slane %v3940_v14, 5  ;;  %v3948_v26 = vrot.slane %v3946_v1, 5  ;;  %v3930_v56 = vrot.slane %v3929_v17, 4  ;;  %v6759_v53 = vcombine.low %v8107_v3, %v9033_v10  ;;  %v9040_v14 = vld [vmem:[#allocation2 + $0xbc] sm:$0x1] }
 0x1c2   : > { %v3952_v41 = vrot.slane %v3950_v23, 4  ;;  %v3958_v45 = vrot.slane %v3956_v35, 5  ;;  %7584 = vmatmul.mubr.msk.bf16.gmra.mrb[20].mxu0 %vm2226_vm11, %v6894_v49  ;;  %v3925_v21 = vsel %vm8358_vm10, %v3920_v29, %v3924_v13  ;;  %v3961_v33 = vshrl.u32 %v3618_v32, 16  ;;  %v9048_v3 = vld [vmem:[#allocation2 + $0xc4] sm:$0xf] }
 0x1c3   : > { %7464 = vmatmul.mubr.msk.bf16.gmra.mrb[72].mxu1 %vm2226_vm11, %v6758_v0  ;;  %v3943_v30 = vor.u32 %v3942_v6, %v3939_v52  ;;  %v3964_v37 = vshll.u32 %v3618_v32, 16  ;;  %v3935_v35 = vsel %vm8358_vm10, %v3930_v56, %v3934_v59  ;;  %v3970_v1 = vshll.u32 %v9031_v4, 16 }
 0x1c4   : > { %v3953_v31 = vor.u32 %v3952_v41, %v3948_v26  ;;  %7467 = vmatprep.mubr.msk.bf16.mxu1 %vm2226_vm11, %v6759_v53  ;;  %v3974_v49 = vshrl.u32 %v9031_v4, 16  ;;  %v6895_v17 = vcombine.low %v3925_v21, %v3935_v35  ;;  %v3963_v13 = vrot.slane %v3961_v33, 4  ;;  %v8109_v41 = vld [vmem:[#allocation2 + $0x54] sm:$0xf]  ;;  %v9053_v53 = vld [vmem:[#allocation2 + $0x58] sm:$0xf] }
 0x1c5   : > { %v3944_v29 = vrot.slane %v3943_v30, 4  ;;  %v3966_v0 = vrot.slane %v3964_v37, 5  ;;  %v3972_v23 = vrot.slane %v3970_v1, 5  ;;  %v3980_v32 = vshll.u32 %v9040_v14, 16  ;;  %10390 = vst [vmem:[#allocation14_spill] sm:$0xff] %v9053_v53 }
 0x1c6   : > { %v3954_v52 = vrot.slane %v3953_v31, 4  ;;  %v3976_v6 = vrot.slane %v3974_v49, 4  ;;  %7587 = vmatprep.mubr.msk.bf16.mxu0 %vm2226_vm11, %v6895_v17  ;;  %v6760_v21 = vcombine.low %v8109_v41, %v9053_v53  ;;  %v9056_v30 = vld [vmem:[#allocation2 + $0xc8] sm:$0x1]  ;;  %v3985_v33 = vshrl.u32 %v3621_v9, 16 }
 0x1c7   : > { %v3949_v59 = vsel %vm8358_vm10, %v3944_v29, %v3948_v26  ;;  %v3967_v56 = vor.u32 %v3966_v0, %v3963_v13  ;;  %v3982_v31 = vrot.slane %v3980_v32, 5  ;;  %v3988_v1 = vshll.u32 %v3621_v9, 16  ;;  %v8111_v9 = vld [vmem:[#allocation2 + $0x60] sm:$0xf] }
 0x1c8   : > { %v3959_v37 = vsel %vm8358_vm10, %v3954_v52, %v3958_v45  ;;  %v3977_v35 = vor.u32 %v3976_v6, %v3972_v23  ;;  %v3987_v10 = vrot.slane %v3985_v33, 4  ;;  %v3994_v26 = vshll.u32 %v9048_v3, 16  ;;  %v9067_v52 = vld [vmem:[#allocation2 + $0x64] sm:$0xf] }
 0x1c9   : > { %v6896_v49 = vcombine.low %v3949_v59, %v3959_v37  ;;  %v3968_v17 = vrot.slane %v3967_v56, 4  ;;  %v3990_v13 = vrot.slane %v3988_v1, 5  ;;  %v3998_v0 = vshrl.u32 %v9048_v3, 16  ;;  %v8113_v37 = vld [vmem:[#allocation2 + $0x10] sm:$0xf] }
 0x1ca   : > { %v3978_v29 = vrot.slane %v3977_v35, 4  ;;  %v4004_v41 = vshll.u32 %v9056_v30, 16  ;;  %v3996_v45 = vrot.slane %v3994_v26, 5  ;;  %v6761_v6 = vcombine.low %v8111_v9, %v9067_v52  ;;  %v8114_v26 = vld [vmem:[#allocation2 + $0x14] sm:$0x1] }
 0x1cb   : > { %7588 = vmatmul.mubr.msk.bf16.gmra.mrb[24].mxu0 %vm2226_vm11, %v6896_v49  ;;  %v3973_v53 = vsel %vm8358_vm10, %v3968_v17, %v3972_v23  ;;  %7468 = vmatmul.mubr.msk.bf16.gmra.mrb[76].mxu1 %vm2226_vm11, %v6760_v21  ;;  %v3991_v59 = vor.u32 %v3990_v13, %v3987_v10  ;;  %v4000_v56 = vrot.slane %v3998_v0, 4  ;;  %v4380_v23 = vrot.slane %v8113_v37, 5  ;;  %v4314_v49 = vld [vmem:[#allocation2 + $0xc] sm:$0xe] }
 0x1cc   : > { %v3983_v32 = vsel %vm8358_vm10, %v3978_v29, %v3982_v31  ;;  %7471 = vmatprep.mubr.msk.bf16.mxu1 %vm2226_vm11, %v6761_v6  ;;  %v4006_v1 = vrot.slane %v4004_v41, 5  ;;  %v4383_v9 = vrot.slane %v8114_v26, 5  ;;  %v4387_v31 = vrot.slane %v8746_v36, 5  ;;  %v8115_v41 = vld [vmem:[#allocation2 + $0x6c] sm:$0xf] }
 0x1cd   : > { %v6897_v33 = vcombine.low %v3973_v53, %v3983_v32  ;;  %v3992_v35 = vrot.slane %v3991_v59, 4  ;;  %v4001_v21 = vor.u32 %v4000_v56, %v3996_v45  ;;  %v4382_v17 = vrot.slane %v4380_v23, 4  ;;  %v9084_v6 = vld [vmem:[#allocation2 + $0x70] sm:$0xf]  ;;  %v4315_v59 = vld [vmem:[#allocation2 + $0x18] sm:$0xe] }
 0x1ce   : > { %v6917_v13 = vrot.slane %v4314_v49, 9  ;;  %v6762_v32 = vcombine.low %v8115_v41, %v9084_v6  ;;  %v6763_v56 = vcombine.low %v8759_v42, %v8764_v58  ;;  %v4390_v49 = vrot.slane %v8750_v44, 5 }
 0x1cf   : > { %7591 = vmatprep.mubr.msk.bf16.mxu0 %vm2226_vm11, %v6897_v33  ;;  %v3997_v10 = vsel %vm8358_vm10, %v3992_v35, %v3996_v45  ;;  %v4002_v53 = vrot.slane %v4001_v21, 4  ;;  %v4384_v0 = vsel %vm9078_vm1, %v4382_v17, %v4383_v9  ;;  %v4389_v45 = vrot.slane %v4387_v31, 4  ;;  %v4316_v17 = vld [vmem:[#allocation2 + $0x24] sm:$0xe] }
 0x1d0   : > { %v4394_v33 = vrot.slane %v8775_v7, 5  ;;  %v4381_v35 = vsel %vm9078_vm1, %v6917_v13, %v4380_v23  ;;  %v4401_v26 = vrot.slane %v8813_v27, 5  ;;  %v6918_v42 = vrot.slane %v4315_v59, 9  ;;  %v4317_v23 = vld [vmem:[#allocation2 + $0x30] sm:$0xe] }
 0x1d1   : > { %v4007_v36 = vsel %vm8358_vm10, %v4002_v53, %v4006_v1  ;;  %v6937_v21 = vcombine.low %v4381_v35, %v4384_v0  ;;  %v4391_v58 = vsel %vm9078_vm1, %v4389_v45, %v4390_v49  ;;  %v4397_v7 = vrot.slane %v8779_v28, 5  ;;  %v4318_v53 = vld [vmem:[#allocation2 + $0x3c] sm:$0xe]  ;;  %v9115_v59 = vld [vmem:[#allocation2 + $0x48] sm:$0xe] }
 0x1d2   : > { %v6898_v37 = vcombine.low %v3997_v10, %v4007_v36  ;;  %v4396_v1 = vrot.slane %v4394_v33, 4  ;;  %v4403_v9 = vrot.slane %v4401_v26, 4  ;;  %v4408_v44 = vrot.slane %v8826_v15, 5 }
 0x1d3   : > { %7472 = vmatmul.mubr.msk.bf16.gmra.mrb[80].mxu1 %vm2226_vm11, %v6762_v32  ;;  %v6919_v10 = vrot.slane %v4316_v17, 9  ;;  %v4388_v13 = vsel %vm9078_vm1, %v6918_v42, %v4387_v31  ;;  %v6764_v0 = vcombine.low %v8783_v2, %v8794_v20  ;;  %v4404_v41 = vrot.slane %v8815_v62, 5  ;;  %v4321_v20 = vld [vmem:[#allocation2 + $0x60] sm:$0xe] }
 0x1d4   : > { %7475 = vmatprep.mubr.msk.bf16.mxu1 %vm2226_vm11, %v6763_v56  ;;  %7592 = vmatmul.mubr.msk.bf16.gmra.mrb[28].mxu0 %vm2226_vm11, %v6898_v37  ;;  %v4398_v27 = vsel %vm9078_vm1, %v4396_v1, %v4397_v7  ;;  %v6938_v32 = vcombine.low %v4388_v13, %v4391_v58  ;;  %v6920_v36 = vrot.slane %v4317_v23, 9  ;;  %v6765_v15 = vcombine.low %v8833_v12, %v8840_v38  ;;  %v8064_v38 = vld [vmem:[%s10341_s4 + $0x68] sm:$0xff]   ;;  %v2737_v58 = vld [vmem:[#allocation2] sm:$0xe] }
 0x1d5   : > { %7599 = vmatprep.mubr.msk.bf16.mxu0 %vm2226_vm11, %v6937_v21  ;;  %v4395_v28 = vsel %vm9078_vm1, %v6919_v10, %v4394_v33  ;;  %v9119_v31 = vsel %vm9078_vm1, %v4403_v9, %v4404_v41  ;;  %v6921_v45 = vrot.slane %v4318_v53, 9  ;;  %v4410_v56 = vrot.slane %v4408_v44, 4  ;;  %v4322_v1 = vld [vmem:[#allocation2 + $0x6c] sm:$0xe]  ;;  %v9160_v10 = vld [vmem:[%s10341_s4 + $0x70] sm:$0xff]  }
 0x1d6   : > { %v4415_v2 = vrot.slane %v8864_v63, 5  ;;  %v6939_v62 = vcombine.low %v4395_v28, %v4398_v27  ;;  %v4402_v33 = vsel %vm9078_vm1, %v6920_v36, %v4401_v26  ;;  %v4411_v37 = vrot.slane %v8831_v19, 5  ;;  %v4323_v27 = vld [vmem:[#allocation2 + $0x78] sm:$0xe] }
 0x1d7   : > { %v4429_v12 = vrot.slane %v8914_v55, 5  ;;  %v4409_v35 = vsel %vm9078_vm1, %v6921_v45, %v4408_v44  ;;  %v6766_v21 = vcombine.low %v8849_v43, %v8853_v8  ;;  %v6922_v49 = vrot.slane %v9115_v59, 9 }
 0x1d8   : > { %v4418_v17 = vrot.slane %v8868_v46, 5  ;;  %v6940_v19 = vcombine.low %v4402_v33, %v9119_v31  ;;  %v6924_v55 = vrot.slane %v4321_v20, 9  ;;  %v4432_v42 = vrot.slane %v8918_v40, 5  ;;  %v4320_v46 = vld [vmem:[#allocation2 + $0x54] sm:$0xe] }
 0x1d9   : > { %v4431_v26 = vrot.slane %v4429_v12, 4  ;;  %v4412_v43 = vsel %vm9078_vm1, %v4410_v56, %v4411_v37  ;;  %v4417_v8 = vrot.slane %v4415_v2, 4  ;;  %v4422_v7 = vrot.slane %v8875_v61, 5  ;;  %v4324_v31 = vld [vmem:[#allocation2 + $0x84] sm:$0xe] }
 0x1da   : > { %v4436_v23 = vrot.slane %v8926_v24, 5  ;;  %v9150_v9 = vsel %vm9078_vm1, %v6924_v55, %v4429_v12  ;;  %v6925_v40 = vrot.slane %v4322_v1, 9  ;;  %v2790_v44 = vrot.slane %v8943_v50, 5  ;;  %v8117_v50 = vld [vmem:[#allocation2 + $0x8] sm:$0x1]  ;;  %v10393_v55 = vld [vmem:[#allocation4_spill] sm:$0xff] }
 0x1db   : > { %7476 = vmatmul.mubr.msk.bf16.gmra.mrb[84].mxu1 %vm2226_vm11, %v6764_v0  ;;  %v4439_v53 = vrot.slane %v8930_v16, 5  ;;  %v6787_v13 = vrot.slane %v2737_v58, 9  ;;  %v6767_v0 = vcombine.low %v8884_v25, %v8888_v11  ;;  %v6923_v41 = vrot.slane %v4320_v46, 9  ;;  %v4325_v1 = vld [vmem:[#allocation2 + $0x90] sm:$0xe]  ;;  %v10395_v46 = vld [vmem:[#allocation5_spill] sm:$0xff] }
 0x1dc   : > { %7479 = vmatprep.mubr.msk.bf16.mxu1 %vm2226_vm11, %v6765_v15  ;;  %7600 = vmatmul.mubr.msk.bf16.vlgmr.msra.gmra.mrb[0].mxu0 %vm2226_vm11, %v6938_v32  ;;  %v4438_v24 = vrot.slane %v4436_v23, 4  ;;  %v2792_v32 = vrot.slane %v2790_v44, 4  ;;  %v2793_v28 = vrot.slane %v8117_v50, 5  ;;  %v6941_v36 = vcombine.low %v4409_v35, %v4412_v43  ;;  %v2739_v43 = vld [vmem:[#allocation2 + $0x18] sm:$0xe] }
 0x1dd   : > { %7632 = vmatpush3.bf16.msra.mxu0 %v8809_v47  ;;  %7603 = vmatprep.mubr.msk.bf16.mxu0 %vm2226_vm11, %v6939_v62  ;;  %v9154_v47 = vsel %vm9078_vm1, %v4431_v26, %v4432_v42  ;;  %v9169_v15 = vsel %vm9078_vm1, %v6925_v40, %v4436_v23  ;;  %v4443_v16 = vrot.slane %v8938_v57, 5  ;;  %v4424_v25 = vrot.slane %v4422_v7, 4  ;;  %v10394_v26 = vld [vmem:[#allocation3_spill] sm:$0xff] }
 0x1de   : > { %7633 = vmatprep.subr.bf16.mxu0 %v8064_v38  ;;  %v6944_v61 = vcombine.low %v9150_v9, %v9154_v47  ;;  %v9173_v59 = vsel %vm9078_vm1, %v4438_v24, %v4439_v53  ;;  %v4425_v11 = vrot.slane %v8881_v22, 5  ;;  %v6926_v56 = vrot.slane %v4323_v27, 9  ;;  %v10396_v40 = vld [vmem:[#allocation7_spill] sm:$0xff]  ;;  %v10402_v47 = vld [vmem:[#allocation12_spill] sm:$0xff] }
 0x1df   : > { %v6945_v45 = vcombine.low %v9169_v15, %v9173_v59  ;;  %v4419_v20 = vsel %vm9078_vm1, %v4417_v8, %v4418_v17  ;;  %v2791_v57 = vsel %vm9078_vm1, %v6787_v13, %v2790_v44  ;;  %v4445_v62 = vrot.slane %v4443_v16, 4  ;;  %v4326_v24 = vld [vmem:[#allocation2 + $0x9c] sm:$0xe] }
 0x1e0   : > { %v4446_v33 = vrot.slane %v8949_v5, 5  ;;  %v2794_v22 = vsel %vm9078_vm1, %v2792_v32, %v2793_v28  ;;  %v2797_v37 = vrot.slane %v8946_v54, 5  ;;  %v9193_v12 = vsel %vm9078_vm1, %v6926_v56, %v4443_v16  ;;  %v8118_v28 = vld [vmem:[#allocation2 + $0x14] sm:$0x1] }
 0x1e1   : > { %7634 = vmatpush3.bf16.msra.mxu0 %v8064_v38  ;;  %v6927_v38 = vrot.slane %v4324_v31, 9  ;;  %v2804_v5 = vrot.slane %v8962_v39, 5  ;;  %v4453_v17 = vrot.slane %v8965_v51, 5  ;;  %v4416_v54 = vsel %vm9078_vm1, %v6922_v49, %v4415_v2  ;;  %v2738_v51 = vld [vmem:[#allocation2 + $0xc] sm:$0xe]  ;;  %v10397_v56 = vld [vmem:[#allocation6_spill] sm:$0xff] }
 0x1e2   : > { %7667 = vmatprep.subr.bf16.mxu0 %v9160_v10  ;;  %v9198_v35 = vsel %vm9078_vm1, %v4445_v62, %v4446_v33  ;;  %v6768_v42 = vcombine.low %v10394_v26, %v10393_v55  ;;  %v6807_v39 = vcombine.low %v2791_v57, %v2794_v22  ;;  %v6942_v49 = vcombine.low %v4416_v54, %v4419_v20  ;;  %v8119_v31 = vld [vmem:[#allocation2 + $0x20] sm:$0x1]  ;;  %v10399_v22 = vld [vmem:[#allocation10_spill] sm:$0xff] }
 0x1e3   : > { %7480 = vmatmul.mubr.msk.bf16.gmra.mrb[88].mxu1 %vm2226_vm11, %v6766_v21  ;;  %v4450_v21 = vrot.slane %v8957_v34, 5  ;;  %v6946_v58 = vcombine.low %v9193_v12, %v9198_v35  ;;  %v4423_v34 = vsel %vm9078_vm1, %v6923_v41, %v4422_v7  ;;  %v6928_v8 = vrot.slane %v4325_v1, 9  ;;  %v10398_v62 = vld [vmem:[#allocation8_spill] sm:$0xff] }
 0x1e4   : > { %7483 = vmatprep.mubr.msk.bf16.mxu1 %vm2226_vm11, %v6767_v0  ;;  %7604 = vmatmul.mubr.msk.bf16.gmra.mrb[4].mxu0 %vm2226_vm11, %v6940_v19  ;;  %v4426_v19 = vsel %vm9078_vm1, %v4424_v25, %v4425_v11  ;;  %v4457_v23 = vrot.slane %v10395_v46, 5  ;;  %v4460_v44 = vrot.slane %v10396_v40, 5  ;;  %v2799_v13 = vrot.slane %v2797_v37, 4 }
 0x1e5   : > { %7607 = vmatprep.mubr.msk.bf16.mxu0 %vm2226_vm11, %v6941_v36  ;;  %v9217_v63 = vsel %vm9078_vm1, %v6927_v38, %v4450_v21  ;;  %v4452_v2 = vrot.slane %v4450_v21, 4  ;;  %v6943_v53 = vcombine.low %v4423_v34, %v4426_v19  ;;  %v2806_v27 = vrot.slane %v2804_v5, 4  ;;  %v4327_v21 = vld [vmem:[#allocation2 + $0xa8] sm:$0xe] }
 0x1e6   : > { %v6788_v0 = vrot.slane %v2738_v51, 9  ;;  %v9230_v32 = vsel %vm9078_vm1, %v6928_v8, %v4457_v23  ;;  %v4459_v50 = vrot.slane %v4457_v23, 4  ;;  %v2800_v36 = vrot.slane %v8118_v28, 5  ;;  %v10400_v19 = vld [vmem:[#allocation9_spill] sm:$0xff]  ;;  %v4328_v8 = vld [vmem:[#allocation2 + $0xb4] sm:$0xe] }
 0x1e7   : > { %v9223_v7 = vsel %vm9078_vm1, %v4452_v2, %v4453_v17  ;;  %v6789_v16 = vrot.slane %v2739_v43, 9  ;;  %v2807_v25 = vrot.slane %v8119_v31, 5  ;;  %v6929_v11 = vrot.slane %v4326_v24, 9 }
 0x1e8   : > { %v6947_v41 = vcombine.low %v9217_v63, %v9223_v7  ;;  %v2811_v20 = vrot.slane %v10397_v56, 5  ;;  %v9237_v57 = vsel %vm9078_vm1, %v4459_v50, %v4460_v44  ;;  %v4464_v33 = vrot.slane %v10398_v62, 5  ;;  %v2741_v44 = vld [vmem:[#allocation2 + $0x30] sm:$0xe]  ;;  %v8121_v50 = vld [vmem:[#allocation2 + $0x38] sm:$0x1] }
 0x1e9   : > { %v4467_v38 = vrot.slane %v10399_v22, 5  ;;  %v2801_v17 = vsel %vm9078_vm1, %v2799_v13, %v2800_v36  ;;  %v2808_v1 = vsel %vm9078_vm1, %v2806_v27, %v2807_v25  ;;  %v6948_v54 = vcombine.low %v9230_v32, %v9237_v57  ;;  %v8120_v13 = vld [vmem:[#allocation2 + $0x2c] sm:$0x1]  ;;  %v4329_v25 = vld [vmem:[#allocation2 + $0xc0] sm:$0xe] }
 0x1ea   : > { %v2818_v55 = vrot.slane %v10400_v19, 5  ;;  %v2798_v26 = vsel %vm9078_vm1, %v6788_v0, %v2797_v37  ;;  %v9253_v34 = vsel %vm9078_vm1, %v6929_v11, %v4464_v33  ;;  %v2805_v51 = vsel %vm9078_vm1, %v6789_v16, %v2804_v5  ;;  %v10401_v11 = vld [vmem:[#allocation11_spill] sm:$0xff] }
 0x1eb   : > { %7484 = vmatmul.mubr.msk.bf16.gmra.mrb[92].mxu1 %vm2226_vm11, %v6768_v42  ;;  %v2740_v42 = vld [vmem:[#allocation2 + $0x24] sm:$0xe]  ;;  %v6930_v43 = vrot.slane %v4327_v21, 9  ;;  %v4471_v2 = vrot.slane %v9016_v48, 5  ;;  %v6808_v46 = vcombine.low %v2798_v26, %v2801_v17  ;;  %v6809_v23 = vcombine.low %v2805_v51, %v2808_v1  ;;  %v8127_v32 = vld [vmem:[#allocation2 + $0x7c] sm:$0xf] }
 0x1ec   : > { %7491 = vmatprep.mubr.msk.bf16.mxu1 %vm2226_vm11, %v6807_v39  ;;  %7608 = vmatmul.mubr.msk.bf16.gmra.mrb[8].mxu0 %vm2226_vm11, %v6942_v49  ;;  %v4466_v39 = vrot.slane %v4464_v33, 4  ;;  %v4474_v49 = vrot.slane %v9022_v60, 5  ;;  %v2813_v40 = vrot.slane %v2811_v20, 4  ;;  %v2820_v24 = vrot.slane %v2818_v55, 4 }
 0x1ed   : > { %7611 = vmatprep.mubr.msk.bf16.mxu0 %vm2226_vm11, %v6943_v53  ;;  %v9267_v5 = vsel %vm9078_vm1, %v6930_v43, %v4471_v2  ;;  %v4473_v48 = vrot.slane %v4471_v2, 4  ;;  %v6790_v60 = vrot.slane %v2740_v42, 9  ;;  %v2814_v27 = vrot.slane %v8120_v13, 5 }
 0x1ee   : > { %v9261_v37 = vsel %vm9078_vm1, %v4466_v39, %v4467_v38  ;;  %v6931_v0 = vrot.slane %v4328_v8, 9  ;;  %v2821_v28 = vrot.slane %v8121_v50, 5  ;;  %v4478_v16 = vrot.slane %v9031_v4, 5  ;;  %v10403_v38 = vld [vmem:[#allocation13_spill] sm:$0xff] }
 0x1ef   : > { %v6949_v53 = vcombine.low %v9253_v34, %v9261_v37  ;;  %v9273_v36 = vsel %vm9078_vm1, %v4473_v48, %v4474_v49  ;;  %v4481_v31 = vrot.slane %v9040_v14, 5  ;;  %v2812_v56 = vsel %vm9078_vm1, %v6790_v60, %v2811_v20  ;;  %v8122_v14 = vld [vmem:[%s10341_s4 + $0x38] sm:$0xff]   ;;  %v2743_v8 = vld [vmem:[#allocation2 + $0x48] sm:$0xe]  ;;  %v10404_v48 = vld [vmem:[#allocation14_spill] sm:$0xff] }
 0x1f0   : > { %v2815_v62 = vsel %vm9078_vm1, %v2813_v40, %v2814_v27  ;;  %v6791_v33 = vrot.slane %v2741_v44, 9  ;;  %v6950_v4 = vcombine.low %v9267_v5, %v9273_v36  ;;  %v2822_v9 = vsel %vm9078_vm1, %v2820_v24, %v2821_v28  ;;  %v8125_v28 = vld [vmem:[#allocation2 + $0x5c] sm:$0x1]  ;;  %v8131_v5 = vld [vmem:[#allocation2 + $0x94] sm:$0xf] }
 0x1f1   : > { %v9300_v20 = vsel %vm9078_vm1, %v6931_v0, %v4478_v16  ;;  %v4480_v22 = vrot.slane %v4478_v16, 4  ;;  %v2832_v21 = vrot.slane %v10403_v38, 5  ;;  %v6932_v17 = vrot.slane %v4329_v25, 9  ;;  %v2744_v0 = vld [vmem:[#allocation2 + $0x54] sm:$0xe] }
 0x1f2   : > { %v4485_v1 = vrot.slane %v9048_v3, 5  ;;  %v4488_v19 = vrot.slane %v9056_v30, 5  ;;  %v6810_v15 = vcombine.low %v2812_v56, %v2815_v62  ;;  %v2742_v30 = vld [vmem:[#allocation2 + $0x3c] sm:$0xe]  ;;  %v2839_v60 = vrot.slane %v10404_v48, 5 }
 0x1f3   : > { %7492 = vmatmul.mubr.msk.bf16.vlgmr.msra.gmra.mrb[64].mxu1 %vm2226_vm11, %v6808_v46  ;;  %v9307_v59 = vsel %vm9078_vm1, %v4480_v22, %v4481_v31  ;;  %v2834_v43 = vrot.slane %v2832_v21, 4  ;;  %v6792_v44 = vrot.slane %v2742_v30, 9  ;;  %v6793_v13 = vrot.slane %v2743_v8, 9  ;;  %v2745_v31 = vld [vmem:[#allocation2 + $0x60] sm:$0xe] }
 0x1f4   : > { %7495 = vmatprep.mubr.msk.bf16.mxu1 %vm2226_vm11, %v6809_v23  ;;  %7741 = vmatpush3.bf16.msra.mxu1 %v10401_v11  ;;  %v6951_v26 = vcombine.low %v9300_v20, %v9307_v59  ;;  %v9315_v42 = vsel %vm9078_vm1, %v6932_v17, %v4485_v1  ;;  %v4487_v39 = vrot.slane %v4485_v1, 4  ;;  %v8124_v23 = vld [vmem:[#allocation2 + $0x50] sm:$0x1]  ;;  %v2846_v12 = vrot.slane %v9067_v52, 5  ;;  %v8126_v52 = vld [vmem:[#allocation2 + $0x68] sm:$0x1] }
 0x1f5   : > { %7612 = vmatmul.mubr.msk.bf16.gmra.mrb[12].mxu0 %vm2226_vm11, %v6944_v61  ;;  %7740 = vmatprep.subr.bf16.mxu1 %v8122_v14  ;;  %v2825_v61 = vrot.slane %v10402_v47, 5  ;;  %v2835_v40 = vrot.slane %v8124_v23, 5  ;;  %v2833_v63 = vsel %vm9078_vm1, %v6793_v13, %v2832_v21  ;;  %v2842_v16 = vrot.slane %v8125_v28, 5  ;;  %v2746_v47 = vld [vmem:[#allocation2 + $0x6c] sm:$0xe]  ;;  %v9371_v59 = vpop.f32.mrb[32].mxu1 }
 0x1f6   : > { %7615 = vmatprep.mubr.msk.bf16.mxu0 %vm2226_vm11, %v6945_v45  ;;  %v2819_v45 = vsel %vm9078_vm1, %v6791_v33, %v2818_v55  ;;  %v9320_v2 = vsel %vm9078_vm1, %v4487_v39, %v4488_v19  ;;  %v8123_v55 = vld [vmem:[#allocation2 + $0x44] sm:$0x1]  ;;  %v2848_v50 = vrot.slane %v2846_v12, 4  ;;  %v2849_v25 = vrot.slane %v8126_v52, 5  ;;  %v2747_v22 = vld [vmem:[#allocation2 + $0x78] sm:$0xe] }
 0x1f7   : > { %v6811_v3 = vcombine.low %v2819_v45, %v2822_v9  ;;  %v2827_v51 = vrot.slane %v2825_v61, 4  ;;  %v2828_v49 = vrot.slane %v8123_v55, 5  ;;  %v6952_v46 = vcombine.low %v9315_v42, %v9320_v2  ;;  %v8129_v38 = vld [vmem:[#allocation2 + $0x80] sm:$0x1]  ;;  %v8130_v19 = vld [vmem:[#allocation2 + $0x88] sm:$0xf] }
 0x1f8   : > { %7742 = vmatpush3.bf16.msra.mxu1 %v8122_v14  ;;  %v2836_v27 = vsel %vm9078_vm1, %v2834_v43, %v2835_v40  ;;  %v2826_v35 = vsel %vm9078_vm1, %v6792_v44, %v2825_v61  ;;  %v6794_v11 = vrot.slane %v2744_v0, 9  ;;  %v2853_v62 = vrot.slane %v9084_v6, 5  ;;  %v8128_v6 = vld [vmem:[#allocation2 + $0x74] sm:$0x1]  ;;  %10405 = vst [vmem:[#allocation4_spill] sm:$0xff] %v9371_v59  ;;  %v9385_v13 = vpop.f32.mrb[33].mxu1 }
 0x1f9   : > { %v2829_v24 = vsel %vm9078_vm1, %v2827_v51, %v2828_v49  ;;  %v6813_v7 = vcombine.low %v2833_v63, %v2836_v27  ;;  %v6795_v33 = vrot.slane %v2745_v31, 9  ;;  %v2850_v14 = vsel %vm9078_vm1, %v2848_v50, %v2849_v25  ;;  %v2749_v51 = vld [vmem:[#allocation2 + $0x90] sm:$0xe]  ;;  %v8132_v8 = vld [vmem:[#allocation2 + $0x8c] sm:$0x1]  ;;  %10406 = vst [vmem:[#allocation3_spill] sm:$0xff] %v9385_v13 }
 0x1fa   : > { %v2860_v57 = vrot.slane %v8127_v32, 5  ;;  %v2856_v20 = vrot.slane %v8128_v6, 5  ;;  %v2863_v21 = vrot.slane %v8129_v38, 5  ;;  %v6796_v17 = vrot.slane %v2746_v47, 9  ;;  %v9392_v63 = vpop.f32.mrb[34].mxu1 }
 0x1fb   : > { %7496 = vmatmul.mubr.msk.bf16.gmra.mrb[68].mxu1 %vm2226_vm11, %v6810_v15  ;;  %v2847_v34 = vsel %vm9078_vm1, %v6795_v33, %v2846_v12  ;;  %v2867_v15 = vrot.slane %v8130_v19, 5  ;;  %v6797_v45 = vrot.slane %v2747_v22, 9  ;;  %v2874_v36 = vrot.slane %v8131_v5, 5  ;;  %10407 = vst [vmem:[#allocation5_spill] sm:$0xff] %v9392_v63  ;;  %v2750_v2 = vld [vmem:[#allocation2 + $0x9c] sm:$0xe] }
 0x1fc   : > { %7499 = vmatprep.mubr.msk.bf16.mxu1 %vm2226_vm11, %v6811_v3  ;;  %v6815_v37 = vcombine.low %v2847_v34, %v2850_v14  ;;  %v2862_v61 = vrot.slane %v2860_v57, 4  ;;  %v2748_v3 = vld [vmem:[#allocation2 + $0x84] sm:$0xe]  ;;  %v2870_v23 = vrot.slane %v8132_v8, 5  ;;  %v6799_v40 = vrot.slane %v2749_v51, 9  ;;  %v9398_v0 = vpop.f32.mrb[35].mxu1 }
 0x1fd   : > { %7616 = vmatmul.mubr.msk.bf16.gmra.mrb[16].mxu0 %vm2226_vm11, %v6946_v58  ;;  %v6812_v58 = vcombine.low %v2826_v35, %v2829_v24  ;;  %v2861_v30 = vsel %vm9078_vm1, %v6797_v45, %v2860_v57  ;;  %v6798_v55 = vrot.slane %v2748_v3, 9  ;;  %v2869_v49 = vrot.slane %v2867_v15, 4  ;;  %v8133_v24 = vld [vmem:[#allocation2 + $0x98] sm:$0x1]  ;;  %v8134_v35 = vld [vmem:[#allocation2 + $0xa0] sm:$0xf] }
 0x1fe   : > { %7619 = vmatprep.mubr.msk.bf16.mxu0 %vm2226_vm11, %v6947_v41  ;;  %v2841_v41 = vrot.slane %v2839_v60, 4  ;;  %v2864_v39 = vsel %vm9078_vm1, %v2862_v61, %v2863_v21  ;;  %v2876_v44 = vrot.slane %v2874_v36, 4  ;;  %v2877_v48 = vrot.slane %v8133_v24, 5  ;;  %10408 = vst [vmem:[#allocation7_spill] sm:$0xff] %v9398_v0  ;;  %v2751_v50 = vld [vmem:[#allocation2 + $0xa8] sm:$0xe] }
 0x1ff   : > { %v6817_v43 = vcombine.low %v2861_v30, %v2864_v39  ;;  %v2868_v27 = vsel %vm9078_vm1, %v6798_v55, %v2867_v15  ;;  %v2871_v12 = vsel %vm9078_vm1, %v2869_v49, %v2870_v23  ;;  %v9400_v28 = vpop.f32.mrb[36].mxu1  ;;  %v6800_v52 = vrot.slane %v2750_v2, 9  ;;  %v8137_v32 = vld [vmem:[#allocation2 + $0xb0] sm:$0x1]  ;;  %v8138_v47 = vld [vmem:[#allocation2 + $0xb8] sm:$0xf] }
 0x200   : > { %v2843_v56 = vsel %vm9078_vm1, %v2841_v41, %v2842_v16  ;;  %v2878_v42 = vsel %vm9078_vm1, %v2876_v44, %v2877_v48  ;;  %10409 = vst [vmem:[#allocation6_spill] sm:$0xff] %v9400_v28  ;;  %v6818_v16 = vcombine.low %v2868_v27, %v2871_v12  ;;  %v6801_v33 = vrot.slane %v2751_v50, 9  ;;  %v9408_v34 = vpop.f32.mrb[37].mxu1  ;;  %v2752_v38 = vld [vmem:[#allocation2 + $0xb4] sm:$0xe]  ;;  %v8069_v5 = vld [vmem:[#allocation2 + $0x3c] sm:$0xff]  }
 0x201   : > { %v2891_v57 = vrot.slane %v8137_v32, 5  ;;  %10410 = vst [vmem:[#allocation8_spill] sm:$0xff] %v9408_v34  ;;  %v2895_v61 = vrot.slane %v8138_v47, 5  ;;  %v9416_v6 = vpop.f32.mrb[38].mxu1  ;;  %v6802_v15 = vrot.slane %v2752_v38, 9 }
 0x202   : > { %10411 = vst [vmem:[#allocation10_spill] sm:$0xff] %v9416_v6  ;;  %v9427_v21 = vpop.f32.mrb[39].mxu1  ;;  %v8139_v39 = vld [vmem:[#allocation2 + $0xbc] sm:$0x1]  ;;  %v9446_v55 = vld [vmem:[#allocation2 + $0x28] sm:$0xf] }
 0x203   : > { %7500 = vmatmul.mubr.msk.bf16.gmra.mrb[72].mxu1 %vm2226_vm11, %v6812_v58  ;;  %v2881_v58 = vrot.slane %v8134_v35, 5  ;;  %10412 = vst [vmem:[#allocation9_spill] sm:$0xff] %v9427_v21  ;;  %v2897_v45 = vrot.slane %v2895_v61, 4  ;;  %v2898_v3 = vrot.slane %v8139_v39, 5  ;;  %v5167_v24 = vld [vmem:[#allocation2 + $0x18] sm:$0xf] }
 0x204   : > { %7503 = vmatprep.mubr.msk.bf16.mxu1 %vm2226_vm11, %v6813_v7  ;;  %v2875_v7 = vsel %vm9078_vm1, %v6799_v40, %v2874_v36  ;;  %v8070_v36 = vld [vmem:[#allocation2 + $0x48] sm:$0xff]   ;;  %v5170_v48 = vld [vmem:[#allocation2 + $0x24] sm:$0xf]  ;;  %v5249_v27 = vshll.u32 %v9446_v55, 16  ;;  %v5253_v12 = vshrl.u32 %v9446_v55, 16  ;;  %v5219_v2 = vshll.u32 %v5167_v24, 16 }
 0x205   : > { %7620 = vmatmul.mubr.msk.bf16.gmra.mrb[20].mxu0 %vm2226_vm11, %v6948_v54  ;;  %v2840_v54 = vsel %vm9078_vm1, %v6794_v11, %v2839_v60  ;;  %v8065_v60 = vld [vmem:[#allocation2 + $0x18] sm:$0xff]   ;;  %v6819_v31 = vcombine.low %v2875_v7, %v2878_v42  ;;  %v2883_v25 = vrot.slane %v2881_v58, 4  ;;  %v8136_v11 = vld [vmem:[#allocation2 + $0xa4] sm:$0x1]  ;;  %v2899_v30 = vsel %vm9078_vm1, %v2897_v45, %v2898_v3  ;;  %v9456_v35 = vld [vmem:[#allocation2 + $0x34] sm:$0xf] }
 0x206   : > { %7623 = vmatprep.mubr.msk.bf16.mxu0 %vm2226_vm11, %v6949_v53  ;;  %v6814_v9 = vcombine.low %v2840_v54, %v2843_v56  ;;  %v2855_v53 = vrot.slane %v2853_v62, 4  ;;  %v2884_v56 = vrot.slane %v8136_v11, 5  ;;  %v8076_v54 = vld [vmem:[%s10341_s4 + $0x78] sm:$0xff]   ;;  %v8072_v7 = vld [vmem:[#allocation2 + $0x60] sm:$0xff]   ;;  %v5216_v42 = vshrl.u32 %v5167_v24, 16 }
 0x207   : > { %v5173_v50 = vld [vmem:[#allocation2 + $0x30] sm:$0xf]  ;;  %v8079_v45 = vld [vmem:[#allocation2 + $0x9c] sm:$0xff]   ;;  %v5194_v6 = vld [vmem:[#allocation2 + $0x84] sm:$0xf] }
 0x208   : > { %v2857_v1 = vsel %vm9078_vm1, %v2855_v53, %v2856_v20  ;;  %v2885_v53 = vsel %vm9078_vm1, %v2883_v25, %v2884_v56  ;;  %v5277_v25 = vshrl.u32 %v9456_v35, 16  ;;  %v9468_v56 = vrot.slane %v5249_v27, 5  ;;  %v9871_v59 = vld [vmem:[#allocation2 + $0xd0] sm:$0xf] }
 0x209   : > { %v5264_v32 = vshrl.u32 %v5173_v50, 16 }
 0x20b   : > { %7504 = vmatmul.mubr.msk.bf16.gmra.mrb[76].mxu1 %vm2226_vm11, %v6814_v9  ;;  %v8068_v9 = vld [vmem:[#allocation2 + $0x30] sm:$0xff]  }
 0x20c   : > { %7507 = vmatprep.mubr.msk.bf16.mxu1 %vm2226_vm11, %v6815_v37  ;;  %v2882_v37 = vsel %vm9078_vm1, %v6800_v52, %v2881_v58  ;;  %v8071_v58 = vld [vmem:[#allocation2 + $0x54] sm:$0xff]   ;;  %v5273_v52 = vshll.u32 %v9456_v35, 16 }
 0x20d   : > { %7624 = vmatmul.mubr.msk.bf16.gmra.mrb[24].mxu0 %vm2226_vm11, %v6950_v4  ;;  %v2854_v4 = vsel %vm9078_vm1, %v6796_v17, %v2853_v62  ;;  %v8067_v62 = vld [vmem:[#allocation2 + $0x24] sm:$0xff]   ;;  %v9429_v17 = vpop.f32.mrb[40].mxu1 }
 0x20e   : > { %7627 = vmatprep.mubr.msk.bf16.mxu0 %vm2226_vm11, %v6951_v26  ;;  %v6816_v26 = vcombine.low %v2854_v4, %v2857_v1  ;;  %10413 = vst [vmem:[#allocation11_spill] sm:$0xff] %v9429_v17  ;;  %v6820_v1 = vcombine.low %v2882_v37, %v2885_v53  ;;  %v9435_v4 = vld [vmem:[#allocation2 + $0x1c] sm:$0xf]  ;;  %v9437_v51 = vpop.f32.mrb[41].mxu1  ;;  %v5218_v37 = vrot.slane %v5216_v42, 4  ;;  %v5221_v53 = vrot.slane %v5219_v2, 5 }
 0x20f   : > { %10414 = vst [vmem:[#allocation12_spill] sm:$0xff] %v9437_v51  ;;  %v5225_v8 = vshll.u32 %v9435_v4, 16  ;;  %v5229_v23 = vshrl.u32 %v9435_v4, 16  ;;  %v8086_v51 = vld [vmem:[#allocation2 + $0xb4] sm:$0xff]  }
 0x213   : > { %7508 = vmatmul.mubr.msk.bf16.gmra.mrb[80].mxu1 %vm2226_vm11, %v6816_v26  ;;  %v2896_v26 = vsel %vm9078_vm1, %v6802_v15, %v2895_v61  ;;  %v9477_v61 = vld [vmem:[#allocation2 + $0x2c] sm:$0x1]  ;;  %v5279_v15 = vrot.slane %v5277_v25, 4 }
 0x214   : > { %7511 = vmatprep.mubr.msk.bf16.mxu1 %vm2226_vm11, %v6817_v43  ;;  %v9444_v43 = vpop.f32.mrb[42].mxu1  ;;  %v6822_v44 = vcombine.low %v2896_v26, %v2899_v30  ;;  %v9485_v26 = vld [vmem:[#allocation2 + $0x38] sm:$0x1]  ;;  %v5266_v30 = vrot.slane %v5264_v32, 4 }
 0x215   : > { %7628 = vmatmul.mubr.msk.bf16.gmra.mrb[28].mxu0 %vm2226_vm11, %v6952_v46  ;;  %v8135_v46 = vld [vmem:[#allocation2 + $0xac] sm:$0xf]  ;;  %10415 = vst [vmem:[#allocation13_spill] sm:$0xff] %v9444_v43  ;;  %v9448_v49 = vpop.f32.mrb[43].mxu1  ;;  %v5283_v2 = vshll.u32 %v9485_v26, 16 }
 0x216   : > { %7635 = vmatprep.mubr.msk.bf16.mxu0 %vm2226_vm11, %v8065_v60  ;;  %v2888_v41 = vrot.slane %v8135_v46, 5  ;;  %10416 = vst [vmem:[#allocation14_spill] sm:$0xff] %v9448_v49  ;;  %v9452_v40 = vpop.f32.mrb[44].mxu1  ;;  %v8074_v60 = vld [vmem:[#allocation2 + $0x84] sm:$0xff]   ;;  %v9460_v46 = vrot.slane %v5225_v8, 5 }
 0x217   : > { %10417 = vst [vmem:[#allocation15_spill] sm:$0xff] %v9452_v40  ;;  %v9465_v11 = vpop.f32.mrb[45].mxu1  ;;  %v9589_v40 = vld [vmem:[#allocation2 + $0x68] sm:$0x1] }
 0x218   : > { %v2890_v14 = vrot.slane %v2888_v41, 4  ;;  %v2889_v20 = vsel %vm9078_vm1, %v6801_v33, %v2888_v41  ;;  %v5231_v41 = vrot.slane %v5229_v23, 4  ;;  %10418 = vst [vmem:[#allocation16_spill] sm:$0xff] %v9465_v11  ;;  %v9470_v33 = vpop.f32.mrb[46].mxu1  ;;  %v8075_v23 = vld [vmem:[#allocation2 + $0x78] sm:$0xff]  }
 0x219   : > { %10419 = vst [vmem:[#allocation17_spill] sm:$0xff] %v9470_v33 }
 0x21a   : > { %v2892_v22 = vsel %vm9078_vm1, %v2890_v14, %v2891_v57  ;;  %v9472_v14 = vld [vmem:[#allocation2 + $0x20] sm:$0x1]  ;;  %v5267_v57 = vshll.u32 %v5173_v50, 16  ;;  %v5232_v47 = vor.u32 %v5231_v41, %v9460_v46 }
 0x21b   : > { %7512 = vmatmul.mubr.msk.bf16.gmra.mrb[84].mxu1 %vm2226_vm11, %v6818_v16  ;;  %v6821_v19 = vcombine.low %v2889_v20, %v2892_v22  ;;  %v5240_v16 = vshrl.u32 %v5170_v48, 16  ;;  %v8077_v22 = vld [vmem:[#allocation2 + $0x90] sm:$0xff]   ;;  %v5235_v24 = vshll.u32 %v9472_v14, 16 }
 0x21c   : > { %7515 = vmatprep.mubr.msk.bf16.mxu1 %vm2226_vm11, %v6819_v31  ;;  %v5243_v31 = vshll.u32 %v5170_v48, 16  ;;  %v5269_v8 = vrot.slane %v5267_v57, 5  ;;  %v5259_v48 = vshll.u32 %v9477_v61, 16  ;;  %v5233_v27 = vrot.slane %v5232_v47, 4  ;;  %v8081_v47 = vld [vmem:[#allocation2 + $0xa8] sm:$0xff]  }
 0x21d   : > { %7636 = vmatmul.mubr.msk.bf16.vlgmr.msra.gmra.mrb[0].mxu0 %vm2226_vm11, %v8067_v62  ;;  %v5255_v62 = vrot.slane %v5253_v12, 4  ;;  %v5242_v38 = vrot.slane %v5240_v16, 4  ;;  %v5237_v57 = vrot.slane %v5235_v24, 5 }
 0x21e   : > { %7668 = vmatpush3.bf16.msra.mxu0 %v9160_v10  ;;  %7639 = vmatprep.mubr.msk.bf16.mxu0 %vm2226_vm11, %v8068_v9  ;;  %v9425_v10 = vld [vmem:[%s10341_s4 + $0x80] sm:$0xff]   ;;  %v9474_v9 = vpop.f32.mrb[47].mxu1 }
 0x21f   : > { %7669 = vmatprep.subr.bf16.mxu0 %v8076_v54  ;;  %10420 = vst [vmem:[#allocation18_spill] sm:$0xff] %v9474_v9  ;;  %v9479_v20 = vpop.f32.mrb[48].mxu1  ;;  %v5256_v39 = vor.u32 %v5255_v62, %v9468_v56 }
 0x220   : > { %10421 = vst [vmem:[#allocation19_spill] sm:$0xff] %v9479_v20 }
 0x221   : > { %v5257_v42 = vrot.slane %v5256_v39, 4 }
 0x222   : > { %7670 = vmatpush3.bf16.msra.mxu0 %v8076_v54  ;;  %v5176_v54 = vld [vmem:[#allocation2 + $0x3c] sm:$0xf] }
 0x223   : > { %7516 = vmatmul.mubr.msk.bf16.gmra.mrb[88].mxu1 %vm2226_vm11, %v6820_v1  ;;  %7703 = vmatprep.subr.bf16.mxu0 %v9425_v10  ;;  %v5245_v1 = vrot.slane %v5243_v31, 5  ;;  %v5288_v3 = vshrl.u32 %v5176_v54, 16  ;;  %v5270_v31 = vor.u32 %v5269_v8, %v5266_v30  ;;  %v8078_v30 = vld [vmem:[#allocation2 + $0x84] sm:$0xff]  }
 0x224   : > { %7519 = vmatprep.mubr.msk.bf16.mxu1 %vm2226_vm11, %v6821_v19  ;;  %v9481_v19 = vrot.slane %v5273_v52, 5 }
 0x225   : > { %7640 = vmatmul.mubr.msk.bf16.gmra.mrb[4].mxu0 %vm2226_vm11, %v8069_v5  ;;  %v5291_v5 = vshll.u32 %v5176_v54, 16  ;;  %v5246_v12 = vor.u32 %v5245_v1, %v5242_v38  ;;  %v5290_v41 = vrot.slane %v5288_v3, 4  ;;  %v5261_v54 = vrot.slane %v5259_v48, 5  ;;  %v5179_v1 = vld [vmem:[#allocation2 + $0x48] sm:$0xf]  ;;  %v8080_v48 = vld [vmem:[#allocation2 + $0x90] sm:$0xff]  }
 0x226   : > { %7643 = vmatprep.mubr.msk.bf16.mxu0 %vm2226_vm11, %v8070_v36  ;;  %v8073_v36 = vld [vmem:[#allocation2 + $0x6c] sm:$0xff]   ;;  %v5285_v3 = vrot.slane %v5283_v2, 5  ;;  %v5271_v8 = vrot.slane %v5270_v31, 4  ;;  %v9531_v31 = vld [vmem:[#allocation2 + $0x58] sm:$0xf] }
 0x227   : > { %v5293_v50 = vrot.slane %v5291_v5, 5  ;;  %v5262_v39 = vsel %vm8358_vm10, %v5257_v42, %v5261_v54  ;;  %v9528_v2 = vld [vmem:[#allocation2 + $0x50] sm:$0x1] }
 0x229   : > { %v5294_v5 = vor.u32 %v5293_v50, %v5290_v41  ;;  %v5315_v41 = vshll.u32 %v5179_v1, 16 }
 0x22b   : > { %7520 = vmatmul.mubr.msk.bf16.gmra.mrb[92].mxu1 %vm2226_vm11, %v6822_v44  ;;  %v5222_v44 = vor.u32 %v5221_v53, %v5218_v37  ;;  %v9504_v37 = vld [vmem:[#allocation2 + $0x44] sm:$0x1] }
 0x22c   : > { %7547 = vmatprep.mubr.msk.bf16.mxu1 %vm2226_vm11, %v8074_v60  ;;  %v9490_v60 = vld [vmem:[#allocation2 + $0x40] sm:$0xf]  ;;  %v5307_v24 = vshll.u32 %v9504_v37, 16 }
 0x22d   : > { %7644 = vmatmul.mubr.msk.bf16.gmra.mrb[8].mxu0 %vm2226_vm11, %v8071_v58  ;;  %v5280_v58 = vor.u32 %v5279_v15, %v9481_v19  ;;  %v5297_v52 = vshll.u32 %v9490_v60, 16  ;;  %v5301_v25 = vshrl.u32 %v9490_v60, 16  ;;  %v5223_v32 = vrot.slane %v5222_v44, 4  ;;  %v8083_v15 = vld [vmem:[#allocation2 + $0xb4] sm:$0xff]  }
 0x22e   : > { %7647 = vmatprep.mubr.msk.bf16.mxu0 %vm2226_vm11, %v8072_v7  ;;  %v9494_v7 = vpop.f32.mrb[49].mxu1 }
 0x22f   : > { %10422 = vst [vmem:[#allocation20_spill] sm:$0xff] %v9494_v7  ;;  %v9498_v16 = vpop.f32.mrb[50].mxu1  ;;  %v5281_v38 = vrot.slane %v5280_v58, 4  ;;  %v5303_v44 = vrot.slane %v5301_v25, 4 }
 0x230   : > { %10423 = vst [vmem:[#allocation21_spill] sm:$0xff] %v9498_v16  ;;  %v9502_v62 = vpop.f32.mrb[51].mxu1  ;;  %v8084_v16 = vld [vmem:[#allocation2 + $0xa8] sm:$0xff]  }
 0x231   : > { %10424 = vst [vmem:[#allocation22_spill] sm:$0xff] %v9502_v62  ;;  %v9506_v53 = vpop.f32.mrb[52].mxu1  ;;  %v5286_v42 = vsel %vm8358_vm10, %v5281_v38, %v5285_v3  ;;  %v9550_v38 = vrot.slane %v5307_v24, 5  ;;  %v9573_v62 = vld [vmem:[#allocation2 + $0x7c] sm:$0xf] }
 0x232   : > { %10425 = vst [vmem:[#allocation23_spill] sm:$0xff] %v9506_v53 }
 0x233   : > { %7548 = vmatmul.mubr.msk.bf16.vlgmr.msra.gmra.mrb[84].mxu1 %vm2226_vm11, %v8077_v22  ;;  %v5247_v22 = vrot.slane %v5246_v12, 4  ;;  %v5312_v12 = vshrl.u32 %v5179_v1, 16 }
 0x234   : > { %7551 = vmatprep.mubr.msk.bf16.mxu1 %vm2226_vm11, %v8079_v45  ;;  %v5238_v45 = vsel %vm8358_vm10, %v5233_v27, %v5237_v57  ;;  %v5228_v27 = vsel %vm8358_vm10, %v5223_v32, %v9460_v46  ;;  %v9540_v32 = vrot.slane %v5294_v5, 4  ;;  %v9542_v57 = vld [vmem:[#allocation2 + $0x64] sm:$0xf]  ;;  %v5345_v5 = vshll.u32 %v9531_v31, 16 }
 0x235   : > { %7648 = vmatmul.mubr.msk.bf16.gmra.mrb[12].mxu0 %vm2226_vm11, %v8073_v36  ;;  %v9512_v36 = vld [vmem:[#allocation2 + $0x4c] sm:$0xf]  ;;  %v5252_v58 = vsel %vm8358_vm10, %v5247_v22, %v9468_v56  ;;  %v9536_v46 = vcombine.low %v5228_v27, %v5238_v45  ;;  %v5185_v56 = vld [vmem:[#allocation2 + $0x60] sm:$0xf]  ;;  %v5314_v3 = vrot.slane %v5312_v12, 4  ;;  %v5369_v24 = vshll.u32 %v9542_v57, 16 }
 0x236   : > { %7651 = vmatprep.mubr.msk.bf16.mxu0 %vm2226_vm11, %v8075_v23  ;;  %v9515_v23 = vrot.slane %v5297_v52, 5  ;;  %v5321_v50 = vshll.u32 %v9512_v36, 16  ;;  %v9533_v52 = vpop.f32.mrb[53].mxu1  ;;  %v9538_v25 = vcombine.low %v5252_v58, %v5262_v39  ;;  %v5325_v1 = vshrl.u32 %v9512_v36, 16 }
 0x237   : > { %10426 = vst [vmem:[#allocation24_spill] sm:$0xff] %v9533_v52  ;;  %v9544_v54 = vpop.f32.mrb[54].mxu1  ;;  %v5373_v58 = vshrl.u32 %v9542_v57, 16  ;;  %v8082_v52 = vld [vmem:[#allocation2 + $0x9c] sm:$0xff]   ;;  %v5363_v53 = vshll.u32 %v5185_v56, 16  ;;  %v9575_v7 = vrot.slane %v5345_v5, 5 }
 0x238   : > { %10427 = vst [vmem:[#allocation25_spill] sm:$0xff] %v9544_v54  ;;  %v5304_v22 = vor.u32 %v5303_v44, %v9515_v23  ;;  %v9553_v45 = vpop.f32.mrb[55].mxu1  ;;  %v9563_v44 = vrot.slane %v5321_v50, 5  ;;  %v5300_v12 = vsel %vm8358_vm10, %v9540_v32, %v9515_v23  ;;  %v5188_v54 = vld [vmem:[#allocation2 + $0x6c] sm:$0xf]  ;;  %v5327_v50 = vrot.slane %v5325_v1, 4 }
 0x239   : > { %10428 = vst [vmem:[#allocation26_spill] sm:$0xff] %v9553_v45  ;;  %v9561_v27 = vpop.f32.mrb[56].mxu1  ;;  %v9582_v9 = vrot.slane %v5369_v24, 5  ;;  %v5384_v1 = vshrl.u32 %v5188_v54, 16 }
 0x23a   : > { %10429 = vst [vmem:[#allocation27_spill] sm:$0xff] %v9561_v27  ;;  %v5360_v27 = vshrl.u32 %v5185_v56, 16  ;;  %v9584_v56 = vpop.f32.mrb[57].mxu1  ;;  %v5328_v24 = vor.u32 %v5327_v50, %v9563_v44 }
 0x23b   : > { %7552 = vmatmul.mubr.msk.bf16.gmra.mrb[88].mxu1 %vm2226_vm11, %v8081_v47  ;;  %v5276_v47 = vsel %vm8358_vm10, %v5271_v8, %v9481_v19  ;;  %v8085_v19 = vld [vmem:[#allocation2 + $0xc0] sm:$0xff]   ;;  %v5317_v8 = vrot.slane %v5315_v41, 5  ;;  %v5305_v41 = vrot.slane %v5304_v22, 4  ;;  %v5375_v22 = vrot.slane %v5373_v58, 4  ;;  %10430 = vst [vmem:[#allocation28_spill] sm:$0xff] %v9584_v56  ;;  %v9591_v49 = vpop.f32.mrb[58].mxu1 }
 0x23c   : > { %7555 = vmatprep.mubr.msk.bf16.mxu1 %vm2226_vm11, %v8083_v15  ;;  %v5182_v15 = vld [vmem:[#allocation2 + $0x54] sm:$0xf]  ;;  %v9555_v39 = vcombine.low %v5276_v47, %v5286_v42  ;;  %v5331_v42 = vshll.u32 %v9528_v2, 16  ;;  %10431 = vst [vmem:[#allocation29_spill] sm:$0xff] %v9591_v49  ;;  %v5365_v58 = vrot.slane %v5363_v53, 5  ;;  %v9597_v43 = vpop.f32.mrb[59].mxu1 }
 0x23d   : > { %7652 = vmatmul.mubr.msk.bf16.gmra.mrb[16].mxu0 %vm2226_vm11, %v8078_v30  ;;  %v5349_v30 = vshrl.u32 %v9531_v31, 16  ;;  %v5336_v47 = vshrl.u32 %v5182_v15, 16  ;;  %v5339_v45 = vshll.u32 %v5182_v15, 16  ;;  %v9580_v15 = vld [vmem:[#allocation2 + $0x5c] sm:$0x1]  ;;  %v5318_v5 = vor.u32 %v5317_v8, %v5314_v3  ;;  %10432 = vst [vmem:[#allocation30_spill] sm:$0xff] %v9597_v43 }
 0x23e   : > { %7655 = vmatprep.mubr.msk.bf16.mxu0 %vm2226_vm11, %v8080_v48  ;;  %v9559_v48 = vld [vmem:[#allocation2 + $0x70] sm:$0xf]  ;;  %v9587_v33 = vrot.slane %v5331_v42, 5  ;;  %v5191_v56 = vld [vmem:[#allocation2 + $0x78] sm:$0xf]  ;;  %v5421_v8 = vshrl.u32 %v9573_v62, 16 }
 0x23f   : > { %v5351_v20 = vrot.slane %v5349_v30, 4  ;;  %v5393_v23 = vshll.u32 %v9559_v48, 16  ;;  %v5397_v32 = vshrl.u32 %v9559_v48, 16  ;;  %v5338_v30 = vrot.slane %v5336_v47, 4  ;;  %v9603_v42 = vpop.f32.mrb[60].mxu1 }
 0x240   : > { %v5341_v11 = vrot.slane %v5339_v45, 5  ;;  %v5417_v45 = vshll.u32 %v9573_v62, 16  ;;  %10433 = vst [vmem:[#allocation31_spill] sm:$0xff] %v9603_v42  ;;  %v5319_v53 = vrot.slane %v5318_v5, 4  ;;  %v5355_v43 = vshll.u32 %v9580_v15, 16 }
 0x241   : > { %v5399_v3 = vrot.slane %v5397_v32, 4  ;;  %v5352_v47 = vor.u32 %v5351_v20, %v9575_v7  ;;  %v5408_v32 = vshrl.u32 %v5191_v56, 16  ;;  %v5411_v49 = vshll.u32 %v5191_v56, 16 }
 0x242   : > { %v5342_v21 = vor.u32 %v5341_v11, %v5338_v30  ;;  %v5379_v20 = vshll.u32 %v9589_v40, 16  ;;  %v5423_v5 = vrot.slane %v5421_v8, 4  ;;  %v5357_v8 = vrot.slane %v5355_v43, 5 }
 0x243   : > { %7556 = vmatmul.mubr.msk.bf16.gmra.mrb[92].mxu1 %vm2226_vm11, %v8085_v19  ;;  %v5387_v19 = vshll.u32 %v5188_v54, 16  ;;  %v5362_v54 = vrot.slane %v5360_v27, 4  ;;  %v9607_v27 = vpop.f32.mrb[61].mxu1  ;;  %v5353_v34 = vrot.slane %v5352_v47, 4  ;;  %v5410_v30 = vrot.slane %v5408_v32, 4 }
 0x244   : > { %10434 = vst [vmem:[#allocation32_spill] sm:$0xff] %v9607_v27  ;;  %v9616_v27 = vrot.slane %v5417_v45, 5  ;;  %v9622_v11 = vpop.f32.mrb[62].mxu1  ;;  %v5343_v45 = vrot.slane %v5342_v21, 4  ;;  %v5381_v47 = vrot.slane %v5379_v20, 5 }
 0x245   : > { %7656 = vmatmul.mubr.msk.bf16.gmra.mrb[20].mxu0 %vm2226_vm11, %v8082_v52  ;;  %v5310_v52 = vsel %vm8358_vm10, %v5305_v41, %v9550_v38  ;;  %v5376_v38 = vor.u32 %v5375_v22, %v9582_v9  ;;  %v5386_v41 = vrot.slane %v5384_v1, 4  ;;  %v5389_v50 = vrot.slane %v5387_v19, 5  ;;  %v8087_v22 = vld [vmem:[#allocation2 + $0xc0] sm:$0xff]   ;;  %10435 = vst [vmem:[#allocation33_spill] sm:$0xff] %v9622_v11 }
 0x246   : > { %7659 = vmatprep.mubr.msk.bf16.mxu0 %vm2226_vm11, %v8084_v16  ;;  %v9599_v16 = vrot.slane %v5393_v23, 5  ;;  %v9610_v23 = vld [vmem:[#allocation2 + $0x74] sm:$0x1]  ;;  %v9612_v17 = vcombine.low %v5300_v12, %v5310_v52  ;;  %v5366_v42 = vor.u32 %v5365_v58, %v5362_v54  ;;  %v5329_v1 = vrot.slane %v5328_v24, 4  ;;  %v9620_v52 = vld [vmem:[#allocation2 + $0x80] sm:$0x1] }
 0x247   : > { %v5377_v28 = vrot.slane %v5376_v38, 4  ;;  %v5390_v56 = vor.u32 %v5389_v50, %v5386_v41  ;;  %v5403_v12 = vshll.u32 %v9610_v23, 16  ;;  %v5413_v24 = vrot.slane %v5411_v49, 5  ;;  %v9634_v49 = vld [vmem:[#allocation2 + $0x88] sm:$0xf] }
 0x248   : > { %v5400_v19 = vor.u32 %v5399_v3, %v9599_v16  ;;  %v5432_v54 = vshrl.u32 %v5194_v6, 16  ;;  %v5435_v58 = vshll.u32 %v5194_v6, 16  ;;  %v9625_v3 = vpop.f32.mrb[63].mxu1  ;;  %v5324_v38 = vsel %vm8358_vm10, %v5319_v53, %v9563_v44  ;;  %v8088_v6 = vld [vmem:[#allocation2 + $0xcc] sm:$0xff]  }
 0x249   : > { %10436 = vst [vmem:[#allocation34_spill] sm:$0xff] %v9625_v3  ;;  %v5334_v41 = vsel %vm8358_vm10, %v5329_v1, %v9587_v33  ;;  %v5424_v32 = vor.u32 %v5423_v5, %v9616_v27  ;;  %v5358_v21 = vsel %vm8358_vm10, %v5353_v34, %v5357_v8  ;;  %v5382_v43 = vsel %vm8358_vm10, %v5377_v28, %v5381_v47  ;;  %v5197_v44 = vld [vmem:[#allocation2 + $0x90] sm:$0xf]  ;;  %v9647_v34 = vld [vmem:[#allocation2 + $0x8c] sm:$0x1] }
 0x24a   : > { %v5401_v50 = vrot.slane %v5400_v19, 4  ;;  %v5427_v20 = vshll.u32 %v9620_v52, 16  ;;  %v5391_v53 = vrot.slane %v5390_v56, 4  ;;  %v5434_v3 = vrot.slane %v5432_v54, 4 }
 0x24b   : > { %v5437_v33 = vrot.slane %v5435_v58, 5  ;;  %v5348_v1 = vsel %vm8358_vm10, %v5343_v45, %v9575_v7  ;;  %v5441_v28 = vshll.u32 %v9634_v49, 16  ;;  %v5445_v5 = vshrl.u32 %v9634_v49, 16  ;;  %v9660_v45 = vld [vmem:[#allocation2 + $0x94] sm:$0xf] }
 0x24c   : > { %v9654_v54 = vcombine.low %v5324_v38, %v5334_v41  ;;  %v9656_v7 = vcombine.low %v5348_v1, %v5358_v21  ;;  %v5396_v8 = vsel %vm8358_vm10, %v5391_v53, %v9599_v16  ;;  %v5909_v38 = vld [vmem:[#allocation2 + $0x48] sm:$0xe]  ;;  %v5999_v21 = vrot.slane %v9512_v36, 5 }
 0x24d   : > { %7660 = vmatmul.mubr.msk.bf16.gmra.mrb[24].mxu0 %vm2226_vm11, %v8086_v51  ;;  %v5367_v51 = vrot.slane %v5366_v42, 4  ;;  %v5405_v42 = vrot.slane %v5403_v12, 5  ;;  %v5425_v12 = vrot.slane %v5424_v32, 4  ;;  %v5438_v47 = vor.u32 %v5437_v33, %v5434_v3 }
 0x24e   : > { %7663 = vmatprep.mubr.msk.bf16.mxu0 %vm2226_vm11, %v8087_v22  ;;  %v5414_v22 = vor.u32 %v5413_v24, %v5410_v30  ;;  %v5456_v30 = vshrl.u32 %v5197_v44, 16  ;;  %v5459_v24 = vshll.u32 %v5197_v44, 16  ;;  %v9670_v32 = vrot.slane %v5441_v28, 5 }
 0x24f   : > { %v5372_v19 = vsel %vm8358_vm10, %v5367_v51, %v9582_v9  ;;  %v5406_v56 = vsel %vm8358_vm10, %v5401_v50, %v5405_v42  ;;  %v5429_v9 = vrot.slane %v5427_v20, 5  ;;  %v5451_v50 = vshll.u32 %v9647_v34, 16 }
 0x250   : > { %v9658_v58 = vcombine.low %v5372_v19, %v5382_v43  ;;  %v5415_v51 = vrot.slane %v5414_v22, 4  ;;  %v9668_v41 = vcombine.low %v5396_v8, %v5406_v56  ;;  %v5461_v42 = vrot.slane %v5459_v24, 5  ;;  %v5910_v22 = vld [vmem:[#allocation2 + $0x54] sm:$0xe]  ;;  %v9850_v24 = vld [vmem:[#allocation2 + $0xbc] sm:$0x1] }
 0x251   : > { %v5430_v43 = vsel %vm8358_vm10, %v5425_v12, %v5429_v9  ;;  %v5465_v20 = vshll.u32 %v9660_v45, 16  ;;  %v5469_v16 = vshrl.u32 %v9660_v45, 16  ;;  %v7051_v3 = vrot.slane %v5909_v38, 9  ;;  %v5200_v12 = vld [vmem:[#allocation2 + $0x9c] sm:$0xf] }
 0x252   : > { %v6001_v44 = vrot.slane %v5999_v21, 4  ;;  %v6002_v53 = vrot.slane %v9528_v2, 5  ;;  %v5420_v33 = vsel %vm8358_vm10, %v5415_v51, %v9616_v27  ;;  %v9681_v1 = vrot.slane %v5438_v47, 4  ;;  %v9692_v2 = vld [vmem:[#allocation2 + $0x98] sm:$0x1] }
 0x253   : > { %v9683_v36 = vrot.slane %v5451_v50, 5  ;;  %v6006_v19 = vrot.slane %v9531_v31, 5  ;;  %v9686_v28 = vcombine.low %v5420_v33, %v5430_v43  ;;  %v9696_v27 = vsel %vm9078_vm1, %v7051_v3, %v5999_v21  ;;  %v5911_v51 = vld [vmem:[#allocation2 + $0x60] sm:$0xe] }
 0x254   : > { %v9702_v31 = vrot.slane %v5465_v20, 5  ;;  %v7052_v9 = vrot.slane %v5910_v22, 9  ;;  %v9708_v50 = vrot.slane %v5469_v16, 4  ;;  %v9710_v38 = vld [vmem:[#allocation2 + $0xa0] sm:$0xf]  ;;  %v6013_v21 = vrot.slane %v9542_v57, 5 }
 0x255   : > { %7664 = vmatmul.mubr.msk.bf16.gmra.mrb[28].mxu0 %vm2226_vm11, %v8088_v6  ;;  %v5447_v6 = vrot.slane %v5445_v5, 4  ;;  %v8090_v5 = vld [vmem:[%s10341_s4 + $0x88] sm:$0xff]   ;;  %v6008_v8 = vrot.slane %v6006_v19, 4  ;;  %v5444_v43 = vsel %vm8358_vm10, %v9681_v1, %v9670_v32  ;;  %v5483_v16 = vshll.u32 %v5200_v12, 16  ;;  %v5913_v1 = vld [vmem:[#allocation2 + $0x78] sm:$0xe] }
 0x256   : > { %7671 = vmatprep.mubr.msk.bf16.mxu0 %vm2226_vm11, %v9536_v46  ;;  %v5458_v46 = vrot.slane %v5456_v30, 4  ;;  %v9700_v30 = vsel %vm9078_vm1, %v6001_v44, %v6002_v53  ;;  %v5912_v44 = vld [vmem:[#allocation2 + $0x6c] sm:$0xe]  ;;  %v6065_v0 = vrot.slane %v9850_v24, 5 }
 0x257   : > { %v5448_v56 = vor.u32 %v5447_v6, %v9670_v32  ;;  %v6009_v6 = vrot.slane %v9580_v15, 5  ;;  %v6015_v15 = vrot.slane %v6013_v21, 4  ;;  %v5489_v32 = vshll.u32 %v9710_v38, 16 }
 0x258   : > { %v5462_v47 = vor.u32 %v5461_v42, %v5458_v46  ;;  %v5480_v46 = vshrl.u32 %v5200_v12, 16  ;;  %v9724_v42 = vsel %vm9078_vm1, %v7052_v9, %v6006_v19  ;;  %v5472_v19 = vor.u32 %v9708_v50, %v9702_v31 }
 0x259   : > { %v9728_v57 = vsel %vm9078_vm1, %v6008_v8, %v6009_v6  ;;  %v5449_v20 = vrot.slane %v5448_v56, 4  ;;  %v6027_v9 = vrot.slane %v9573_v62, 5  ;;  %v5914_v8 = vld [vmem:[#allocation2 + $0x84] sm:$0xe] }
 0x25a   : > { %v9734_v53 = vrot.slane %v5462_v47, 4  ;;  %v7054_v47 = vrot.slane %v5912_v44, 9  ;;  %v9784_v44 = vrot.slane %v5489_v32, 5  ;;  %v9856_v32 = vld [vmem:[#allocation2 + $0xc8] sm:$0x1] }
 0x25b   : > { %v6029_v50 = vrot.slane %v6027_v9, 4 }
 0x25d   : > { %7672 = vmatmul.mubr.msk.bf16.vlgmr.msra.gmra.mrb[0].mxu0 %vm2226_vm11, %v9538_v25  ;;  %v5475_v25 = vshll.u32 %v9692_v2, 16 }
 0x25e   : > { %7704 = vmatpush3.bf16.msra.mxu0 %v9425_v10  ;;  %7675 = vmatprep.mubr.msk.bf16.mxu0 %vm2226_vm11, %v9555_v39  ;;  %v7053_v10 = vrot.slane %v5911_v51, 9  ;;  %v6016_v39 = vrot.slane %v9589_v40, 5  ;;  %v6020_v40 = vrot.slane %v9559_v48, 5  ;;  %v9752_v51 = vrot.slane %v5480_v46, 4 }
 0x25f   : > { %7705 = vmatprep.subr.bf16.mxu0 %v8090_v5  ;;  %v9747_v56 = vrot.slane %v5475_v25, 5  ;;  %v5454_v48 = vsel %vm8358_vm10, %v5449_v20, %v9683_v36  ;;  %v6030_v25 = vrot.slane %v9620_v52, 5  ;;  %v7056_v46 = vrot.slane %v5914_v8, 9  ;;  %v5203_v36 = vld [vmem:[#allocation2 + $0xa8] sm:$0xf] }
 0x260   : > { %v9738_v22 = vsel %vm9078_vm1, %v7053_v10, %v6013_v21  ;;  %v9742_v33 = vsel %vm9078_vm1, %v6015_v15, %v6016_v39  ;;  %v6022_v6 = vrot.slane %v6020_v40, 4  ;;  %v6023_v21 = vrot.slane %v9610_v23, 5  ;;  %v5915_v15 = vld [vmem:[#allocation2 + $0x90] sm:$0xe] }
 0x261   : > { %v9761_v10 = vrot.slane %v5483_v16, 5  ;;  %v9765_v62 = vsel %vm9078_vm1, %v7054_v47, %v6020_v40  ;;  %v9781_v39 = vsel %vm9078_vm1, %v6029_v50, %v6030_v25  ;;  %v6034_v20 = vrot.slane %v9634_v49, 5  ;;  %v5202_v16 = vld [vmem:[#allocation2 + $0xa4] sm:$0x1]  ;;  %v5204_v25 = vld [vmem:[#allocation2 + $0xac] sm:$0xf] }
 0x262   : > { %7706 = vmatpush3.bf16.msra.mxu0 %v8090_v5  ;;  %v7055_v5 = vrot.slane %v5913_v1, 9  ;;  %v9769_v23 = vsel %vm9078_vm1, %v6022_v6, %v6023_v21  ;;  %v5493_v40 = vshrl.u32 %v9710_v38, 16  ;;  %v6037_v1 = vrot.slane %v9647_v34, 5  ;;  %v5916_v21 = vld [vmem:[#allocation2 + $0x9c] sm:$0xe] }
 0x263   : > { %v6036_v8 = vrot.slane %v6034_v20, 4  ;;  %v7057_v47 = vrot.slane %v5915_v15, 9  ;;  %v6041_v6 = vrot.slane %v9660_v45, 5  ;;  %v9795_v49 = vcombine.low %v5444_v43, %v5454_v48  ;;  %v5917_v48 = vld [vmem:[#allocation2 + $0xa8] sm:$0xe] }
 0x264   : > { %v6044_v34 = vrot.slane %v9692_v2, 5  ;;  %v5499_v50 = vshll.u32 %v5202_v16, 16  ;;  %v9812_v15 = vrot.slane %v5493_v40, 4  ;;  %v5507_v52 = vshll.u32 %v5203_v36, 16 }
 0x265   : > { %7676 = vmatmul.mubr.msk.bf16.gmra.mrb[4].mxu0 %vm2226_vm11, %v9612_v17  ;;  %v9777_v17 = vsel %vm9078_vm1, %v7055_v5, %v6027_v9  ;;  %v9792_v9 = vsel %vm9078_vm1, %v7056_v46, %v6034_v20  ;;  %v9801_v5 = vrot.slane %v5472_v19, 4  ;;  %v9806_v46 = vsel %vm9078_vm1, %v6036_v8, %v6037_v1  ;;  %v9814_v20 = vld [vmem:[#allocation2 + $0xb0] sm:$0x1] }
 0x266   : > { %7679 = vmatprep.mubr.msk.bf16.mxu0 %vm2226_vm11, %v9654_v54  ;;  %v9810_v45 = vsel %vm9078_vm1, %v7057_v47, %v6041_v6  ;;  %v6043_v43 = vrot.slane %v6041_v6, 4  ;;  %v5504_v19 = vshrl.u32 %v5203_v36, 16  ;;  %v7058_v54 = vrot.slane %v5916_v21, 9  ;;  %v9840_v6 = vld [vmem:[#allocation2 + $0xb8] sm:$0xf] }
 0x267   : > { %v6048_v8 = vrot.slane %v9710_v38, 5  ;;  %v6051_v47 = vrot.slane %v5202_v16, 5  ;;  %v5513_v40 = vshll.u32 %v5204_v25, 16  ;;  %v7059_v12 = vrot.slane %v5917_v48, 9  ;;  %v5918_v16 = vld [vmem:[#allocation2 + $0xb4] sm:$0xe] }
 0x268   : > { %v9820_v1 = vsel %vm9078_vm1, %v6043_v43, %v6044_v34  ;;  %v6055_v3 = vrot.slane %v5204_v25, 5  ;;  %v5517_v36 = vshrl.u32 %v5204_v25, 16  ;;  %v6058_v38 = vrot.slane %v9814_v20, 5  ;;  %v5206_v48 = vld [vmem:[#allocation2 + $0xb4] sm:$0xf] }
 0x269   : > { %10437 = vst [vmem:[#allocation35_spill] sm:$0xff] %v9820_v1  ;;  %v9831_v21 = vsel %vm9078_vm1, %v7058_v54, %v6048_v8  ;;  %v6050_v34 = vrot.slane %v6048_v8, 4  ;;  %v5486_v43 = vor.u32 %v9761_v10, %v9752_v51  ;;  %v5496_v25 = vor.u32 %v9812_v15, %v9784_v44  ;;  %v5919_v51 = vld [vmem:[#allocation2 + $0xc0] sm:$0xe] }
 0x26a   : > { %10438 = vst [vmem:[#allocation36_spill] sm:$0xff] %v9831_v21  ;;  %v6057_v54 = vrot.slane %v6055_v3, 4  ;;  %v9848_v8 = vrot.slane %v5499_v50, 5  ;;  %v5506_v2 = vrot.slane %v5504_v19, 4  ;;  %v5509_v10 = vrot.slane %v5507_v52, 5 }
 0x26b   : > { %v7060_v50 = vrot.slane %v5918_v16, 9  ;;  %v9864_v15 = vrot.slane %v5513_v40, 5  ;;  %v5519_v19 = vrot.slane %v5517_v36, 4  ;;  %v5920_v52 = vld [vmem:[#allocation2 + $0xcc] sm:$0xe]  ;;  %v5523_v11 = vshll.u32 %v9814_v20, 16 }
 0x26c   : > { %v7061_v63 = vrot.slane %v5919_v51, 9  ;;  %v5528_v13 = vshrl.u32 %v5206_v48, 16  ;;  %v5531_v16 = vshll.u32 %v5206_v48, 16  ;;  %v10450_v29 = vcombine.low %v9765_v62, %v9769_v23 }
 0x26d   : > { %7680 = vmatmul.mubr.msk.bf16.gmra.mrb[8].mxu0 %vm2226_vm11, %v9656_v7  ;;  %v5478_v7 = vsel %vm8358_vm10, %v9801_v5, %v9747_v56  ;;  %v9854_v56 = vsel %vm9078_vm1, %v6050_v34, %v6051_v47  ;;  %v5210_v5 = vld [vmem:[#allocation2 + $0xc4] sm:$0xf]  ;;  %v6062_v34 = vrot.slane %v9840_v6, 5  ;;  %v7062_v47 = vrot.slane %v5920_v52, 9 }
 0x26e   : > { %7683 = vmatprep.mubr.msk.bf16.mxu0 %vm2226_vm11, %v9658_v58  ;;  %v9844_v58 = vsel %vm9078_vm1, %v7059_v12, %v6055_v3  ;;  %10440 = vst [vmem:[#allocation38_spill] sm:$0xff] %v9854_v56  ;;  %v9862_v12 = vsel %vm9078_vm1, %v6057_v54, %v6058_v38  ;;  %v6069_v3 = vrot.slane %v5210_v5, 5  ;;  %v6072_v38 = vrot.slane %v9856_v32, 5  ;;  %v9880_v54 = vld [vmem:[#allocation2 + $0xd4] sm:$0x1] }
 0x26f   : > { %10439 = vst [vmem:[#allocation37_spill] sm:$0xff] %v9844_v58  ;;  %10441 = vst [vmem:[#allocation39_spill] sm:$0xff] %v9862_v12  ;;  %v9875_v40 = vsel %vm9078_vm1, %v7060_v50, %v6062_v34  ;;  %v6064_v36 = vrot.slane %v6062_v34, 4  ;;  %v5510_v50 = vor.u32 %v5509_v10, %v5506_v2  ;;  %v5209_v12 = vld [vmem:[#allocation2 + $0xc0] sm:$0xf]  ;;  %v6079_v48 = vrot.slane %v9880_v54, 5 }
 0x270   : > { %10442 = vst [vmem:[#allocation40_spill] sm:$0xff] %v9875_v40  ;;  %v9884_v20 = vsel %vm9078_vm1, %v7061_v63, %v6069_v3  ;;  %v6071_v51 = vrot.slane %v6069_v3, 4  ;;  %v5520_v58 = vor.u32 %v5519_v19, %v9864_v15  ;;  %v5537_v63 = vshll.u32 %v9840_v6, 16 }
 0x271   : > { %10443 = vst [vmem:[#allocation41_spill] sm:$0xff] %v9884_v20  ;;  %v9890_v34 = vsel %vm9078_vm1, %v6064_v36, %v6065_v0  ;;  %v5541_v2 = vshrl.u32 %v9840_v6, 16  ;;  %v5552_v19 = vshrl.u32 %v5209_v12, 16  ;;  %v5555_v36 = vshll.u32 %v5209_v12, 16 }
 0x272   : > { %10444 = vst [vmem:[#allocation42_spill] sm:$0xff] %v9890_v34  ;;  %v5561_v56 = vshll.u32 %v5210_v5, 16  ;;  %v5565_v21 = vshrl.u32 %v5210_v5, 16  ;;  %v5487_v3 = vrot.slane %v5486_v43, 4  ;;  %v5497_v6 = vrot.slane %v5496_v25, 4 }
 0x273   : > { %v5533_v20 = vrot.slane %v5531_v16, 5  ;;  %v5511_v5 = vrot.slane %v5510_v50, 4  ;;  %v5521_v34 = vrot.slane %v5520_v58, 4  ;;  %v5539_v40 = vrot.slane %v5537_v63, 5 }
 0x274   : > { %v5543_v1 = vrot.slane %v5541_v2, 4  ;;  %v5567_v43 = vrot.slane %v5565_v21, 4  ;;  %v5585_v25 = vshll.u32 %v9871_v59, 16  ;;  %v5589_v16 = vshrl.u32 %v9871_v59, 16 }
 0x275   : > { %7684 = vmatmul.mubr.msk.bf16.gmra.mrb[12].mxu0 %vm2226_vm11, %v9668_v41  ;;  %v6076_v41 = vrot.slane %v9871_v59, 5  ;;  %v5492_v58 = vsel %vm8358_vm10, %v5487_v3, %v9784_v44  ;;  %v5516_v21 = vsel %vm8358_vm10, %v5511_v5, %v9864_v15 }
 0x276   : > { %7687 = vmatprep.mubr.msk.bf16.mxu0 %vm2226_vm11, %v9686_v28  ;;  %v9900_v28 = vsel %vm9078_vm1, %v6071_v51, %v6072_v38  ;;  %v10446_v38 = vsel %vm8358_vm10, %v9734_v53, %v9702_v31  ;;  %v5554_v31 = vrot.slane %v5552_v19, 4  ;;  %v5557_v53 = vrot.slane %v5555_v36, 5  ;;  %v10458_v23 = vld [vmem:[#allocation37_spill] sm:$0xff] }
 0x277   : > { %10445 = vst [vmem:[#allocation43_spill] sm:$0xff] %v9900_v28  ;;  %v9907_v10 = vsel %vm9078_vm1, %v7062_v47, %v6076_v41  ;;  %v6078_v52 = vrot.slane %v6076_v41, 4  ;;  %v7023_v51 = vcombine.low %v10446_v38, %v5478_v7  ;;  %v5525_v28 = vrot.slane %v5523_v11, 5  ;;  %v5212_v41 = vld [vmem:[#allocation2 + $0xcc] sm:$0xf] }
 0x278   : > { %v5530_v47 = vrot.slane %v5528_v13, 4  ;;  %v5563_v7 = vrot.slane %v5561_v56, 5  ;;  %v5576_v11 = vshrl.u32 %v5212_v41, 16  ;;  %v5579_v13 = vshll.u32 %v5212_v41, 16 }
 0x279   : > { %v9916_v0 = vsel %vm9078_vm1, %v6078_v52, %v6079_v48  ;;  %v5544_v50 = vor.u32 %v5543_v1, %v5539_v40  ;;  %v5547_v48 = vshll.u32 %v9850_v24, 16  ;;  %v5526_v63 = vsel %vm8358_vm10, %v5521_v34, %v5525_v28 }
 0x27a   : > { %v7082_v12 = vcombine.low %v9907_v10, %v9916_v0  ;;  %v5534_v56 = vor.u32 %v5533_v20, %v5530_v47  ;;  %v5558_v59 = vor.u32 %v5557_v53, %v5554_v31  ;;  %v5568_v2 = vor.u32 %v5567_v43, %v5563_v7 }
 0x27b   : > { %v5571_v52 = vshll.u32 %v9856_v32, 16  ;;  %v5578_v44 = vrot.slane %v5576_v11, 4  ;;  %v5581_v3 = vrot.slane %v5579_v13, 5  ;;  %v5587_v19 = vrot.slane %v5585_v25, 5 }
 0x27c   : > { %v5591_v36 = vrot.slane %v5589_v16, 4  ;;  %v7025_v38 = vcombine.low %v5516_v21, %v5526_v63  ;;  %v5549_v15 = vrot.slane %v5547_v48, 5  ;;  %v5559_v1 = vrot.slane %v5558_v59, 4 }
 0x27d   : > { %7688 = vmatmul.mubr.msk.bf16.gmra.mrb[16].mxu0 %vm2226_vm11, %v9795_v49  ;;  %v5502_v49 = vsel %vm8358_vm10, %v5497_v6, %v9848_v8  ;;  %v5545_v6 = vrot.slane %v5544_v50, 4  ;;  %v5569_v24 = vrot.slane %v5568_v2, 4  ;;  %v5573_v20 = vrot.slane %v5571_v52, 5 }
 0x27e   : > { %7691 = vmatprep.mubr.msk.bf16.mxu0 %vm2226_vm11, %v7023_v51  ;;  %v7024_v8 = vcombine.low %v5492_v58, %v5502_v49  ;;  %v5535_v51 = vrot.slane %v5534_v56, 4  ;;  %v5582_v34 = vor.u32 %v5581_v3, %v5578_v44  ;;  %v5592_v28 = vor.u32 %v5591_v36, %v5587_v19  ;;  %v5905_v58 = vld [vmem:[#allocation2 + $0x18] sm:$0xe] }
 0x27f   : > { %v5595_v32 = vshll.u32 %v9880_v54, 16  ;;  %v5550_v41 = vsel %vm8358_vm10, %v5545_v6, %v5549_v15  ;;  %v5564_v5 = vsel %vm8358_vm10, %v5559_v1, %v5563_v7  ;;  %v5574_v31 = vsel %vm8358_vm10, %v5569_v24, %v5573_v20 }
 0x280   : > { %v5540_v47 = vsel %vm8358_vm10, %v5535_v51, %v5539_v40  ;;  %v5971_v53 = vrot.slane %v9435_v4, 5  ;;  %v5583_v43 = vrot.slane %v5582_v34, 4  ;;  %v5593_v11 = vrot.slane %v5592_v28, 4 }
 0x281   : > { %v5597_v13 = vrot.slane %v5595_v32, 5  ;;  %v7026_v25 = vcombine.low %v5540_v47, %v5550_v41  ;;  %v7027_v16 = vcombine.low %v5564_v5, %v5574_v31  ;;  %v5974_v49 = vrot.slane %v9472_v14, 5  ;;  %v5907_v14 = vld [vmem:[#allocation2 + $0x30] sm:$0xe]  ;;  %v10459_v47 = vld [vmem:[#allocation39_spill] sm:$0xff]  ;;  %v10461_v5 = vld [vmem:[#allocation40_spill] sm:$0xff] }
 0x282   : > { %v5973_v54 = vrot.slane %v5971_v53, 4  ;;  %v5588_v40 = vsel %vm8358_vm10, %v5583_v43, %v5587_v19  ;;  %v5978_v4 = vrot.slane %v9446_v55, 5  ;;  %v7047_v56 = vrot.slane %v5905_v58, 9  ;;  %v10462_v31 = vld [vmem:[#allocation42_spill] sm:$0xff]  ;;  %v10465_v43 = vld [vmem:[#allocation43_spill] sm:$0xff] }
 0x283   : > { %v5598_v7 = vsel %vm8358_vm10, %v5593_v11, %v5597_v13  ;;  %v5985_v48 = vrot.slane %v9456_v35, 5  ;;  %v5981_v55 = vrot.slane %v9477_v61, 5  ;;  %v5988_v44 = vrot.slane %v9485_v26, 5  ;;  %v5908_v26 = vld [vmem:[#allocation2 + $0x3c] sm:$0xe] }
 0x284   : > { %v7028_v21 = vcombine.low %v5588_v40, %v5598_v7  ;;  %v5975_v50 = vsel %vm9078_vm1, %v5973_v54, %v5974_v49  ;;  %v5972_v63 = vsel %vm9078_vm1, %v7047_v56, %v5971_v53  ;;  %v5980_v2 = vrot.slane %v5978_v4, 4 }
 0x285   : > { %7692 = vmatmul.mubr.msk.bf16.gmra.mrb[20].mxu0 %vm2226_vm11, %v7024_v8  ;;  %v7067_v59 = vcombine.low %v5972_v63, %v5975_v50  ;;  %v5987_v52 = vrot.slane %v5985_v48, 4  ;;  %v7048_v3 = vrot.slane %v5906_v18, 9  ;;  %v5992_v19 = vrot.slane %v9490_v60, 5 }
 0x286   : > { %7695 = vmatprep.mubr.msk.bf16.mxu0 %vm2226_vm11, %v7025_v38  ;;  %v5982_v35 = vsel %vm9078_vm1, %v5980_v2, %v5981_v55  ;;  %v7049_v36 = vrot.slane %v5907_v14, 9  ;;  %v5995_v60 = vrot.slane %v9504_v37, 5  ;;  %v7050_v1 = vrot.slane %v5908_v26, 9 }
 0x287   : > { %v5989_v8 = vsel %vm9078_vm1, %v5987_v52, %v5988_v44  ;;  %v5979_v38 = vsel %vm9078_vm1, %v7048_v3, %v5978_v4  ;;  %v5994_v15 = vrot.slane %v5992_v19, 4  ;;  %v10447_v28 = vcombine.low %v9696_v27, %v9700_v30 }
 0x288   : > { %v7068_v51 = vcombine.low %v5979_v38, %v5982_v35  ;;  %v5986_v61 = vsel %vm9078_vm1, %v7049_v36, %v5985_v48  ;;  %v5993_v20 = vsel %vm9078_vm1, %v7050_v1, %v5992_v19  ;;  %v10448_v32 = vcombine.low %v9724_v42, %v9728_v57  ;;  %v10453_v42 = vld [vmem:[#allocation35_spill] sm:$0xff] }
 0x289   : > { %v7069_v6 = vcombine.low %v5986_v61, %v5989_v8  ;;  %v5996_v24 = vsel %vm9078_vm1, %v5994_v15, %v5995_v60  ;;  %v10449_v37 = vcombine.low %v9738_v22, %v9742_v33  ;;  %v10451_v27 = vcombine.low %v9777_v17, %v9781_v39  ;;  %v10455_v22 = vld [vmem:[#allocation36_spill] sm:$0xff]  ;;  %v10456_v33 = vld [vmem:[#allocation38_spill] sm:$0xff]  ;;  %v10468_v1 = vld [vmem:[#allocation3_spill] sm:$0xff] }
 0x28a   : > { %v7070_v34 = vcombine.low %v5993_v20, %v5996_v24  ;;  %v10452_v30 = vcombine.low %v9792_v9, %v9806_v46  ;;  %v10454_v57 = vcombine.low %v9810_v45, %v10453_v42  ;;  %v10457_v62 = vcombine.low %v10455_v22, %v10456_v33  ;;  %v10464_v45 = vld [vmem:[#allocation41_spill] sm:$0xff]  ;;  %v10091_v8 = vld [vmem:[%s10345_s8] ss:$0 sm:$0xff]  ;;  %v10470_v42 = vld [vmem:[#allocation7_spill] sm:$0xff] }
 0x28b   : > { %v10460_v17 = vcombine.low %v10458_v23, %v10459_v47  ;;  %v10463_v53 = vcombine.low %v10461_v5, %v10462_v31  ;;  %v10466_v11 = vcombine.low %v10464_v45, %v10465_v43  ;;  %v10467_v61 = vld [vmem:[#allocation4_spill] sm:$0xff]  ;;  %v1008_v24 = vmul.f32 %v10091_v8, %v10468_v1 }
 0x28c   : > { %v10103_v60 = vld [vmem:[%s10346_s9] ss:$0 sm:$0xff] }
 0x28d   : > { %7696 = vmatmul.mubr.msk.bf16.gmra.mrb[24].mxu0 %vm2226_vm11, %v7026_v25  ;;  %v10110_v20 = vld [vmem:[%s10343_s6] ss:$0 sm:$0xff] }
 0x28e   : > { %7699 = vmatprep.mubr.msk.bf16.mxu0 %vm2226_vm11, %v7027_v16  ;;  %v10472_v1 = vld [vmem:[#allocation8_spill] sm:$0xff] }
 0x295   : > { %7700 = vmatmul.mubr.msk.bf16.gmra.mrb[28].mxu0 %vm2226_vm11, %v7028_v21 }
 0x296   : > { %7707 = vmatprep.mubr.msk.bf16.mxu0 %vm2226_vm11, %v7067_v59 }
 0x29d   : > { %7708 = vmatmul.mubr.msk.bf16.vlgmr.msra.gmra.mrb[0].mxu0 %vm2226_vm11, %v7068_v51  ;;  %v10096_v51 = vld [vmem:[%s10342_s5] ss:$0 sm:$0xff] }
 0x29e   : > { %7711 = vmatprep.mubr.msk.bf16.mxu0 %vm2226_vm11, %v7069_v6  ;;  %v1010_v6 = vmul.f32 %v10467_v61, %v10091_v8 }
 0x2a5   : > { %7712 = vmatmul.mubr.msk.bf16.gmra.mrb[4].mxu0 %vm2226_vm11, %v7070_v34 }
 0x2a6   : > { %7715 = vmatprep.mubr.msk.bf16.mxu0 %vm2226_vm11, %v10447_v28 }
 0x2ad   : > { %7716 = vmatmul.mubr.msk.bf16.gmra.mrb[8].mxu0 %vm2226_vm11, %v10448_v32  ;;  %v10469_v32 = vld [vmem:[#allocation5_spill] sm:$0xff] }
 0x2ae   : > { %7719 = vmatprep.mubr.msk.bf16.mxu0 %vm2226_vm11, %v10449_v37  ;;  %v1011_v37 = vmul.f32 %v10469_v32, %v10091_v8 }
 0x2b5   : > { %7720 = vmatmul.mubr.msk.bf16.gmra.mrb[12].mxu0 %vm2226_vm11, %v10450_v29 }
 0x2b6   : > { %7723 = vmatprep.mubr.msk.bf16.mxu0 %vm2226_vm11, %v10451_v27 }
 0x2bd   : > { %7724 = vmatmul.mubr.msk.bf16.gmra.mrb[16].mxu0 %vm2226_vm11, %v10452_v30 }
 0x2be   : > { %7727 = vmatprep.mubr.msk.bf16.mxu0 %vm2226_vm11, %v10454_v57  ;;  %v1009_v57 = vmul.f32 %v10091_v8, %v10470_v42 }
 0x2c5   : > { %7728 = vmatmul.mubr.msk.bf16.gmra.mrb[20].mxu0 %vm2226_vm11, %v10457_v62  ;;  %v1049_v62 = vadd.f32 %v10103_v60, %v1010_v6 }
 0x2c6   : > { %7731 = vmatprep.mubr.msk.bf16.mxu0 %vm2226_vm11, %v10460_v17  ;;  %v7493_v39 = vpop.f32.mrb[64].mxu1  ;;  %v1047_v17 = vadd.f32 %v10103_v60, %v1008_v24  ;;  %v1012_v24 = vmul.f32 %v10091_v8, %v10472_v1  ;;  %v10476_v1 = vld [vmem:[#allocation12_spill] sm:$0xff] }
 0x2c7   : > { %v3047_v41 = vpop.f32.mrb[65].mxu1 }
 0x2c8   : > { %v7494_v9 = vpop.f32.mrb[66].mxu1 }
 0x2c9   : > { %v3050_v46 = vpop.f32.mrb[67].mxu1 }
 0x2cd   : > { %7732 = vmatmul.mubr.msk.bf16.gmra.mrb[24].mxu0 %vm2226_vm11, %v10463_v53 }
 0x2ce   : > { %7735 = vmatprep.mubr.msk.bf16.mxu0 %vm2226_vm11, %v10466_v11  ;;  %v10028_v13 = vpop.f32.mrb[68].mxu1  ;;  %v10471_v11 = vld [vmem:[#allocation6_spill] sm:$0xff] }
 0x2cf   : > { %v10030_v25 = vpop.f32.mrb[69].mxu1 }
 0x2d0   : > { %v10032_v16 = vpop.f32.mrb[70].mxu1 }
 0x2d1   : > { %v10034_v54 = vpop.f32.mrb[71].mxu1 }
 0x2d5   : > { %7736 = vmatmul.mubr.msk.bf16.gmra.mrb[28].mxu0 %vm2226_vm11, %v7082_v12 }
 0x2d6   : > { %v10040_v40 = vpop.f32.mrb[72].mxu1 }
 0x2d7   : > { %v10042_v7 = vpop.f32.mrb[73].mxu1 }
 0x2d8   : > { %v10044_v58 = vpop.f32.mrb[74].mxu1 }
 0x2d9   : > { %v10046_v49 = vpop.f32.mrb[75].mxu1 }
 0x2de   : > { %v10048_v4 = vpop.f32.mrb[76].mxu1 }
 0x2df   : > { %v10050_v21 = vpop.f32.mrb[77].mxu1 }
 0x2e0   : > { %v10052_v56 = vpop.f32.mrb[78].mxu1 }
 0x2e1   : > { %v10054_v50 = vpop.f32.mrb[79].mxu1 }
 0x2e6   : > { %v10056_v48 = vpop.f32.mrb[80].mxu1 }
 0x2e7   : > { %v10058_v0 = vpop.f32.mrb[81].mxu1 }
 0x2e8   : > { %v10060_v10 = vpop.f32.mrb[82].mxu1 }
 0x2e9   : > { %v10062_v12 = vpop.f32.mrb[83].mxu1 }
 0x306   : > { %v10064_v63 = vpop.f32.mrb[84].mxu1 }
 0x307   : > { %v10066_v59 = vpop.f32.mrb[85].mxu1 }
 0x308   : > { %v10068_v2 = vpop.f32.mrb[86].mxu1 }
 0x309   : > { %v10070_v18 = vpop.f32.mrb[87].mxu1 }
 0x30e   : > { %v10072_v52 = vpop.f32.mrb[88].mxu1 }
 0x30f   : > { %v10074_v55 = vpop.f32.mrb[89].mxu1 }
 0x310   : > { %v10076_v14 = vpop.f32.mrb[90].mxu1 }
 0x311   : > { %v10078_v44 = vpop.f32.mrb[91].mxu1 }
 0x316   : > { %v10080_v3 = vpop.f32.mrb[92].mxu1 }
 0x317   : > { %v10082_v35 = vpop.f32.mrb[93].mxu1 }
 0x318   : > { %v10084_v19 = vpop.f32.mrb[94].mxu1 }
 0x319   : > { %v10086_v36 = vpop.f32.mrb[95].mxu1 }
 0x370   : > { %v7709_v38 = vpop.f32.mrb[0].mxu0 }
 0x371   : > { %v7743_v15 = vadd.f32 %v7709_v38, %v7493_v39  ;;  %v6228_v26 = vpop.f32.mrb[1].mxu0  ;;  %v1014_v38 = vmul.f32 %v10471_v11, %v10091_v8  ;;  %v10475_v11 = vld [vmem:[#allocation11_spill] sm:$0xff] }
 0x372   : > { %v7744_v34 = vadd.f32 %v6228_v26, %v3047_v41  ;;  %v7710_v28 = vpop.f32.mrb[2].mxu0 }
 0x373   : > { %v6396_v29 = vmul.f32 %v7743_v15, %v10096_v51  ;;  %v7745_v27 = vadd.f32 %v7710_v28, %v7494_v9  ;;  %v6231_v30 = vpop.f32.mrb[3].mxu0  ;;  %v1050_v9 = vadd.f32 %v10103_v60, %v1011_v37 }
 0x374   : > { %v6394_v22 = vmul.f32 %v7744_v34, %v10096_v51  ;;  %v7746_v33 = vadd.f32 %v6231_v30, %v3050_v46  ;;  %v1048_v46 = vadd.f32 %v10103_v60, %v1009_v57 }
 0x375   : > { %v6435_v23 = vadd.f32 %v10110_v20, %v6396_v29  ;;  %v6397_v47 = vmul.f32 %v7745_v27, %v10096_v51  ;;  %v10473_v29 = vld [vmem:[#allocation10_spill] sm:$0xff] }
 0x376   : > { %v6433_v39 = vadd.f32 %v10110_v20, %v6394_v22  ;;  %v6395_v41 = vmul.f32 %v7746_v33, %v10096_v51  ;;  %v1015_v27 = vmul.f32 %v10473_v29, %v10091_v8  ;;  %v10474_v22 = vld [vmem:[#allocation9_spill] sm:$0xff] }
 0x377   : > { %v6467_v5 = vadd.f32 %v6435_v23, %v1049_v62  ;;  %v6436_v31 = vadd.f32 %v10110_v20, %v6397_v47  ;;  %v1013_v33 = vmul.f32 %v10091_v8, %v10474_v22  ;;  %v1053_v47 = vadd.f32 %v10103_v60, %v1014_v38  ;;  %v10477_v29 = vld [vmem:[#allocation13_spill] sm:$0xff] }
 0x378   : > { %v6465_v53 = vadd.f32 %v6433_v39, %v1047_v17  ;;  %v6434_v45 = vadd.f32 %v10110_v20, %v6395_v41  ;;  %v7713_v43 = vpop.f32.mrb[4].mxu0  ;;  %v1051_v41 = vadd.f32 %v10103_v60, %v1012_v24  ;;  %v1018_v38 = vmul.f32 %v10475_v11, %v10091_v8 }
 0x379   : > { %v6499_v61 = vmax.f32 %v6467_v5, 0.0  ;;  %v6468_v6 = vadd.f32 %v6436_v31, %v1050_v9  ;;  %v7747_v15 = vadd.f32 %v7713_v43, %v10028_v13  ;;  %v6244_v26 = vpop.f32.mrb[5].mxu0  ;;  %v1054_v5 = vadd.f32 %v10103_v60, %v1015_v27 }
 0x37a   : > { %v6497_v34 = vmax.f32 %v6465_v53, 0.0  ;;  %v6466_v28 = vadd.f32 %v6434_v45, %v1048_v46  ;;  %v7748_v32 = vadd.f32 %v6244_v26, %v10030_v25  ;;  %v7714_v37 = vpop.f32.mrb[6].mxu0  ;;  %v1016_v24 = vmul.f32 %v10091_v8, %v10476_v1 }
 0x37b   : > { %6531 = vst [vmem:[%s10130_s14 + $0x10] sm:$0xff] %v6499_v61  ;;  %v6500_v30 = vmax.f32 %v6468_v6, 0.0  ;;  %v6400_v42 = vmul.f32 %v7747_v15, %v10096_v51  ;;  %v7749_v13 = vadd.f32 %v7714_v37, %v10032_v16  ;;  %v6247_v57 = vpop.f32.mrb[7].mxu0  ;;  %v1019_v27 = vmul.f32 %v10477_v29, %v10091_v8 }
 0x37c   : > { %6529 = vst [vmem:[%s10130_s14] sm:$0xff] %v6497_v34  ;;  %v6498_v62 = vmax.f32 %v6466_v28, 0.0  ;;  %v6398_v23 = vmul.f32 %v7748_v32, %v10096_v51  ;;  %v7750_v25 = vadd.f32 %v6247_v57, %v10034_v54  ;;  %v1052_v54 = vadd.f32 %v10103_v60, %v1013_v33  ;;  %v10478_v57 = vld [vmem:[#allocation14_spill] sm:$0xff] }
 0x37d   : > { %6532 = vst [vmem:[%s10130_s14 + $0x18] sm:$0xff] %v6500_v30  ;;  %v6439_v17 = vadd.f32 %v10110_v20, %v6400_v42  ;;  %v6401_v39 = vmul.f32 %v7749_v13, %v10096_v51  ;;  %v1017_v22 = vmul.f32 %v10091_v8, %v10478_v57 }
 0x37e   : > { %6530 = vst [vmem:[%s10130_s14 + $0x8] sm:$0xff] %v6498_v62  ;;  %v6437_v16 = vadd.f32 %v10110_v20, %v6398_v23  ;;  %v6399_v9 = vmul.f32 %v7750_v25, %v10096_v51  ;;  %v1057_v23 = vadd.f32 %v10103_v60, %v1018_v38 }
 0x37f   : > { %v6471_v31 = vadd.f32 %v6439_v17, %v1053_v47  ;;  %v6440_v46 = vadd.f32 %v10110_v20, %v6401_v39  ;;  %v1055_v17 = vadd.f32 %v10103_v60, %v1016_v24 }
 0x380   : > { %v6469_v53 = vadd.f32 %v6437_v16, %v1051_v41  ;;  %v6438_v45 = vadd.f32 %v10110_v20, %v6399_v9  ;;  %v7717_v43 = vpop.f32.mrb[8].mxu0  ;;  %v1058_v41 = vadd.f32 %v10103_v60, %v1019_v27  ;;  %v10482_v27 = vld [vmem:[#allocation18_spill] sm:$0xff] }
 0x381   : > { %v6503_v61 = vmax.f32 %v6471_v31, 0.0  ;;  %v6472_v6 = vadd.f32 %v6440_v46, %v1054_v5  ;;  %v7751_v15 = vadd.f32 %v7717_v43, %v10040_v40  ;;  %v6260_v26 = vpop.f32.mrb[9].mxu0 }
 0x382   : > { %v6501_v34 = vmax.f32 %v6469_v53, 0.0  ;;  %v6470_v28 = vadd.f32 %v6438_v45, %v1052_v54  ;;  %v7752_v32 = vadd.f32 %v6260_v26, %v10042_v7  ;;  %v7718_v37 = vpop.f32.mrb[10].mxu0  ;;  %v10479_v54 = vld [vmem:[#allocation15_spill] sm:$0xff] }
 0x383   : > { %6535 = vst [vmem:[%s10130_s14 + $0x30] sm:$0xff] %v6503_v61  ;;  %v6504_v30 = vmax.f32 %v6472_v6, 0.0  ;;  %v6404_v42 = vmul.f32 %v7751_v15, %v10096_v51  ;;  %v7753_v40 = vadd.f32 %v7718_v37, %v10044_v58  ;;  %v6263_v13 = vpop.f32.mrb[11].mxu0  ;;  %v1022_v53 = vmul.f32 %v10479_v54, %v10091_v8  ;;  %v10480_v61 = vld [vmem:[#allocation16_spill] sm:$0xff] }
 0x384   : > { %6533 = vst [vmem:[%s10130_s14 + $0x20] sm:$0xff] %v6501_v34  ;;  %v6502_v33 = vmax.f32 %v6470_v28, 0.0  ;;  %v6402_v62 = vmul.f32 %v7752_v32, %v10096_v51  ;;  %v7754_v7 = vadd.f32 %v6263_v13, %v10046_v49  ;;  %v1056_v49 = vadd.f32 %v10103_v60, %v1017_v22  ;;  %v10481_v34 = vld [vmem:[#allocation17_spill] sm:$0xff] }
 0x385   : > { %6536 = vst [vmem:[%s10130_s14 + $0x38] sm:$0xff] %v6504_v30  ;;  %v6443_v25 = vadd.f32 %v10110_v20, %v6404_v42  ;;  %v6405_v47 = vmul.f32 %v7753_v40, %v10096_v51  ;;  %v1020_v6 = vmul.f32 %v10091_v8, %v10480_v61  ;;  %v1023_v28 = vmul.f32 %v10481_v34, %v10091_v8 }
 0x386   : > { %6534 = vst [vmem:[%s10130_s14 + $0x28] sm:$0xff] %v6502_v33  ;;  %v6441_v58 = vadd.f32 %v10110_v20, %v6402_v62  ;;  %v6403_v39 = vmul.f32 %v7754_v7, %v10096_v51  ;;  %v1021_v30 = vmul.f32 %v10091_v8, %v10482_v27  ;;  %v1061_v13 = vadd.f32 %v10103_v60, %v1022_v53 }
 0x387   : > { %v6475_v16 = vadd.f32 %v6443_v25, %v1057_v23  ;;  %v6444_v9 = vadd.f32 %v10110_v20, %v6405_v47  ;;  %v1059_v33 = vadd.f32 %v10103_v60, %v1020_v6  ;;  %v1062_v7 = vadd.f32 %v10103_v60, %v1023_v28 }
 0x388   : > { %v6473_v5 = vadd.f32 %v6441_v58, %v1055_v17  ;;  %v6442_v31 = vadd.f32 %v10110_v20, %v6403_v39  ;;  %v7721_v46 = vpop.f32.mrb[12].mxu0  ;;  %v10483_v39 = vld [vmem:[#allocation19_spill] sm:$0xff] }
 0x389   : > { %v6507_v45 = vmax.f32 %v6475_v16, 0.0  ;;  %v6476_v43 = vadd.f32 %v6444_v9, %v1058_v41  ;;  %v7755_v11 = vadd.f32 %v7721_v46, %v10048_v4  ;;  %v6276_v38 = vpop.f32.mrb[13].mxu0  ;;  %v1026_v41 = vmul.f32 %v10483_v39, %v10091_v8  ;;  %v10489_v39 = vld [vmem:[#allocation25_spill] sm:$0xff] }
 0x38a   : > { %v6505_v15 = vmax.f32 %v6473_v5, 0.0  ;;  %v6474_v26 = vadd.f32 %v6442_v31, %v1056_v49  ;;  %v7756_v1 = vadd.f32 %v6276_v38, %v10050_v21  ;;  %v7722_v24 = vpop.f32.mrb[14].mxu0  ;;  %v10484_v31 = vld [vmem:[#allocation20_spill] sm:$0xff] }
 0x38b   : > { %6539 = vst [vmem:[%s10130_s14 + $0x50] sm:$0xff] %v6507_v45  ;;  %v6508_v32 = vmax.f32 %v6476_v43, 0.0  ;;  %v6408_v37 = vmul.f32 %v7755_v11, %v10096_v51  ;;  %v7757_v4 = vadd.f32 %v7722_v24, %v10052_v56  ;;  %v6279_v29 = vpop.f32.mrb[15].mxu0  ;;  %v1024_v46 = vmul.f32 %v10091_v8, %v10484_v31  ;;  %v10485_v11 = vld [vmem:[#allocation21_spill] sm:$0xff] }
 0x38c   : > { %6537 = vst [vmem:[%s10130_s14 + $0x40] sm:$0xff] %v6505_v15  ;;  %v6506_v42 = vmax.f32 %v6474_v26, 0.0  ;;  %v6406_v40 = vmul.f32 %v7756_v1, %v10096_v51  ;;  %v7758_v21 = vadd.f32 %v6279_v29, %v10054_v50  ;;  %v1060_v50 = vadd.f32 %v10103_v60, %v1021_v30  ;;  %v10486_v26 = vld [vmem:[#allocation22_spill] sm:$0xff] }
 0x38d   : > { %6540 = vst [vmem:[%s10130_s14 + $0x58] sm:$0xff] %v6508_v32  ;;  %v6447_v57 = vadd.f32 %v10110_v20, %v6408_v37  ;;  %v6409_v22 = vmul.f32 %v7757_v4, %v10096_v51  ;;  %v1027_v38 = vmul.f32 %v10485_v11, %v10091_v8  ;;  %v1025_v1 = vmul.f32 %v10091_v8, %v10486_v26 }
 0x38e   : > { %6538 = vst [vmem:[%s10130_s14 + $0x48] sm:$0xff] %v6506_v42  ;;  %v6445_v56 = vadd.f32 %v10110_v20, %v6406_v40  ;;  %v6407_v62 = vmul.f32 %v7758_v21, %v10096_v51  ;;  %v1065_v28 = vadd.f32 %v10103_v60, %v1026_v41  ;;  %v1063_v4 = vadd.f32 %v10103_v60, %v1024_v46 }
 0x38f   : > { %v6479_v23 = vadd.f32 %v6447_v57, %v1061_v13  ;;  %v6448_v25 = vadd.f32 %v10110_v20, %v6409_v22  ;;  %v1066_v27 = vadd.f32 %v10103_v60, %v1027_v38  ;;  %v10487_v57 = vld [vmem:[#allocation23_spill] sm:$0xff]  ;;  %v1031_v41 = vmul.f32 %v10489_v39, %v10091_v8 }
 0x390   : > { %v6477_v47 = vadd.f32 %v6445_v56, %v1059_v33  ;;  %v6446_v17 = vadd.f32 %v10110_v20, %v6407_v62  ;;  %v7725_v58 = vpop.f32.mrb[16].mxu0  ;;  %v1030_v22 = vmul.f32 %v10487_v57, %v10091_v8 }
 0x391   : > { %v6511_v16 = vmax.f32 %v6479_v23, 0.0  ;;  %v6480_v9 = vadd.f32 %v6448_v25, %v1062_v7  ;;  %v7759_v49 = vadd.f32 %v7725_v58, %v10056_v48  ;;  %v6292_v5 = vpop.f32.mrb[17].mxu0  ;;  %v10488_v23 = vld [vmem:[#allocation24_spill] sm:$0xff] }
 0x392   : > { %v6509_v54 = vmax.f32 %v6477_v47, 0.0  ;;  %v6478_v53 = vadd.f32 %v6446_v17, %v1060_v50  ;;  %v7760_v45 = vadd.f32 %v6292_v5, %v10058_v0  ;;  %v7726_v43 = vpop.f32.mrb[18].mxu0  ;;  %v1028_v25 = vmul.f32 %v10091_v8, %v10488_v23  ;;  %v10490_v5 = vld [vmem:[#allocation26_spill] sm:$0xff] }
 0x393   : > { %6543 = vst [vmem:[%s10130_s14 + $0x70] sm:$0xff] %v6511_v16  ;;  %v6512_v61 = vmax.f32 %v6480_v9, 0.0  ;;  %v6412_v6 = vmul.f32 %v7759_v49, %v10096_v51  ;;  %v7761_v48 = vadd.f32 %v7726_v43, %v10060_v10  ;;  %v6295_v15 = vpop.f32.mrb[19].mxu0  ;;  %v1029_v31 = vmul.f32 %v10091_v8, %v10490_v5 }
 0x394   : > { %6541 = vst [vmem:[%s10130_s14 + $0x60] sm:$0xff] %v6509_v54  ;;  %v6510_v24 = vmax.f32 %v6478_v53, 0.0  ;;  %v6410_v34 = vmul.f32 %v7760_v45, %v10096_v51  ;;  %v7762_v0 = vadd.f32 %v6295_v15, %v10062_v12  ;;  %v1064_v12 = vadd.f32 %v10103_v60, %v1025_v1 }
 0x395   : > { %6544 = vst [vmem:[%s10130_s14 + $0x78] sm:$0xff] %v6512_v61  ;;  %v6451_v32 = vadd.f32 %v10110_v20, %v6412_v6  ;;  %v6413_v37 = vmul.f32 %v7761_v48, %v10096_v51  ;;  %v1069_v53 = vadd.f32 %v10103_v60, %v1030_v22  ;;  %v1067_v11 = vadd.f32 %v10103_v60, %v1028_v25  ;;  %v10494_v22 = vld [vmem:[#allocation30_spill] sm:$0xff] }
 0x396   : > { %6542 = vst [vmem:[%s10130_s14 + $0x68] sm:$0xff] %v6510_v24  ;;  %v6449_v10 = vadd.f32 %v10110_v20, %v6410_v34  ;;  %v6411_v29 = vmul.f32 %v7762_v0, %v10096_v51  ;;  %v1070_v61 = vadd.f32 %v10103_v60, %v1031_v41  ;;  %v10491_v24 = vld [vmem:[#allocation27_spill] sm:$0xff] }
 0x397   : > { %v6483_v30 = vadd.f32 %v6451_v32, %v1065_v28  ;;  %v6452_v42 = vadd.f32 %v10110_v20, %v6413_v37  ;;  %v1034_v34 = vmul.f32 %v10491_v24, %v10091_v8 }
 0x398   : > { %v6481_v40 = vadd.f32 %v6449_v10, %v1063_v4  ;;  %v6450_v21 = vadd.f32 %v10110_v20, %v6411_v29  ;;  %v7729_v13 = vpop.f32.mrb[20].mxu0  ;;  %v10492_v4 = vld [vmem:[#allocation28_spill] sm:$0xff] }
 0x399   : > { %v6515_v33 = vmax.f32 %v6483_v30, 0.0  ;;  %v6484_v56 = vadd.f32 %v6452_v42, %v1066_v27  ;;  %v7763_v62 = vadd.f32 %v7729_v13, %v10064_v63  ;;  %v6308_v7 = vpop.f32.mrb[21].mxu0  ;;  %v1032_v10 = vmul.f32 %v10091_v8, %v10492_v4 }
 0x39a   : > { %v6513_v50 = vmax.f32 %v6481_v40, 0.0  ;;  %v6482_v47 = vadd.f32 %v6450_v21, %v1064_v12  ;;  %v7764_v17 = vadd.f32 %v6308_v7, %v10066_v59  ;;  %v7730_v58 = vpop.f32.mrb[22].mxu0  ;;  %v10493_v12 = vld [vmem:[#allocation29_spill] sm:$0xff]  ;;  %v1073_v7 = vadd.f32 %v10103_v60, %v1034_v34 }
 0x39b   : > { %6547 = vst [vmem:[%s10130_s14 + $0x90] sm:$0xff] %v6515_v33  ;;  %v6516_v16 = vmax.f32 %v6484_v56, 0.0  ;;  %v6416_v9 = vmul.f32 %v7763_v62, %v10096_v51  ;;  %v7765_v63 = vadd.f32 %v7730_v58, %v10068_v2  ;;  %v6311_v49 = vpop.f32.mrb[23].mxu0  ;;  %v1035_v40 = vmul.f32 %v10493_v12, %v10091_v8 }
 0x39c   : > { %6545 = vst [vmem:[%s10130_s14 + $0x80] sm:$0xff] %v6513_v50  ;;  %v6514_v46 = vmax.f32 %v6482_v47, 0.0  ;;  %v6414_v54 = vmul.f32 %v7764_v17, %v10096_v51  ;;  %v7766_v59 = vadd.f32 %v6311_v49, %v10070_v18  ;;  %v1068_v18 = vadd.f32 %v10103_v60, %v1029_v31 }
 0x39d   : > { %6548 = vst [vmem:[%s10130_s14 + $0x98] sm:$0xff] %v6516_v16  ;;  %v6455_v45 = vadd.f32 %v10110_v20, %v6416_v9  ;;  %v6417_v43 = vmul.f32 %v7765_v63, %v10096_v51  ;;  %v1033_v33 = vmul.f32 %v10091_v8, %v10494_v22  ;;  %v1071_v50 = vadd.f32 %v10103_v60, %v1032_v10  ;;  %v10495_v63 = vld [vmem:[#allocation31_spill] sm:$0xff] }
 0x39e   : > { %6546 = vst [vmem:[%s10130_s14 + $0x88] sm:$0xff] %v6514_v46  ;;  %v6453_v2 = vadd.f32 %v10110_v20, %v6414_v54  ;;  %v6415_v38 = vmul.f32 %v7766_v59, %v10096_v51  ;;  %v1074_v17 = vadd.f32 %v10103_v60, %v1035_v40  ;;  %v1038_v49 = vmul.f32 %v10495_v63, %v10091_v8  ;;  %v10496_v59 = vld [vmem:[#allocation32_spill] sm:$0xff] }
 0x39f   : > { %v6487_v6 = vadd.f32 %v6455_v45, %v1069_v53  ;;  %v6456_v48 = vadd.f32 %v10110_v20, %v6417_v43  ;;  %v1036_v53 = vmul.f32 %v10091_v8, %v10496_v59 }
 0x3a0   : > { %v6485_v15 = vadd.f32 %v6453_v2, %v1067_v11  ;;  %v6454_v26 = vadd.f32 %v10110_v20, %v6415_v38  ;;  %v7733_v1 = vpop.f32.mrb[24].mxu0  ;;  %v10497_v38 = vld [vmem:[#allocation33_spill] sm:$0xff]  ;;  %v1077_v34 = vadd.f32 %v10103_v60, %v1038_v49 }
 0x3a1   : > { %v6519_v0 = vmax.f32 %v6487_v6, 0.0  ;;  %v6488_v28 = vadd.f32 %v6456_v48, %v1070_v61  ;;  %v7767_v32 = vadd.f32 %v7733_v1, %v10072_v52  ;;  %v6324_v37 = vpop.f32.mrb[25].mxu0  ;;  %v1039_v61 = vmul.f32 %v10497_v38, %v10091_v8 }
 0x3a2   : > { %v6517_v29 = vmax.f32 %v6485_v15, 0.0  ;;  %v6486_v27 = vadd.f32 %v6454_v26, %v1068_v18  ;;  %v7768_v30 = vadd.f32 %v6324_v37, %v10074_v55  ;;  %v7734_v42 = vpop.f32.mrb[26].mxu0  ;;  %v10498_v15 = vld [vmem:[#allocation34_spill] sm:$0xff] }
 0x3a3   : > { %6551 = vst [vmem:[%s10130_s14 + $0xb0] sm:$0xff] %v6519_v0  ;;  %v6520_v21 = vmax.f32 %v6488_v28, 0.0  ;;  %v6420_v13 = vmul.f32 %v7767_v32, %v10096_v51  ;;  %v7769_v52 = vadd.f32 %v7734_v42, %v10076_v14  ;;  %v6327_v57 = vpop.f32.mrb[27].mxu0  ;;  %v1037_v26 = vmul.f32 %v10091_v8, %v10498_v15 }
 0x3a4   : > { %6549 = vst [vmem:[%s10130_s14 + $0xa0] sm:$0xff] %v6517_v29  ;;  %v6518_v56 = vmax.f32 %v6486_v27, 0.0  ;;  %v6418_v62 = vmul.f32 %v7768_v30, %v10096_v51  ;;  %v7770_v55 = vadd.f32 %v6327_v57, %v10078_v44  ;;  %v1072_v44 = vadd.f32 %v10103_v60, %v1033_v33 }
 0x3a5   : > { %6552 = vst [vmem:[%s10130_s14 + $0xb8] sm:$0xff] %v6520_v21  ;;  %v6459_v23 = vadd.f32 %v10110_v20, %v6420_v13  ;;  %v6421_v25 = vmul.f32 %v7769_v52, %v10096_v51  ;;  %v1076_v10 = vadd.f32 %v10103_v60, %v1037_v26 }
 0x3a6   : > { %6550 = vst [vmem:[%s10130_s14 + $0xa8] sm:$0xff] %v6518_v56  ;;  %v6457_v14 = vadd.f32 %v10110_v20, %v6418_v62  ;;  %v6419_v47 = vmul.f32 %v7770_v55, %v10096_v51 }
 0x3a7   : > { %v6491_v58 = vadd.f32 %v6459_v23, %v1073_v7  ;;  %v6460_v39 = vadd.f32 %v10110_v20, %v6421_v25 }
 0x3a8   : > { %v6489_v41 = vadd.f32 %v6457_v14, %v1071_v50  ;;  %v6458_v16 = vadd.f32 %v10110_v20, %v6419_v47  ;;  %v7737_v9 = vpop.f32.mrb[28].mxu0 }
 0x3a9   : > { %v6523_v5 = vmax.f32 %v6491_v58, 0.0  ;;  %v6492_v31 = vadd.f32 %v6460_v39, %v1074_v17  ;;  %v7771_v46 = vadd.f32 %v7737_v9, %v10080_v3  ;;  %v6340_v54 = vpop.f32.mrb[29].mxu0 }
 0x3aa   : > { %v6521_v45 = vmax.f32 %v6489_v41, 0.0  ;;  %v6490_v43 = vadd.f32 %v6458_v16, %v1072_v44  ;;  %v7772_v11 = vadd.f32 %v6340_v54, %v10082_v35  ;;  %v7738_v2 = vpop.f32.mrb[30].mxu0 }
 0x3ab   : > { %6555 = vst [vmem:[%s10130_s14 + $0xd0] sm:$0xff] %v6523_v5  ;;  %v6524_v6 = vmax.f32 %v6492_v31, 0.0  ;;  %v6424_v48 = vmul.f32 %v7771_v46, %v10096_v51  ;;  %v7773_v3 = vadd.f32 %v7738_v2, %v10084_v19  ;;  %v6343_v18 = vpop.f32.mrb[31].mxu0  ;;  %v1075_v19 = vadd.f32 %v10103_v60, %v1036_v53 }
 0x3ac   : > { %6553 = vst [vmem:[%s10130_s14 + $0xc0] sm:$0xff] %v6521_v45  ;;  %v6522_v1 = vmax.f32 %v6490_v43, 0.0  ;;  %v6422_v24 = vmul.f32 %v7772_v11, %v10096_v51  ;;  %v7774_v35 = vadd.f32 %v6343_v18, %v10086_v36  ;;  %v1078_v36 = vadd.f32 %v10103_v60, %v1039_v61 }
 0x3ad   : > { %6556 = vst [vmem:[%s10130_s14 + $0xd8] sm:$0xff] %v6524_v6  ;;  %v6463_v0 = vadd.f32 %v10110_v20, %v6424_v48  ;;  %v6425_v28 = vmul.f32 %v7773_v3, %v10096_v51 }
 0x3ae   : > { %6554 = vst [vmem:[%s10130_s14 + $0xc8] sm:$0xff] %v6522_v1  ;;  %v6461_v8 = vadd.f32 %v10110_v20, %v6422_v24  ;;  %v6423_v32 = vmul.f32 %v7774_v35, %v10096_v51 }
 0x3af   : > { %v6495_v37 = vadd.f32 %v6463_v0, %v1077_v34  ;;  %v6464_v4 = vadd.f32 %v10110_v20, %v6425_v28 }
 0x3b0   : > { %v6493_v29 = vadd.f32 %v6461_v8, %v1075_v19  ;;  %v6462_v27 = vadd.f32 %v10110_v20, %v6423_v32 }
 0x3b1   : > { %v6527_v30 = vmax.f32 %v6495_v37, 0.0  ;;  %v6496_v42 = vadd.f32 %v6464_v4, %v1078_v36 }
 0x3b2   : > { %v6525_v12 = vmax.f32 %v6493_v29, 0.0  ;;  %v6494_v40 = vadd.f32 %v6462_v27, %v1076_v10 }
 0x3b3   : > { %6559 = vst [vmem:[%s10130_s14 + $0xf0] sm:$0xff] %v6527_v30  ;;  %v6528_v21 = vmax.f32 %v6496_v42, 0.0 }
 0x3b4   : > { %6557 = vst [vmem:[%s10130_s14 + $0xe0] sm:$0xff] %v6525_v12  ;;  %v6526_v13 = vmax.f32 %v6494_v40, 0.0 }
 0x3b5   : > { %6560 = vst [vmem:[%s10130_s14 + $0xf8] sm:$0xff] %v6528_v21 }
 0x3b6   : > { %6558 = vst [vmem:[%s10130_s14 + $0xe8] sm:$0xff] %v6526_v13 }
 0x3b7 PF: > { %s20_s13 = sadd.s32 1, %s8146_s13  }
 0x3b8   : > { %p17_p4 = scmp.ge.s32.totalorder %s20_s13, 4  }
 0x3ba   :  { %19 = sbr.rel (!%p17_p4) target bundleno = 1 (0x1), region = 101 }

</bundles_post_ra>
